<compile_context>
chip_gen: v6e
topology: v6e:2x2x1
jax: 0.10.0
libtpu: 0.0.40
codegen_flags: <defaults>
</compile_context>

<pallas_src>
import functools

import jax
import jax.numpy as jnp
import numpy as np
from jax import lax
from jax.experimental import pallas as pl
from jax.experimental.pallas import tpu as pltpu

_MM_DTYPE = jnp.bfloat16    # MXU operand dtype (bf16 matmuls on v5e/v6e/v7x)
_ACT_DTYPE = jnp.bfloat16   # HBM activation storage (input + inter-sepconv)


# ------------------------------------------------------------- hw queries ----

@functools.lru_cache(maxsize=None)
def _device_kind():
    try:
        return jax.devices()[0].device_kind.lower()
    except Exception:
        return ""


@functools.lru_cache(maxsize=None)
def _dw_compute_dtype():
    """bf16 VALU exists on v6e/v7x; keep depthwise tap math in f32 elsewhere."""
    kind = _device_kind()
    return jnp.bfloat16 if ("v6" in kind or "v7" in kind) else jnp.float32


@functools.lru_cache(maxsize=None)
def _vmem_limit_bytes():
    """Half of physical VMEM, clamped to [32 MiB, 96 MiB] (v7x=32, v5e/v6e=64+)."""
    try:
        cap = int(pltpu.get_tpu_info().vmem_capacity_bytes)
    except Exception:
        cap = 64 << 20                      # conservative default (v7x per-TC)
    if cap <= 0:
        cap = 64 << 20
    return max(32 << 20, min(cap // 2, 96 << 20))


# ------------------------------------------------------------------ kernel ---

def _make_sepconv_kernel(*, TH, W, cin, cout, d, pre_relu, fuse_skip,
                         add_residual, cin_skip, dw_dtype):
    """Fused SeparableConv2d tile kernel.

    Per (batch, row-block) grid step:
      [ReLU] -> depthwise 3x3 (VPU, f32 acc) -> BN -> ReLU
             -> pointwise 1x1 (MXU, bf16 in / f32 acc) -> BN -> ReLU
             [+ fused skip 1x1 conv + BN on the block input tile]
             [+ identity-residual add]
    """

    def kernel(*refs):
        (x_top_ref, x_mid_ref, x_bot_ref,
         dw_w_ref, dw_s_ref, dw_b_ref,
         pw_w_ref, pw_s_ref, pw_b_ref) = refs[:9]
        i = 9
        if fuse_skip:
            sk_x_ref, sk_w_ref, sk_s_ref, sk_b_ref = refs[i:i + 4]
            i += 4
        if add_residual:
            res_ref = refs[i]
            i += 1
        o_ref = refs[i]

        h_idx = pl.program_id(1)
        at_top = h_idx == 0
        at_bot = h_idx == pl.num_programs(1) - 1

        # ---- load TH rows + a d-row halo on each side (zero outside image) ---
        xm = x_mid_ref[...].astype(jnp.float32)                     # (TH, W, cin)
        xt = jnp.where(at_top, 0.0, x_top_ref[...].astype(jnp.float32))
        xb = jnp.where(at_bot, 0.0, x_bot_ref[...].astype(jnp.float32))
        x_halo = jnp.concatenate([xt, xm, xb], axis=0)               # (TH+2d, W, cin)
        if pre_relu:                       # only sepconv1; later inputs are >= 0
            x_halo = jnp.maximum(x_halo, 0.0)

        # ---- depthwise 3x3 + BN + ReLU (taps in bf16 on v6e/v7x, f32 acc) ----
        # W shift via XLU roll + border-column mask (no misaligned shifted copies).
        col = lax.broadcasted_iota(jnp.int32, (TH + 2 * d, W, cin), 1)
        x_c = x_halo.astype(dw_dtype)
        x_l = jnp.where(col >= d,
                        pltpu.roll(x_halo, shift=d, axis=1), 0.0).astype(dw_dtype)
        x_r = jnp.where(col < W - d,
                        pltpu.roll(x_halo, shift=W - d, axis=1), 0.0).astype(dw_dtype)

        w9 = dw_w_ref[...].astype(dw_dtype)                          # (9, cin)
        acc = jnp.zeros((TH, W, cin), jnp.float32)
        taps = (x_l, x_c, x_r)             # kw = 0 (w-d), 1 (w), 2 (w+d)
        for kw in range(3):
            xs = taps[kw]
            for kh in range(3):
                wk = w9[kh * 3 + kw].reshape(1, 1, cin)
                acc = acc + xs[kh * d:kh * d + TH] * wk
        y = acc * dw_s_ref[...] + dw_b_ref[...]                      # folded BN
        y = jnp.maximum(y, 0.0)

        # ---- pointwise 1x1 + BN + ReLU (MXU), fused skip / residual ----------
        # reshape(TH*W, cin) is a free view here (W % 8 == 0); see TODO above.
        z = jnp.dot(y.reshape(TH * W, cin).astype(_MM_DTYPE), pw_w_ref[...],
                    preferred_element_type=jnp.float32)              # (TH*W, cout)
        z = z * pw_s_ref[...] + pw_b_ref[...]
        z = jnp.maximum(z, 0.0)

        if fuse_skip:
            # skip = BN(1x1 conv(block input)) computed on the co-loaded x tile.
            s = jnp.dot(sk_x_ref[...].reshape(TH * W, cin_skip).astype(_MM_DTYPE),
                        sk_w_ref[...], preferred_element_type=jnp.float32)
            z = z + s * sk_s_ref[...] + sk_b_ref[...]                # no ReLU on skip
        if add_residual:
            z = z + res_ref[...].reshape(TH * W, cout).astype(jnp.float32)

        o_ref[...] = z.reshape(TH, W, cout).astype(o_ref.dtype)

    return kernel


# ---------------------------------------------------------------- wrappers ---

def _nbytes(a):
    return int(np.prod(a.shape)) * np.dtype(a.dtype).itemsize


def _pick_tile_h(H, W, cin, cout, d, in_itemsize, out_itemsize,
                 extra_c, extra_itemsize, budget_bytes):
    """Largest row tile TH that divides H, is a multiple of the dilation, and whose
    per-step footprint (double-buffered DMA tiles + in-kernel f32 temporaries +
    weights) fits the generation-aware VMEM budget."""
    for th in range(H, 0, -1):
        if H % th or th % d:
            continue
        halo_rows = th + 2 * d
        dma = 2 * (halo_rows * W * cin * in_itemsize        # mid block + both halos
                   + th * W * cout * out_itemsize           # output tile
                   + th * W * extra_c * extra_itemsize)     # skip-x / residual tile
        tmp = 4 * (3 * halo_rows * W * cin                  # x_halo + 2 rolled taps
                   + 2 * th * W * cin                       # acc + y
                   + 2 * th * W * cout)                     # z (+ skip product)
        wgt = 2 * (cin + extra_c) * cout * 2 + 9 * cin * 4 + 8 * (cin + cout) * 4
        if dma + tmp + wgt <= budget_bytes:
            return th
    return d


def _sepconv(x, sp, *, dilation, pre_relu, tile_h=None, residual=None,
             skip_input=None, out_dtype=_ACT_DTYPE):
    """One fused SeparableConv2d (+ optional fused skip 1x1 conv / residual add)."""
    N, H, W, cin = x.shape
    cout = sp["pw"].shape[1]
    d = int(dilation)
    assert H % d == 0 and W > 2 * d, "unsupported spatial / dilation combination"

    fuse_skip = skip_input is not None
    add_residual = residual is not None
    assert not (fuse_skip and add_residual)
    cin_skip = 0
    if fuse_skip:
        sk_x, sk_w, sk_s, sk_b = skip_input
        cin_skip = sk_x.shape[-1]
        extra_c, extra_it = cin_skip, sk_x.dtype.itemsize
    elif add_residual:
        extra_c, extra_it = cout, residual.dtype.itemsize
    else:
        extra_c, extra_it = 0, 0

    vmem_limit = _vmem_limit_bytes()
    if tile_h is not None:
        TH = tile_h
    else:
        TH = _pick_tile_h(H, W, cin, cout, d, x.dtype.itemsize,
                          np.dtype(out_dtype).itemsize, extra_c, extra_it,
                          budget_bytes=(vmem_limit * 3) // 5)
    assert H % TH == 0 and TH % d == 0, (H, TH, d)
    nH = H // TH
    rpb = TH // d                      # d-row halo blocks per TH-row mid block

    def _const(shape):                 # whole-operand block, constant index
        return pl.BlockSpec(shape, lambda n, h, _s=len(shape): (0,) * _s)

    def row_block(c):                  # (1, TH, W, c) activation tile
        return pl.BlockSpec((None, TH, W, c), lambda n, h: (n, h, 0, 0))

    in_specs = [
        # d-row halo above / TH-row block / d-row halo below.  Halo index_maps
        # are clamped at the image border; the kernel zero-masks those rows.
        pl.BlockSpec((None, d, W, cin),
                     lambda n, h: (n, jnp.maximum(h * rpb - 1, 0), 0, 0)),
        row_block(cin),
        pl.BlockSpec((None, d, W, cin),
                     lambda n, h: (n, jnp.minimum(h * rpb + rpb, H // d - 1), 0, 0)),
        _const((9, cin)), _const((1, 1, cin)), _const((1, 1, cin)),
        _const((cin, cout)), _const((1, cout)), _const((1, cout)),
    ]
    args = [x, x, x,
            sp["dw"], sp["dw_scale"], sp["dw_shift"],
            sp["pw"].astype(_MM_DTYPE), sp["pw_scale"], sp["pw_shift"]]

    if fuse_skip:
        in_specs += [row_block(cin_skip), _const((cin_skip, cout)),
                     _const((1, cout)), _const((1, cout))]
        args += [sk_x, sk_w.astype(_MM_DTYPE), sk_s, sk_b]
    if add_residual:
        in_specs.append(row_block(cout))
        args.append(residual)

    kernel = _make_sepconv_kernel(TH=TH, W=W, cin=cin, cout=cout, d=d,
                                  pre_relu=pre_relu, fuse_skip=fuse_skip,
                                  add_residual=add_residual, cin_skip=cin_skip,
                                  dw_dtype=_dw_compute_dtype())

    flops = 2 * N * H * W * (9 * cin + cin * cout
                             + (cin_skip * cout if fuse_skip else 0))
    bytes_accessed = (_nbytes(x)
                      + N * H * W * cout * np.dtype(out_dtype).itemsize
                      + (_nbytes(sk_x) if fuse_skip else 0)
                      + (_nbytes(residual) if add_residual else 0)
                      + _nbytes(sp["dw"]) + cin * cout * 2
                      + (cin_skip * cout * 2 if fuse_skip else 0))

    return pl.pallas_call(
        kernel,
        grid=(N, nH),
        in_specs=in_specs,
        out_specs=row_block(cout),
        out_shape=jax.ShapeDtypeStruct((N, H, W, cout), out_dtype),
        compiler_params=pltpu.CompilerParams(
            # every grid step writes a disjoint output tile -> both axes parallel
            dimension_semantics=("parallel", "parallel"),
            vmem_limit_bytes=int(vmem_limit)),
        cost_estimate=pl.CostEstimate(flops=int(flops), transcendentals=0,
                                      bytes_accessed=int(bytes_accessed)),
    )(*args)


# -------------------------------------------------------------- parameters ---

def _fold_bn(gamma, beta, mean, var, eps=1e-5):
    scale = gamma / jnp.sqrt(var + eps)
    shift = beta - mean * scale
    return scale, shift


def _bn_params(key, c):
    k1, k2, k3, k4 = jax.random.split(key, 4)
    gamma = 1.0 + 0.1 * jax.random.normal(k1, (c,), jnp.float32)
    beta = 0.1 * jax.random.normal(k2, (c,), jnp.float32)
    mean = 0.1 * jax.random.normal(k3, (c,), jnp.float32)
    var = 1.0 + 0.1 * jnp.abs(jax.random.normal(k4, (c,), jnp.float32))
    return _fold_bn(gamma, beta, mean, var)


def init_block_params(key, in_filters, out_filters):
    """grow_first=True -> filters == out_filters.  BatchNorm folded (inference)."""
    filters = out_filters
    keys = jax.random.split(key, 16)
    p = {}
    if out_filters != in_filters:                 # skip = 1x1 conv + BN
        p["skip_w"] = 0.2 * jax.random.normal(keys[0], (in_filters, out_filters),
                                              jnp.float32)
        s, b = _bn_params(keys[1], out_filters)
        p["skip_scale"], p["skip_shift"] = s.reshape(1, -1), b.reshape(1, -1)

    def sep(kw, kb_dw, kpw, kb_pw, cin, cout):
        dw = 0.2 * jax.random.normal(kw, (9, cin), jnp.float32)    # tap (kh*3+kw, C)
        ds, db = _bn_params(kb_dw, cin)
        pw = 0.2 * jax.random.normal(kpw, (cin, cout), jnp.float32)
        ps, pb = _bn_params(kb_pw, cout)
        return dict(dw=dw,
                    dw_scale=ds.reshape(1, 1, -1), dw_shift=db.reshape(1, 1, -1),
                    pw=pw,
                    pw_scale=ps.reshape(1, -1), pw_shift=pb.reshape(1, -1))

    p["sep1"] = sep(keys[2], keys[3], keys[4], keys[5], in_filters, filters)
    p["sep2"] = sep(keys[6], keys[7], keys[8], keys[9], filters, out_filters)
    p["sep3"] = sep(keys[10], keys[11], keys[12], keys[13], out_filters, out_filters)
    return p


# ---------------------------------------------------------------- forward ----

def block_forward(x_nchw, params, atrous=(1, 1, 1), tile_h=None):
    """Forward pass of `Block` (inference, strides=1).  NCHW in / NCHW out."""
    # bf16 at the HBM boundary halves sepconv1's (and the skip re-read's) traffic.
    x = jnp.transpose(x_nchw, (0, 2, 3, 1)).astype(_ACT_DTYPE)     # NCHW -> NHWC

    h = _sepconv(x, params["sep1"], dilation=atrous[0], pre_relu=True, tile_h=tile_h)
    # pre-ReLU of sepconv2/3 is dropped: their inputs are already post-ReLU (>= 0).
    h = _sepconv(h, params["sep2"], dilation=atrous[1], pre_relu=False, tile_h=tile_h)
    if "skip_w" in params:
        # out_filters != in_filters: the 1x1-conv+BN skip is computed inside the
        # sepconv3 kernel from the block input (no extra HBM round trip).
        h = _sepconv(h, params["sep3"], dilation=atrous[2], pre_relu=False,
                     tile_h=tile_h, out_dtype=jnp.float32,
                     skip_input=(x, params["skip_w"], params["skip_scale"],
                                 params["skip_shift"]))
    else:
        # identity skip (in_filters == out_filters, stride 1)
        h = _sepconv(h, params["sep3"], dilation=atrous[2], pre_relu=False,
                     tile_h=tile_h, residual=x, out_dtype=jnp.float32)
    return jnp.transpose(h, (0, 3, 1, 2))                          # NHWC -> NCHW


# ------------------------------------------------------- pure-JAX reference --

def _ref_depthwise(x, w9c, scale, shift, dilation, pre_relu, post_relu):
    C = x.shape[-1]
    if pre_relu:
        x = jnp.maximum(x, 0.0)
    w = w9c.reshape(3, 3, C)[:, :, None, :]        # HWIO, in/groups = 1
    y = lax.conv_general_dilated(
        x, w, window_strides=(1, 1),
        padding=[(dilation, dilation), (dilation, dilation)],
        rhs_dilation=(dilation, dilation),
        dimension_numbers=("NHWC", "HWIO", "NHWC"),
        feature_group_count=C)
    y = y * scale + shift
    return jnp.maximum(y, 0.0) if post_relu else y


def _ref_pointwise(x, w, scale, shift, post_relu):
    N, H, W, C = x.shape
    y = (x.reshape(-1, C) @ w) * scale + shift
    y = jnp.maximum(y, 0.0) if post_relu else y
    return y.reshape(N, H, W, w.shape[1])


def block_forward_ref(x_nchw, params, atrous=(1, 1, 1)):
    x = jnp.transpose(x_nchw, (0, 2, 3, 1)).astype(jnp.float32)
    if "skip_w" in params:
        skip = _ref_pointwise(x, params["skip_w"], params["skip_scale"],
                              params["skip_shift"], False)
    else:
        skip = x
    h = x
    for name, dil in zip(("sep1", "sep2", "sep3"), atrous):
        sp = params[name]
        h = _ref_depthwise(h, sp["dw"], sp["dw_scale"], sp["dw_shift"], dil, True, True)
        h = _ref_pointwise(h, sp["pw"], sp["pw_scale"], sp["pw_shift"], True)
    h = h + skip
    return jnp.transpose(h, (0, 3, 1, 2))


# -------------------------------------------------------------------- main ---

if __name__ == "__main__":
    key = jax.random.PRNGKey(0)
    k_x, k_p, k_x2, k_p2 = jax.random.split(key, 4)

    # -- case 1: conv skip (in_filters != out_filters), fused into sepconv3 ----
    N, C_IN, C_OUT, H, W = 2, 4, 8, 16, 16
    x = jax.random.normal(k_x, (N, C_IN, H, W), jnp.float32)
    params = init_block_params(k_p, C_IN, C_OUT)

    # tile_h=8 -> two row blocks per image: exercises interior + border halo paths.
    fwd = jax.jit(functools.partial(block_forward, tile_h=8))
    out = jax.block_until_ready(fwd(x, params))
    assert out.shape == (N, C_OUT, H, W), out.shape
    ref = jax.block_until_ready(block_forward_ref(x, params))
    # bf16 HBM activations + bf16 MXU/VPU operands vs. the f32 reference.
    np.testing.assert_allclose(np.asarray(out), np.asarray(ref), rtol=5e-2, atol=5e-2)

    # -- case 2: identity skip (in_filters == out_filters), auto tile size -----
    C2 = 8
    x2 = jax.random.normal(k_x2, (N, C2, H, W), jnp.float32)
    params2 = init_block_params(k_p2, C2, C2)
    out2 = jax.block_until_ready(jax.jit(block_forward)(x2, params2))
    ref2 = jax.block_until_ready(block_forward_ref(x2, params2))
    np.testing.assert_allclose(np.asarray(out2), np.asarray(ref2), rtol=5e-2, atol=5e-2)

    print("KERNEL_OK")
</pallas_src>

<mosaic_0001>
module attributes {stable_mosaic.version = 11 : i64} {
  func.func @kernel(%arg0: i32, %arg1: i32, %arg2: memref<1x1x16x8xbf16, #tpu.memory_space<vmem>>, %arg3: memref<1x8x16x8xbf16, #tpu.memory_space<vmem>>, %arg4: memref<1x1x16x8xbf16, #tpu.memory_space<vmem>>, %arg5: memref<9x8xf32, #tpu.memory_space<vmem>>, %arg6: memref<1x1x8xf32, #tpu.memory_space<vmem>>, %arg7: memref<1x1x8xf32, #tpu.memory_space<vmem>>, %arg8: memref<8x8xbf16, #tpu.memory_space<vmem>>, %arg9: memref<1x8xf32, #tpu.memory_space<vmem>>, %arg10: memref<1x8xf32, #tpu.memory_space<vmem>>, %arg11: memref<1x8x16x8xbf16, #tpu.memory_space<vmem>>) attributes {dimension_semantics = [#tpu.dimension_semantics<parallel>, #tpu.dimension_semantics<parallel>], iteration_bounds = array<i64: 2, 2>, scalar_prefetch = 0 : i64, scratch_operands = 0 : i64, tpu.core_type = #tpu.core_type<tc>, window_params = [{transform_indices = @transform_0, window_bounds = array<i64: 1, 1, 16, 8>}, {transform_indices = @transform_1, window_bounds = array<i64: 1, 8, 16, 8>}, {transform_indices = @transform_2, window_bounds = array<i64: 1, 1, 16, 8>}, {pipeline_mode = #tpu.pipeline_mode<synchronous>, transform_indices = @transform_3, window_bounds = array<i64: 9, 8>}, {pipeline_mode = #tpu.pipeline_mode<synchronous>, transform_indices = @transform_4, window_bounds = array<i64: 1, 1, 8>}, {pipeline_mode = #tpu.pipeline_mode<synchronous>, transform_indices = @transform_5, window_bounds = array<i64: 1, 1, 8>}, {pipeline_mode = #tpu.pipeline_mode<synchronous>, transform_indices = @transform_6, window_bounds = array<i64: 8, 8>}, {pipeline_mode = #tpu.pipeline_mode<synchronous>, transform_indices = @transform_7, window_bounds = array<i64: 1, 8>}, {pipeline_mode = #tpu.pipeline_mode<synchronous>, transform_indices = @transform_8, window_bounds = array<i64: 1, 8>}, {transform_indices = @transform_9, window_bounds = array<i64: 1, 8, 16, 8>}]} {
    %c0_i32 = arith.constant 0 : i32
    %0 = arith.cmpi eq, %arg1, %c0_i32 : i32
    %c1_i32 = arith.constant 1 : i32
    %1 = arith.cmpi eq, %arg1, %c1_i32 : i32
    %c0 = arith.constant 0 : index
    %c0_0 = arith.constant 0 : index
    %c0_1 = arith.constant 0 : index
    %c0_2 = arith.constant 0 : index
    %2 = vector.load %arg3[%c0, %c0_0, %c0_1, %c0_2] : memref<1x8x16x8xbf16, #tpu.memory_space<vmem>>, vector<1x8x16x8xbf16>
    %3 = vector.shape_cast %2 : vector<1x8x16x8xbf16> to vector<8x16x8xbf16>
    %4 = arith.extf %3 : vector<8x16x8xbf16> to vector<8x16x8xf32>
    %c0_3 = arith.constant 0 : index
    %c0_4 = arith.constant 0 : index
    %c0_5 = arith.constant 0 : index
    %c0_6 = arith.constant 0 : index
    %5 = vector.load %arg2[%c0_3, %c0_4, %c0_5, %c0_6] : memref<1x1x16x8xbf16, #tpu.memory_space<vmem>>, vector<1x1x16x8xbf16>
    %6 = vector.shape_cast %5 : vector<1x1x16x8xbf16> to vector<1x16x8xbf16>
    %7 = arith.extf %6 : vector<1x16x8xbf16> to vector<1x16x8xf32>
    %cst = arith.constant 0.000000e+00 : f32
    %8 = vector.broadcast %cst : f32 to vector<1x16x8xf32>
    %9 = arith.select %0, %8, %7 : vector<1x16x8xf32>
    %c0_7 = arith.constant 0 : index
    %c0_8 = arith.constant 0 : index
    %c0_9 = arith.constant 0 : index
    %c0_10 = arith.constant 0 : index
    %10 = vector.load %arg4[%c0_7, %c0_8, %c0_9, %c0_10] : memref<1x1x16x8xbf16, #tpu.memory_space<vmem>>, vector<1x1x16x8xbf16>
    %11 = vector.shape_cast %10 : vector<1x1x16x8xbf16> to vector<1x16x8xbf16>
    %12 = arith.extf %11 : vector<1x16x8xbf16> to vector<1x16x8xf32>
    %cst_11 = arith.constant 0.000000e+00 : f32
    %13 = vector.broadcast %cst_11 : f32 to vector<1x16x8xf32>
    %14 = arith.select %1, %13, %12 : vector<1x16x8xf32>
    %15 = tpu.concatenate %9, %4, %14 in 0 : vector<1x16x8xf32>, vector<8x16x8xf32>, vector<1x16x8xf32> -> vector<10x16x8xf32>
    %16 = tpu.iota {dimensions = array<i32: 1>} : vector<10x16x8xi32>
    %c1_i32_12 = arith.constant 1 : i32
    %17 = vector.broadcast %c1_i32_12 : i32 to vector<10x16x8xi32>
    %18 = arith.cmpi sge, %16, %17 : vector<10x16x8xi32>
    %c1_i32_13 = arith.constant 1 : i32
    %19 = tpu.dynamic_rotate %15 by %c1_i32_13 dim 1 : vector<10x16x8xf32>, i32 -> vector<10x16x8xf32>
    %cst_14 = arith.constant 0.000000e+00 : f32
    %20 = vector.broadcast %cst_14 : f32 to vector<10x16x8xf32>
    %21 = arith.select %18, %19, %20 : vector<10x16x8xi1>, vector<10x16x8xf32>
    %c15_i32 = arith.constant 15 : i32
    %22 = vector.broadcast %c15_i32 : i32 to vector<10x16x8xi32>
    %23 = arith.cmpi slt, %16, %22 : vector<10x16x8xi32>
    %c15_i32_15 = arith.constant 15 : i32
    %24 = tpu.dynamic_rotate %15 by %c15_i32_15 dim 1 : vector<10x16x8xf32>, i32 -> vector<10x16x8xf32>
    %cst_16 = arith.constant 0.000000e+00 : f32
    %25 = vector.broadcast %cst_16 : f32 to vector<10x16x8xf32>
    %26 = arith.select %23, %24, %25 : vector<10x16x8xi1>, vector<10x16x8xf32>
    %c0_17 = arith.constant 0 : index
    %c0_18 = arith.constant 0 : index
    %27 = vector.load %arg5[%c0_17, %c0_18] : memref<9x8xf32, #tpu.memory_space<vmem>>, vector<9x8xf32>
    %cst_19 = arith.constant 0.000000e+00 : f32
    %28 = vector.broadcast %cst_19 : f32 to vector<8x16x8xf32>
    %29 = vector.extract_strided_slice %27 {offsets = [0, 0], sizes = [1, 8], strides = [1, 1]} : vector<9x8xf32> to vector<1x8xf32>
    %30 = vector.shape_cast %29 : vector<1x8xf32> to vector<8xf32>
    %31 = vector.shape_cast %30 : vector<8xf32> to vector<1x1x8xf32>
    %32 = vector.extract_strided_slice %21 {offsets = [0, 0, 0], sizes = [8, 16, 8], strides = [1, 1, 1]} : vector<10x16x8xf32> to vector<8x16x8xf32>
    %33 = vector.broadcast %31 : vector<1x1x8xf32> to vector<8x16x8xf32>
    %34 = arith.mulf %32, %33 : vector<8x16x8xf32>
    %35 = arith.addf %28, %34 : vector<8x16x8xf32>
    %36 = vector.extract_strided_slice %27 {offsets = [3, 0], sizes = [1, 8], strides = [1, 1]} : vector<9x8xf32> to vector<1x8xf32>
    %37 = vector.shape_cast %36 : vector<1x8xf32> to vector<8xf32>
    %38 = vector.shape_cast %37 : vector<8xf32> to vector<1x1x8xf32>
    %39 = vector.extract_strided_slice %21 {offsets = [1, 0, 0], sizes = [8, 16, 8], strides = [1, 1, 1]} : vector<10x16x8xf32> to vector<8x16x8xf32>
    %40 = vector.broadcast %38 : vector<1x1x8xf32> to vector<8x16x8xf32>
    %41 = arith.mulf %39, %40 : vector<8x16x8xf32>
    %42 = arith.addf %35, %41 : vector<8x16x8xf32>
    %43 = vector.extract_strided_slice %27 {offsets = [6, 0], sizes = [1, 8], strides = [1, 1]} : vector<9x8xf32> to vector<1x8xf32>
    %44 = vector.shape_cast %43 : vector<1x8xf32> to vector<8xf32>
    %45 = vector.shape_cast %44 : vector<8xf32> to vector<1x1x8xf32>
    %46 = vector.extract_strided_slice %21 {offsets = [2, 0, 0], sizes = [8, 16, 8], strides = [1, 1, 1]} : vector<10x16x8xf32> to vector<8x16x8xf32>
    %47 = vector.broadcast %45 : vector<1x1x8xf32> to vector<8x16x8xf32>
    %48 = arith.mulf %46, %47 : vector<8x16x8xf32>
    %49 = arith.addf %42, %48 : vector<8x16x8xf32>
    %50 = vector.extract_strided_slice %27 {offsets = [1, 0], sizes = [1, 8], strides = [1, 1]} : vector<9x8xf32> to vector<1x8xf32>
    %51 = vector.shape_cast %50 : vector<1x8xf32> to vector<8xf32>
    %52 = vector.shape_cast %51 : vector<8xf32> to vector<1x1x8xf32>
    %53 = vector.extract_strided_slice %15 {offsets = [0, 0, 0], sizes = [8, 16, 8], strides = [1, 1, 1]} : vector<10x16x8xf32> to vector<8x16x8xf32>
    %54 = vector.broadcast %52 : vector<1x1x8xf32> to vector<8x16x8xf32>
    %55 = arith.mulf %53, %54 : vector<8x16x8xf32>
    %56 = arith.addf %49, %55 : vector<8x16x8xf32>
    %57 = vector.extract_strided_slice %27 {offsets = [4, 0], sizes = [1, 8], strides = [1, 1]} : vector<9x8xf32> to vector<1x8xf32>
    %58 = vector.shape_cast %57 : vector<1x8xf32> to vector<8xf32>
    %59 = vector.shape_cast %58 : vector<8xf32> to vector<1x1x8xf32>
    %60 = vector.extract_strided_slice %15 {offsets = [1, 0, 0], sizes = [8, 16, 8], strides = [1, 1, 1]} : vector<10x16x8xf32> to vector<8x16x8xf32>
    %61 = vector.broadcast %59 : vector<1x1x8xf32> to vector<8x16x8xf32>
    %62 = arith.mulf %60, %61 : vector<8x16x8xf32>
    %63 = arith.addf %56, %62 : vector<8x16x8xf32>
    %64 = vector.extract_strided_slice %27 {offsets = [7, 0], sizes = [1, 8], strides = [1, 1]} : vector<9x8xf32> to vector<1x8xf32>
    %65 = vector.shape_cast %64 : vector<1x8xf32> to vector<8xf32>
    %66 = vector.shape_cast %65 : vector<8xf32> to vector<1x1x8xf32>
    %67 = vector.extract_strided_slice %15 {offsets = [2, 0, 0], sizes = [8, 16, 8], strides = [1, 1, 1]} : vector<10x16x8xf32> to vector<8x16x8xf32>
    %68 = vector.broadcast %66 : vector<1x1x8xf32> to vector<8x16x8xf32>
    %69 = arith.mulf %67, %68 : vector<8x16x8xf32>
    %70 = arith.addf %63, %69 : vector<8x16x8xf32>
    %71 = vector.extract_strided_slice %27 {offsets = [2, 0], sizes = [1, 8], strides = [1, 1]} : vector<9x8xf32> to vector<1x8xf32>
    %72 = vector.shape_cast %71 : vector<1x8xf32> to vector<8xf32>
    %73 = vector.shape_cast %72 : vector<8xf32> to vector<1x1x8xf32>
    %74 = vector.extract_strided_slice %26 {offsets = [0, 0, 0], sizes = [8, 16, 8], strides = [1, 1, 1]} : vector<10x16x8xf32> to vector<8x16x8xf32>
    %75 = vector.broadcast %73 : vector<1x1x8xf32> to vector<8x16x8xf32>
    %76 = arith.mulf %74, %75 : vector<8x16x8xf32>
    %77 = arith.addf %70, %76 : vector<8x16x8xf32>
    %78 = vector.extract_strided_slice %27 {offsets = [5, 0], sizes = [1, 8], strides = [1, 1]} : vector<9x8xf32> to vector<1x8xf32>
    %79 = vector.shape_cast %78 : vector<1x8xf32> to vector<8xf32>
    %80 = vector.shape_cast %79 : vector<8xf32> to vector<1x1x8xf32>
    %81 = vector.extract_strided_slice %26 {offsets = [1, 0, 0], sizes = [8, 16, 8], strides = [1, 1, 1]} : vector<10x16x8xf32> to vector<8x16x8xf32>
    %82 = vector.broadcast %80 : vector<1x1x8xf32> to vector<8x16x8xf32>
    %83 = arith.mulf %81, %82 : vector<8x16x8xf32>
    %84 = arith.addf %77, %83 : vector<8x16x8xf32>
    %85 = vector.extract_strided_slice %27 {offsets = [8, 0], sizes = [1, 8], strides = [1, 1]} : vector<9x8xf32> to vector<1x8xf32>
    %86 = vector.shape_cast %85 : vector<1x8xf32> to vector<8xf32>
    %87 = vector.shape_cast %86 : vector<8xf32> to vector<1x1x8xf32>
    %88 = vector.extract_strided_slice %26 {offsets = [2, 0, 0], sizes = [8, 16, 8], strides = [1, 1, 1]} : vector<10x16x8xf32> to vector<8x16x8xf32>
    %89 = vector.broadcast %87 : vector<1x1x8xf32> to vector<8x16x8xf32>
    %90 = arith.mulf %88, %89 : vector<8x16x8xf32>
    %91 = arith.addf %84, %90 : vector<8x16x8xf32>
    %c0_20 = arith.constant 0 : index
    %c0_21 = arith.constant 0 : index
    %c0_22 = arith.constant 0 : index
    %92 = vector.load %arg6[%c0_20, %c0_21, %c0_22] : memref<1x1x8xf32, #tpu.memory_space<vmem>>, vector<1x1x8xf32>
    %93 = vector.broadcast %92 : vector<1x1x8xf32> to vector<8x16x8xf32>
    %94 = arith.mulf %91, %93 : vector<8x16x8xf32>
    %c0_23 = arith.constant 0 : index
    %c0_24 = arith.constant 0 : index
    %c0_25 = arith.constant 0 : index
    %95 = vector.load %arg7[%c0_23, %c0_24, %c0_25] : memref<1x1x8xf32, #tpu.memory_space<vmem>>, vector<1x1x8xf32>
    %96 = vector.broadcast %95 : vector<1x1x8xf32> to vector<8x16x8xf32>
    %97 = arith.addf %94, %96 : vector<8x16x8xf32>
    %cst_26 = arith.constant 0.000000e+00 : f32
    %98 = vector.broadcast %cst_26 : f32 to vector<8x16x8xf32>
    %99 = arith.maximumf %97, %98 : vector<8x16x8xf32>
    %100 = vector.shape_cast %99 : vector<8x16x8xf32> to vector<128x8xf32>
    %101 = arith.truncf %100 : vector<128x8xf32> to vector<128x8xbf16>
    %c0_27 = arith.constant 0 : index
    %c0_28 = arith.constant 0 : index
    %102 = vector.load %arg8[%c0_27, %c0_28] : memref<8x8xbf16, #tpu.memory_space<vmem>>, vector<8x8xbf16>
    %cst_29 = arith.constant dense<0.000000e+00> : vector<128x8xf32>
    %103 = tpu.matmul %101, %102, %cst_29 {dimension_numbers = #tpu.dot_dimension_numbers<[1], [0], [0], [1], [0, 0, 1, 1], [], []>} : vector<128x8xbf16>, vector<8x8xbf16>, vector<128x8xf32> -> vector<128x8xf32>
    %c0_30 = arith.constant 0 : index
    %c0_31 = arith.constant 0 : index
    %104 = vector.load %arg9[%c0_30, %c0_31] : memref<1x8xf32, #tpu.memory_space<vmem>>, vector<1x8xf32>
    %105 = vector.broadcast %104 : vector<1x8xf32> to vector<128x8xf32>
    %106 = arith.mulf %103, %105 : vector<128x8xf32>
    %c0_32 = arith.constant 0 : index
    %c0_33 = arith.constant 0 : index
    %107 = vector.load %arg10[%c0_32, %c0_33] : memref<1x8xf32, #tpu.memory_space<vmem>>, vector<1x8xf32>
    %108 = vector.broadcast %107 : vector<1x8xf32> to vector<128x8xf32>
    %109 = arith.addf %106, %108 : vector<128x8xf32>
    %cst_34 = arith.constant 0.000000e+00 : f32
    %110 = vector.broadcast %cst_34 : f32 to vector<128x8xf32>
    %111 = arith.maximumf %109, %110 : vector<128x8xf32>
    %112 = vector.shape_cast %111 : vector<128x8xf32> to vector<8x16x8xf32>
    %113 = arith.truncf %112 : vector<8x16x8xf32> to vector<8x16x8xbf16>
    %c0_35 = arith.constant 0 : index
    %c0_36 = arith.constant 0 : index
    %c0_37 = arith.constant 0 : index
    %c0_38 = arith.constant 0 : index
    %114 = vector.load %arg11[%c0_35, %c0_36, %c0_37, %c0_38] : memref<1x8x16x8xbf16, #tpu.memory_space<vmem>>, vector<1x8x16x8xbf16>
    %115 = vector.shape_cast %114 : vector<1x8x16x8xbf16> to vector<8x16x8xbf16>
    %116 = vector.shape_cast %113 : vector<8x16x8xbf16> to vector<1x8x16x8xbf16>
    tpu.vector_store %arg11[%c0_35, %c0_36, %c0_37, %c0_38], %116 {strides = array<i32>} : memref<1x8x16x8xbf16, #tpu.memory_space<vmem>>, vector<1x8x16x8xbf16>,
    return
  }
  func.func @transform_0(%arg0: i32, %arg1: i32) -> (i32, i32, i32, i32) {
    %c8_i32 = arith.constant 8 : i32
    %0 = arith.muli %arg1, %c8_i32 : i32
    %c1_i32 = arith.constant 1 : i32
    %1 = arith.subi %0, %c1_i32 : i32
    %c0_i32 = arith.constant 0 : i32
    %2 = arith.maxsi %1, %c0_i32 : i32
    %c0_i32_0 = arith.constant 0 : i32
    %c0_i32_1 = arith.constant 0 : i32
    %c0_i32_2 = arith.constant 0 : i32
    return %arg0, %2, %c0_i32_0, %c0_i32_1 : i32, i32, i32, i32
  }
  func.func @transform_1(%arg0: i32, %arg1: i32) -> (i32, i32, i32, i32) {
    %c0_i32 = arith.constant 0 : i32
    %c0_i32_0 = arith.constant 0 : i32
    %c0_i32_1 = arith.constant 0 : i32
    return %arg0, %arg1, %c0_i32, %c0_i32_0 : i32, i32, i32, i32
  }
  func.func @transform_2(%arg0: i32, %arg1: i32) -> (i32, i32, i32, i32) {
    %c8_i32 = arith.constant 8 : i32
    %0 = arith.muli %arg1, %c8_i32 : i32
    %c8_i32_0 = arith.constant 8 : i32
    %1 = arith.addi %0, %c8_i32_0 : i32
    %c15_i32 = arith.constant 15 : i32
    %2 = arith.minsi %1, %c15_i32 : i32
    %c0_i32 = arith.constant 0 : i32
    %c0_i32_1 = arith.constant 0 : i32
    %c0_i32_2 = arith.constant 0 : i32
    return %arg0, %2, %c0_i32, %c0_i32_1 : i32, i32, i32, i32
  }
  func.func @transform_3(%arg0: i32, %arg1: i32) -> (i32, i32) {
    %c0_i32 = arith.constant 0 : i32
    %c0_i32_0 = arith.constant 0 : i32
    %c0_i32_1 = arith.constant 0 : i32
    return %c0_i32, %c0_i32_0 : i32, i32
  }
  func.func @transform_4(%arg0: i32, %arg1: i32) -> (i32, i32, i32) {
    %c0_i32 = arith.constant 0 : i32
    %c0_i32_0 = arith.constant 0 : i32
    %c0_i32_1 = arith.constant 0 : i32
    %c0_i32_2 = arith.constant 0 : i32
    return %c0_i32, %c0_i32_0, %c0_i32_1 : i32, i32, i32
  }
  func.func @transform_5(%arg0: i32, %arg1: i32) -> (i32, i32, i32) {
    %c0_i32 = arith.constant 0 : i32
    %c0_i32_0 = arith.constant 0 : i32
    %c0_i32_1 = arith.constant 0 : i32
    %c0_i32_2 = arith.constant 0 : i32
    return %c0_i32, %c0_i32_0, %c0_i32_1 : i32, i32, i32
  }
  func.func @transform_6(%arg0: i32, %arg1: i32) -> (i32, i32) {
    %c0_i32 = arith.constant 0 : i32
    %c0_i32_0 = arith.constant 0 : i32
    %c0_i32_1 = arith.constant 0 : i32
    return %c0_i32, %c0_i32_0 : i32, i32
  }
  func.func @transform_7(%arg0: i32, %arg1: i32) -> (i32, i32) {
    %c0_i32 = arith.constant 0 : i32
    %c0_i32_0 = arith.constant 0 : i32
    %c0_i32_1 = arith.constant 0 : i32
    return %c0_i32, %c0_i32_0 : i32, i32
  }
  func.func @transform_8(%arg0: i32, %arg1: i32) -> (i32, i32) {
    %c0_i32 = arith.constant 0 : i32
    %c0_i32_0 = arith.constant 0 : i32
    %c0_i32_1 = arith.constant 0 : i32
    return %c0_i32, %c0_i32_0 : i32, i32
  }
  func.func @transform_9(%arg0: i32, %arg1: i32) -> (i32, i32, i32, i32) {
    %c0_i32 = arith.constant 0 : i32
    %c0_i32_0 = arith.constant 0 : i32
    %c0_i32_1 = arith.constant 0 : i32
    return %arg0, %arg1, %c0_i32, %c0_i32_0 : i32, i32, i32, i32
  }
}

module attributes {stable_mosaic.version = 11 : i64} {
  func.func @kernel(%arg0: i32, %arg1: i32, %arg2: memref<1x1x16x4xbf16, #tpu.memory_space<vmem>>, %arg3: memref<1x8x16x4xbf16, #tpu.memory_space<vmem>>, %arg4: memref<1x1x16x4xbf16, #tpu.memory_space<vmem>>, %arg5: memref<9x4xf32, #tpu.memory_space<vmem>>, %arg6: memref<1x1x4xf32, #tpu.memory_space<vmem>>, %arg7: memref<1x1x4xf32, #tpu.memory_space<vmem>>, %arg8: memref<4x8xbf16, #tpu.memory_space<vmem>>, %arg9: memref<1x8xf32, #tpu.memory_space<vmem>>, %arg10: memref<1x8xf32, #tpu.memory_space<vmem>>, %arg11: memref<1x8x16x8xbf16, #tpu.memory_space<vmem>>) attributes {dimension_semantics = [#tpu.dimension_semantics<parallel>, #tpu.dimension_semantics<parallel>], iteration_bounds = array<i64: 2, 2>, scalar_prefetch = 0 : i64, scratch_operands = 0 : i64, tpu.core_type = #tpu.core_type<tc>, window_params = [{transform_indices = @transform_0, window_bounds = array<i64: 1, 1, 16, 4>}, {transform_indices = @transform_1, window_bounds = array<i64: 1, 8, 16, 4>}, {transform_indices = @transform_2, window_bounds = array<i64: 1, 1, 16, 4>}, {pipeline_mode = #tpu.pipeline_mode<synchronous>, transform_indices = @transform_3, window_bounds = array<i64: 9, 4>}, {pipeline_mode = #tpu.pipeline_mode<synchronous>, transform_indices = @transform_4, window_bounds = array<i64: 1, 1, 4>}, {pipeline_mode = #tpu.pipeline_mode<synchronous>, transform_indices = @transform_5, window_bounds = array<i64: 1, 1, 4>}, {pipeline_mode = #tpu.pipeline_mode<synchronous>, transform_indices = @transform_6, window_bounds = array<i64: 4, 8>}, {pipeline_mode = #tpu.pipeline_mode<synchronous>, transform_indices = @transform_7, window_bounds = array<i64: 1, 8>}, {pipeline_mode = #tpu.pipeline_mode<synchronous>, transform_indices = @transform_8, window_bounds = array<i64: 1, 8>}, {transform_indices = @transform_9, window_bounds = array<i64: 1, 8, 16, 8>}]} {
    %c0_i32 = arith.constant 0 : i32
    %0 = arith.cmpi eq, %arg1, %c0_i32 : i32
    %c1_i32 = arith.constant 1 : i32
    %1 = arith.cmpi eq, %arg1, %c1_i32 : i32
    %c0 = arith.constant 0 : index
    %c0_0 = arith.constant 0 : index
    %c0_1 = arith.constant 0 : index
    %c0_2 = arith.constant 0 : index
    %2 = vector.load %arg3[%c0, %c0_0, %c0_1, %c0_2] : memref<1x8x16x4xbf16, #tpu.memory_space<vmem>>, vector<1x8x16x4xbf16>
    %3 = vector.shape_cast %2 : vector<1x8x16x4xbf16> to vector<8x16x4xbf16>
    %4 = arith.extf %3 : vector<8x16x4xbf16> to vector<8x16x4xf32>
    %c0_3 = arith.constant 0 : index
    %c0_4 = arith.constant 0 : index
    %c0_5 = arith.constant 0 : index
    %c0_6 = arith.constant 0 : index
    %5 = vector.load %arg2[%c0_3, %c0_4, %c0_5, %c0_6] : memref<1x1x16x4xbf16, #tpu.memory_space<vmem>>, vector<1x1x16x4xbf16>
    %6 = vector.shape_cast %5 : vector<1x1x16x4xbf16> to vector<1x16x4xbf16>
    %7 = arith.extf %6 : vector<1x16x4xbf16> to vector<1x16x4xf32>
    %cst = arith.constant 0.000000e+00 : f32
    %8 = vector.broadcast %cst : f32 to vector<1x16x4xf32>
    %9 = arith.select %0, %8, %7 : vector<1x16x4xf32>
    %c0_7 = arith.constant 0 : index
    %c0_8 = arith.constant 0 : index
    %c0_9 = arith.constant 0 : index
    %c0_10 = arith.constant 0 : index
    %10 = vector.load %arg4[%c0_7, %c0_8, %c0_9, %c0_10] : memref<1x1x16x4xbf16, #tpu.memory_space<vmem>>, vector<1x1x16x4xbf16>
    %11 = vector.shape_cast %10 : vector<1x1x16x4xbf16> to vector<1x16x4xbf16>
    %12 = arith.extf %11 : vector<1x16x4xbf16> to vector<1x16x4xf32>
    %cst_11 = arith.constant 0.000000e+00 : f32
    %13 = vector.broadcast %cst_11 : f32 to vector<1x16x4xf32>
    %14 = arith.select %1, %13, %12 : vector<1x16x4xf32>
    %15 = tpu.concatenate %9, %4, %14 in 0 : vector<1x16x4xf32>, vector<8x16x4xf32>, vector<1x16x4xf32> -> vector<10x16x4xf32>
    %cst_12 = arith.constant 0.000000e+00 : f32
    %16 = vector.broadcast %cst_12 : f32 to vector<10x16x4xf32>
    %17 = arith.maximumf %15, %16 : vector<10x16x4xf32>
    %18 = tpu.iota {dimensions = array<i32: 1>} : vector<10x16x4xi32>
    %c1_i32_13 = arith.constant 1 : i32
    %19 = vector.broadcast %c1_i32_13 : i32 to vector<10x16x4xi32>
    %20 = arith.cmpi sge, %18, %19 : vector<10x16x4xi32>
    %c1_i32_14 = arith.constant 1 : i32
    %21 = tpu.dynamic_rotate %17 by %c1_i32_14 dim 1 : vector<10x16x4xf32>, i32 -> vector<10x16x4xf32>
    %cst_15 = arith.constant 0.000000e+00 : f32
    %22 = vector.broadcast %cst_15 : f32 to vector<10x16x4xf32>
    %23 = arith.select %20, %21, %22 : vector<10x16x4xi1>, vector<10x16x4xf32>
    %c15_i32 = arith.constant 15 : i32
    %24 = vector.broadcast %c15_i32 : i32 to vector<10x16x4xi32>
    %25 = arith.cmpi slt, %18, %24 : vector<10x16x4xi32>
    %c15_i32_16 = arith.constant 15 : i32
    %26 = tpu.dynamic_rotate %17 by %c15_i32_16 dim 1 : vector<10x16x4xf32>, i32 -> vector<10x16x4xf32>
    %cst_17 = arith.constant 0.000000e+00 : f32
    %27 = vector.broadcast %cst_17 : f32 to vector<10x16x4xf32>
    %28 = arith.select %25, %26, %27 : vector<10x16x4xi1>, vector<10x16x4xf32>
    %c0_18 = arith.constant 0 : index
    %c0_19 = arith.constant 0 : index
    %29 = vector.load %arg5[%c0_18, %c0_19] : memref<9x4xf32, #tpu.memory_space<vmem>>, vector<9x4xf32>
    %cst_20 = arith.constant 0.000000e+00 : f32
    %30 = vector.broadcast %cst_20 : f32 to vector<8x16x4xf32>
    %31 = vector.extract_strided_slice %29 {offsets = [0, 0], sizes = [1, 4], strides = [1, 1]} : vector<9x4xf32> to vector<1x4xf32>
    %32 = vector.shape_cast %31 : vector<1x4xf32> to vector<4xf32>
    %33 = vector.shape_cast %32 : vector<4xf32> to vector<1x1x4xf32>
    %34 = vector.extract_strided_slice %23 {offsets = [0, 0, 0], sizes = [8, 16, 4], strides = [1, 1, 1]} : vector<10x16x4xf32> to vector<8x16x4xf32>
    %35 = vector.broadcast %33 : vector<1x1x4xf32> to vector<8x16x4xf32>
    %36 = arith.mulf %34, %35 : vector<8x16x4xf32>
    %37 = arith.addf %30, %36 : vector<8x16x4xf32>
    %38 = vector.extract_strided_slice %29 {offsets = [3, 0], sizes = [1, 4], strides = [1, 1]} : vector<9x4xf32> to vector<1x4xf32>
    %39 = vector.shape_cast %38 : vector<1x4xf32> to vector<4xf32>
    %40 = vector.shape_cast %39 : vector<4xf32> to vector<1x1x4xf32>
    %41 = vector.extract_strided_slice %23 {offsets = [1, 0, 0], sizes = [8, 16, 4], strides = [1, 1, 1]} : vector<10x16x4xf32> to vector<8x16x4xf32>
    %42 = vector.broadcast %40 : vector<1x1x4xf32> to vector<8x16x4xf32>
    %43 = arith.mulf %41, %42 : vector<8x16x4xf32>
    %44 = arith.addf %37, %43 : vector<8x16x4xf32>
    %45 = vector.extract_strided_slice %29 {offsets = [6, 0], sizes = [1, 4], strides = [1, 1]} : vector<9x4xf32> to vector<1x4xf32>
    %46 = vector.shape_cast %45 : vector<1x4xf32> to vector<4xf32>
    %47 = vector.shape_cast %46 : vector<4xf32> to vector<1x1x4xf32>
    %48 = vector.extract_strided_slice %23 {offsets = [2, 0, 0], sizes = [8, 16, 4], strides = [1, 1, 1]} : vector<10x16x4xf32> to vector<8x16x4xf32>
    %49 = vector.broadcast %47 : vector<1x1x4xf32> to vector<8x16x4xf32>
    %50 = arith.mulf %48, %49 : vector<8x16x4xf32>
    %51 = arith.addf %44, %50 : vector<8x16x4xf32>
    %52 = vector.extract_strided_slice %29 {offsets = [1, 0], sizes = [1, 4], strides = [1, 1]} : vector<9x4xf32> to vector<1x4xf32>
    %53 = vector.shape_cast %52 : vector<1x4xf32> to vector<4xf32>
    %54 = vector.shape_cast %53 : vector<4xf32> to vector<1x1x4xf32>
    %55 = vector.extract_strided_slice %17 {offsets = [0, 0, 0], sizes = [8, 16, 4], strides = [1, 1, 1]} : vector<10x16x4xf32> to vector<8x16x4xf32>
    %56 = vector.broadcast %54 : vector<1x1x4xf32> to vector<8x16x4xf32>
    %57 = arith.mulf %55, %56 : vector<8x16x4xf32>
    %58 = arith.addf %51, %57 : vector<8x16x4xf32>
    %59 = vector.extract_strided_slice %29 {offsets = [4, 0], sizes = [1, 4], strides = [1, 1]} : vector<9x4xf32> to vector<1x4xf32>
    %60 = vector.shape_cast %59 : vector<1x4xf32> to vector<4xf32>
    %61 = vector.shape_cast %60 : vector<4xf32> to vector<1x1x4xf32>
    %62 = vector.extract_strided_slice %17 {offsets = [1, 0, 0], sizes = [8, 16, 4], strides = [1, 1, 1]} : vector<10x16x4xf32> to vector<8x16x4xf32>
    %63 = vector.broadcast %61 : vector<1x1x4xf32> to vector<8x16x4xf32>
    %64 = arith.mulf %62, %63 : vector<8x16x4xf32>
    %65 = arith.addf %58, %64 : vector<8x16x4xf32>
    %66 = vector.extract_strided_slice %29 {offsets = [7, 0], sizes = [1, 4], strides = [1, 1]} : vector<9x4xf32> to vector<1x4xf32>
    %67 = vector.shape_cast %66 : vector<1x4xf32> to vector<4xf32>
    %68 = vector.shape_cast %67 : vector<4xf32> to vector<1x1x4xf32>
    %69 = vector.extract_strided_slice %17 {offsets = [2, 0, 0], sizes = [8, 16, 4], strides = [1, 1, 1]} : vector<10x16x4xf32> to vector<8x16x4xf32>
    %70 = vector.broadcast %68 : vector<1x1x4xf32> to vector<8x16x4xf32>
    %71 = arith.mulf %69, %70 : vector<8x16x4xf32>
    %72 = arith.addf %65, %71 : vector<8x16x4xf32>
    %73 = vector.extract_strided_slice %29 {offsets = [2, 0], sizes = [1, 4], strides = [1, 1]} : vector<9x4xf32> to vector<1x4xf32>
    %74 = vector.shape_cast %73 : vector<1x4xf32> to vector<4xf32>
    %75 = vector.shape_cast %74 : vector<4xf32> to vector<1x1x4xf32>
    %76 = vector.extract_strided_slice %28 {offsets = [0, 0, 0], sizes = [8, 16, 4], strides = [1, 1, 1]} : vector<10x16x4xf32> to vector<8x16x4xf32>
    %77 = vector.broadcast %75 : vector<1x1x4xf32> to vector<8x16x4xf32>
    %78 = arith.mulf %76, %77 : vector<8x16x4xf32>
    %79 = arith.addf %72, %78 : vector<8x16x4xf32>
    %80 = vector.extract_strided_slice %29 {offsets = [5, 0], sizes = [1, 4], strides = [1, 1]} : vector<9x4xf32> to vector<1x4xf32>
    %81 = vector.shape_cast %80 : vector<1x4xf32> to vector<4xf32>
    %82 = vector.shape_cast %81 : vector<4xf32> to vector<1x1x4xf32>
    %83 = vector.extract_strided_slice %28 {offsets = [1, 0, 0], sizes = [8, 16, 4], strides = [1, 1, 1]} : vector<10x16x4xf32> to vector<8x16x4xf32>
    %84 = vector.broadcast %82 : vector<1x1x4xf32> to vector<8x16x4xf32>
    %85 = arith.mulf %83, %84 : vector<8x16x4xf32>
    %86 = arith.addf %79, %85 : vector<8x16x4xf32>
    %87 = vector.extract_strided_slice %29 {offsets = [8, 0], sizes = [1, 4], strides = [1, 1]} : vector<9x4xf32> to vector<1x4xf32>
    %88 = vector.shape_cast %87 : vector<1x4xf32> to vector<4xf32>
    %89 = vector.shape_cast %88 : vector<4xf32> to vector<1x1x4xf32>
    %90 = vector.extract_strided_slice %28 {offsets = [2, 0, 0], sizes = [8, 16, 4], strides = [1, 1, 1]} : vector<10x16x4xf32> to vector<8x16x4xf32>
    %91 = vector.broadcast %89 : vector<1x1x4xf32> to vector<8x16x4xf32>
    %92 = arith.mulf %90, %91 : vector<8x16x4xf32>
    %93 = arith.addf %86, %92 : vector<8x16x4xf32>
    %c0_21 = arith.constant 0 : index
    %c0_22 = arith.constant 0 : index
    %c0_23 = arith.constant 0 : index
    %94 = vector.load %arg6[%c0_21, %c0_22, %c0_23] : memref<1x1x4xf32, #tpu.memory_space<vmem>>, vector<1x1x4xf32>
    %95 = vector.broadcast %94 : vector<1x1x4xf32> to vector<8x16x4xf32>
    %96 = arith.mulf %93, %95 : vector<8x16x4xf32>
    %c0_24 = arith.constant 0 : index
    %c0_25 = arith.constant 0 : index
    %c0_26 = arith.constant 0 : index
    %97 = vector.load %arg7[%c0_24, %c0_25, %c0_26] : memref<1x1x4xf32, #tpu.memory_space<vmem>>, vector<1x1x4xf32>
    %98 = vector.broadcast %97 : vector<1x1x4xf32> to vector<8x16x4xf32>
    %99 = arith.addf %96, %98 : vector<8x16x4xf32>
    %cst_27 = arith.constant 0.000000e+00 : f32
    %100 = vector.broadcast %cst_27 : f32 to vector<8x16x4xf32>
    %101 = arith.maximumf %99, %100 : vector<8x16x4xf32>
    %102 = vector.shape_cast %101 : vector<8x16x4xf32> to vector<128x4xf32>
    %103 = arith.truncf %102 : vector<128x4xf32> to vector<128x4xbf16>
    %c0_28 = arith.constant 0 : index
    %c0_29 = arith.constant 0 : index
    %104 = vector.load %arg8[%c0_28, %c0_29] : memref<4x8xbf16, #tpu.memory_space<vmem>>, vector<4x8xbf16>
    %cst_30 = arith.constant dense<0.000000e+00> : vector<128x8xf32>
    %105 = tpu.matmul %103, %104, %cst_30 {dimension_numbers = #tpu.dot_dimension_numbers<[1], [0], [0], [1], [0, 0, 1, 1], [], []>} : vector<128x4xbf16>, vector<4x8xbf16>, vector<128x8xf32> -> vector<128x8xf32>
    %c0_31 = arith.constant 0 : index
    %c0_32 = arith.constant 0 : index
    %106 = vector.load %arg9[%c0_31, %c0_32] : memref<1x8xf32, #tpu.memory_space<vmem>>, vector<1x8xf32>
    %107 = vector.broadcast %106 : vector<1x8xf32> to vector<128x8xf32>
    %108 = arith.mulf %105, %107 : vector<128x8xf32>
    %c0_33 = arith.constant 0 : index
    %c0_34 = arith.constant 0 : index
    %109 = vector.load %arg10[%c0_33, %c0_34] : memref<1x8xf32, #tpu.memory_space<vmem>>, vector<1x8xf32>
    %110 = vector.broadcast %109 : vector<1x8xf32> to vector<128x8xf32>
    %111 = arith.addf %108, %110 : vector<128x8xf32>
    %cst_35 = arith.constant 0.000000e+00 : f32
    %112 = vector.broadcast %cst_35 : f32 to vector<128x8xf32>
    %113 = arith.maximumf %111, %112 : vector<128x8xf32>
    %114 = vector.shape_cast %113 : vector<128x8xf32> to vector<8x16x8xf32>
    %115 = arith.truncf %114 : vector<8x16x8xf32> to vector<8x16x8xbf16>
    %c0_36 = arith.constant 0 : index
    %c0_37 = arith.constant 0 : index
    %c0_38 = arith.constant 0 : index
    %c0_39 = arith.constant 0 : index
    %116 = vector.load %arg11[%c0_36, %c0_37, %c0_38, %c0_39] : memref<1x8x16x8xbf16, #tpu.memory_space<vmem>>, vector<1x8x16x8xbf16>
    %117 = vector.shape_cast %116 : vector<1x8x16x8xbf16> to vector<8x16x8xbf16>
    %118 = vector.shape_cast %115 : vector<8x16x8xbf16> to vector<1x8x16x8xbf16>
    tpu.vector_store %arg11[%c0_36, %c0_37, %c0_38, %c0_39], %118 {strides = array<i32>} : memref<1x8x16x8xbf16, #tpu.memory_space<vmem>>, vector<1x8x16x8xbf16>,
    return
  }
  func.func @transform_0(%arg0: i32, %arg1: i32) -> (i32, i32, i32, i32) {
    %c8_i32 = arith.constant 8 : i32
    %0 = arith.muli %arg1, %c8_i32 : i32
    %c1_i32 = arith.constant 1 : i32
    %1 = arith.subi %0, %c1_i32 : i32
    %c0_i32 = arith.constant 0 : i32
    %2 = arith.maxsi %1, %c0_i32 : i32
    %c0_i32_0 = arith.constant 0 : i32
    %c0_i32_1 = arith.constant 0 : i32
    %c0_i32_2 = arith.constant 0 : i32
    return %arg0, %2, %c0_i32_0, %c0_i32_1 : i32, i32, i32, i32
  }
  func.func @transform_1(%arg0: i32, %arg1: i32) -> (i32, i32, i32, i32) {
    %c0_i32 = arith.constant 0 : i32
    %c0_i32_0 = arith.constant 0 : i32
    %c0_i32_1 = arith.constant 0 : i32
    return %arg0, %arg1, %c0_i32, %c0_i32_0 : i32, i32, i32, i32
  }
  func.func @transform_2(%arg0: i32, %arg1: i32) -> (i32, i32, i32, i32) {
    %c8_i32 = arith.constant 8 : i32
    %0 = arith.muli %arg1, %c8_i32 : i32
    %c8_i32_0 = arith.constant 8 : i32
    %1 = arith.addi %0, %c8_i32_0 : i32
    %c15_i32 = arith.constant 15 : i32
    %2 = arith.minsi %1, %c15_i32 : i32
    %c0_i32 = arith.constant 0 : i32
    %c0_i32_1 = arith.constant 0 : i32
    %c0_i32_2 = arith.constant 0 : i32
    return %arg0, %2, %c0_i32, %c0_i32_1 : i32, i32, i32, i32
  }
  func.func @transform_3(%arg0: i32, %arg1: i32) -> (i32, i32) {
    %c0_i32 = arith.constant 0 : i32
    %c0_i32_0 = arith.constant 0 : i32
    %c0_i32_1 = arith.constant 0 : i32
    return %c0_i32, %c0_i32_0 : i32, i32
  }
  func.func @transform_4(%arg0: i32, %arg1: i32) -> (i32, i32, i32) {
    %c0_i32 = arith.constant 0 : i32
    %c0_i32_0 = arith.constant 0 : i32
    %c0_i32_1 = arith.constant 0 : i32
    %c0_i32_2 = arith.constant 0 : i32
    return %c0_i32, %c0_i32_0, %c0_i32_1 : i32, i32, i32
  }
  func.func @transform_5(%arg0: i32, %arg1: i32) -> (i32, i32, i32) {
    %c0_i32 = arith.constant 0 : i32
    %c0_i32_0 = arith.constant 0 : i32
    %c0_i32_1 = arith.constant 0 : i32
    %c0_i32_2 = arith.constant 0 : i32
    return %c0_i32, %c0_i32_0, %c0_i32_1 : i32, i32, i32
  }
  func.func @transform_6(%arg0: i32, %arg1: i32) -> (i32, i32) {
    %c0_i32 = arith.constant 0 : i32
    %c0_i32_0 = arith.constant 0 : i32
    %c0_i32_1 = arith.constant 0 : i32
    return %c0_i32, %c0_i32_0 : i32, i32
  }
  func.func @transform_7(%arg0: i32, %arg1: i32) -> (i32, i32) {
    %c0_i32 = arith.constant 0 : i32
    %c0_i32_0 = arith.constant 0 : i32
    %c0_i32_1 = arith.constant 0 : i32
    return %c0_i32, %c0_i32_0 : i32, i32
  }
  func.func @transform_8(%arg0: i32, %arg1: i32) -> (i32, i32) {
    %c0_i32 = arith.constant 0 : i32
    %c0_i32_0 = arith.constant 0 : i32
    %c0_i32_1 = arith.constant 0 : i32
    return %c0_i32, %c0_i32_0 : i32, i32
  }
  func.func @transform_9(%arg0: i32, %arg1: i32) -> (i32, i32, i32, i32) {
    %c0_i32 = arith.constant 0 : i32
    %c0_i32_0 = arith.constant 0 : i32
    %c0_i32_1 = arith.constant 0 : i32
    return %arg0, %arg1, %c0_i32, %c0_i32_0 : i32, i32, i32, i32
  }
}

module attributes {stable_mosaic.version = 11 : i64} {
  func.func @kernel(%arg0: i32, %arg1: i32, %arg2: memref<1x1x16x8xbf16, #tpu.memory_space<vmem>>, %arg3: memref<1x8x16x8xbf16, #tpu.memory_space<vmem>>, %arg4: memref<1x1x16x8xbf16, #tpu.memory_space<vmem>>, %arg5: memref<9x8xf32, #tpu.memory_space<vmem>>, %arg6: memref<1x1x8xf32, #tpu.memory_space<vmem>>, %arg7: memref<1x1x8xf32, #tpu.memory_space<vmem>>, %arg8: memref<8x8xbf16, #tpu.memory_space<vmem>>, %arg9: memref<1x8xf32, #tpu.memory_space<vmem>>, %arg10: memref<1x8xf32, #tpu.memory_space<vmem>>, %arg11: memref<1x8x16x4xbf16, #tpu.memory_space<vmem>>, %arg12: memref<4x8xbf16, #tpu.memory_space<vmem>>, %arg13: memref<1x8xf32, #tpu.memory_space<vmem>>, %arg14: memref<1x8xf32, #tpu.memory_space<vmem>>, %arg15: memref<1x8x16x8xf32, #tpu.memory_space<vmem>>) attributes {dimension_semantics = [#tpu.dimension_semantics<parallel>, #tpu.dimension_semantics<parallel>], iteration_bounds = array<i64: 2, 2>, scalar_prefetch = 0 : i64, scratch_operands = 0 : i64, tpu.core_type = #tpu.core_type<tc>, window_params = [{transform_indices = @transform_0, window_bounds = array<i64: 1, 1, 16, 8>}, {transform_indices = @transform_1, window_bounds = array<i64: 1, 8, 16, 8>}, {transform_indices = @transform_2, window_bounds = array<i64: 1, 1, 16, 8>}, {pipeline_mode = #tpu.pipeline_mode<synchronous>, transform_indices = @transform_3, window_bounds = array<i64: 9, 8>}, {pipeline_mode = #tpu.pipeline_mode<synchronous>, transform_indices = @transform_4, window_bounds = array<i64: 1, 1, 8>}, {pipeline_mode = #tpu.pipeline_mode<synchronous>, transform_indices = @transform_5, window_bounds = array<i64: 1, 1, 8>}, {pipeline_mode = #tpu.pipeline_mode<synchronous>, transform_indices = @transform_6, window_bounds = array<i64: 8, 8>}, {pipeline_mode = #tpu.pipeline_mode<synchronous>, transform_indices = @transform_7, window_bounds = array<i64: 1, 8>}, {pipeline_mode = #tpu.pipeline_mode<synchronous>, transform_indices = @transform_8, window_bounds = array<i64: 1, 8>}, {transform_indices = @transform_9, window_bounds = array<i64: 1, 8, 16, 4>}, {pipeline_mode = #tpu.pipeline_mode<synchronous>, transform_indices = @transform_10, window_bounds = array<i64: 4, 8>}, {pipeline_mode = #tpu.pipeline_mode<synchronous>, transform_indices = @transform_11, window_bounds = array<i64: 1, 8>}, {pipeline_mode = #tpu.pipeline_mode<synchronous>, transform_indices = @transform_12, window_bounds = array<i64: 1, 8>}, {transform_indices = @transform_13, window_bounds = array<i64: 1, 8, 16, 8>}]} {
    %c0_i32 = arith.constant 0 : i32
    %0 = arith.cmpi eq, %arg1, %c0_i32 : i32
    %c1_i32 = arith.constant 1 : i32
    %1 = arith.cmpi eq, %arg1, %c1_i32 : i32
    %c0 = arith.constant 0 : index
    %c0_0 = arith.constant 0 : index
    %c0_1 = arith.constant 0 : index
    %c0_2 = arith.constant 0 : index
    %2 = vector.load %arg3[%c0, %c0_0, %c0_1, %c0_2] : memref<1x8x16x8xbf16, #tpu.memory_space<vmem>>, vector<1x8x16x8xbf16>
    %3 = vector.shape_cast %2 : vector<1x8x16x8xbf16> to vector<8x16x8xbf16>
    %4 = arith.extf %3 : vector<8x16x8xbf16> to vector<8x16x8xf32>
    %c0_3 = arith.constant 0 : index
    %c0_4 = arith.constant 0 : index
    %c0_5 = arith.constant 0 : index
    %c0_6 = arith.constant 0 : index
    %5 = vector.load %arg2[%c0_3, %c0_4, %c0_5, %c0_6] : memref<1x1x16x8xbf16, #tpu.memory_space<vmem>>, vector<1x1x16x8xbf16>
    %6 = vector.shape_cast %5 : vector<1x1x16x8xbf16> to vector<1x16x8xbf16>
    %7 = arith.extf %6 : vector<1x16x8xbf16> to vector<1x16x8xf32>
    %cst = arith.constant 0.000000e+00 : f32
    %8 = vector.broadcast %cst : f32 to vector<1x16x8xf32>
    %9 = arith.select %0, %8, %7 : vector<1x16x8xf32>
    %c0_7 = arith.constant 0 : index
    %c0_8 = arith.constant 0 : index
    %c0_9 = arith.constant 0 : index
    %c0_10 = arith.constant 0 : index
    %10 = vector.load %arg4[%c0_7, %c0_8, %c0_9, %c0_10] : memref<1x1x16x8xbf16, #tpu.memory_space<vmem>>, vector<1x1x16x8xbf16>
    %11 = vector.shape_cast %10 : vector<1x1x16x8xbf16> to vector<1x16x8xbf16>
    %12 = arith.extf %11 : vector<1x16x8xbf16> to vector<1x16x8xf32>
    %cst_11 = arith.constant 0.000000e+00 : f32
    %13 = vector.broadcast %cst_11 : f32 to vector<1x16x8xf32>
    %14 = arith.select %1, %13, %12 : vector<1x16x8xf32>
    %15 = tpu.concatenate %9, %4, %14 in 0 : vector<1x16x8xf32>, vector<8x16x8xf32>, vector<1x16x8xf32> -> vector<10x16x8xf32>
    %16 = tpu.iota {dimensions = array<i32: 1>} : vector<10x16x8xi32>
    %c1_i32_12 = arith.constant 1 : i32
    %17 = vector.broadcast %c1_i32_12 : i32 to vector<10x16x8xi32>
    %18 = arith.cmpi sge, %16, %17 : vector<10x16x8xi32>
    %c1_i32_13 = arith.constant 1 : i32
    %19 = tpu.dynamic_rotate %15 by %c1_i32_13 dim 1 : vector<10x16x8xf32>, i32 -> vector<10x16x8xf32>
    %cst_14 = arith.constant 0.000000e+00 : f32
    %20 = vector.broadcast %cst_14 : f32 to vector<10x16x8xf32>
    %21 = arith.select %18, %19, %20 : vector<10x16x8xi1>, vector<10x16x8xf32>
    %c15_i32 = arith.constant 15 : i32
    %22 = vector.broadcast %c15_i32 : i32 to vector<10x16x8xi32>
    %23 = arith.cmpi slt, %16, %22 : vector<10x16x8xi32>
    %c15_i32_15 = arith.constant 15 : i32
    %24 = tpu.dynamic_rotate %15 by %c15_i32_15 dim 1 : vector<10x16x8xf32>, i32 -> vector<10x16x8xf32>
    %cst_16 = arith.constant 0.000000e+00 : f32
    %25 = vector.broadcast %cst_16 : f32 to vector<10x16x8xf32>
    %26 = arith.select %23, %24, %25 : vector<10x16x8xi1>, vector<10x16x8xf32>
    %c0_17 = arith.constant 0 : index
    %c0_18 = arith.constant 0 : index
    %27 = vector.load %arg5[%c0_17, %c0_18] : memref<9x8xf32, #tpu.memory_space<vmem>>, vector<9x8xf32>
    %cst_19 = arith.constant 0.000000e+00 : f32
    %28 = vector.broadcast %cst_19 : f32 to vector<8x16x8xf32>
    %29 = vector.extract_strided_slice %27 {offsets = [0, 0], sizes = [1, 8], strides = [1, 1]} : vector<9x8xf32> to vector<1x8xf32>
    %30 = vector.shape_cast %29 : vector<1x8xf32> to vector<8xf32>
    %31 = vector.shape_cast %30 : vector<8xf32> to vector<1x1x8xf32>
    %32 = vector.extract_strided_slice %21 {offsets = [0, 0, 0], sizes = [8, 16, 8], strides = [1, 1, 1]} : vector<10x16x8xf32> to vector<8x16x8xf32>
    %33 = vector.broadcast %31 : vector<1x1x8xf32> to vector<8x16x8xf32>
    %34 = arith.mulf %32, %33 : vector<8x16x8xf32>
    %35 = arith.addf %28, %34 : vector<8x16x8xf32>
    %36 = vector.extract_strided_slice %27 {offsets = [3, 0], sizes = [1, 8], strides = [1, 1]} : vector<9x8xf32> to vector<1x8xf32>
    %37 = vector.shape_cast %36 : vector<1x8xf32> to vector<8xf32>
    %38 = vector.shape_cast %37 : vector<8xf32> to vector<1x1x8xf32>
    %39 = vector.extract_strided_slice %21 {offsets = [1, 0, 0], sizes = [8, 16, 8], strides = [1, 1, 1]} : vector<10x16x8xf32> to vector<8x16x8xf32>
    %40 = vector.broadcast %38 : vector<1x1x8xf32> to vector<8x16x8xf32>
    %41 = arith.mulf %39, %40 : vector<8x16x8xf32>
    %42 = arith.addf %35, %41 : vector<8x16x8xf32>
    %43 = vector.extract_strided_slice %27 {offsets = [6, 0], sizes = [1, 8], strides = [1, 1]} : vector<9x8xf32> to vector<1x8xf32>
    %44 = vector.shape_cast %43 : vector<1x8xf32> to vector<8xf32>
    %45 = vector.shape_cast %44 : vector<8xf32> to vector<1x1x8xf32>
    %46 = vector.extract_strided_slice %21 {offsets = [2, 0, 0], sizes = [8, 16, 8], strides = [1, 1, 1]} : vector<10x16x8xf32> to vector<8x16x8xf32>
    %47 = vector.broadcast %45 : vector<1x1x8xf32> to vector<8x16x8xf32>
    %48 = arith.mulf %46, %47 : vector<8x16x8xf32>
    %49 = arith.addf %42, %48 : vector<8x16x8xf32>
    %50 = vector.extract_strided_slice %27 {offsets = [1, 0], sizes = [1, 8], strides = [1, 1]} : vector<9x8xf32> to vector<1x8xf32>
    %51 = vector.shape_cast %50 : vector<1x8xf32> to vector<8xf32>
    %52 = vector.shape_cast %51 : vector<8xf32> to vector<1x1x8xf32>
    %53 = vector.extract_strided_slice %15 {offsets = [0, 0, 0], sizes = [8, 16, 8], strides = [1, 1, 1]} : vector<10x16x8xf32> to vector<8x16x8xf32>
    %54 = vector.broadcast %52 : vector<1x1x8xf32> to vector<8x16x8xf32>
    %55 = arith.mulf %53, %54 : vector<8x16x8xf32>
    %56 = arith.addf %49, %55 : vector<8x16x8xf32>
    %57 = vector.extract_strided_slice %27 {offsets = [4, 0], sizes = [1, 8], strides = [1, 1]} : vector<9x8xf32> to vector<1x8xf32>
    %58 = vector.shape_cast %57 : vector<1x8xf32> to vector<8xf32>
    %59 = vector.shape_cast %58 : vector<8xf32> to vector<1x1x8xf32>
    %60 = vector.extract_strided_slice %15 {offsets = [1, 0, 0], sizes = [8, 16, 8], strides = [1, 1, 1]} : vector<10x16x8xf32> to vector<8x16x8xf32>
    %61 = vector.broadcast %59 : vector<1x1x8xf32> to vector<8x16x8xf32>
    %62 = arith.mulf %60, %61 : vector<8x16x8xf32>
    %63 = arith.addf %56, %62 : vector<8x16x8xf32>
    %64 = vector.extract_strided_slice %27 {offsets = [7, 0], sizes = [1, 8], strides = [1, 1]} : vector<9x8xf32> to vector<1x8xf32>
    %65 = vector.shape_cast %64 : vector<1x8xf32> to vector<8xf32>
    %66 = vector.shape_cast %65 : vector<8xf32> to vector<1x1x8xf32>
    %67 = vector.extract_strided_slice %15 {offsets = [2, 0, 0], sizes = [8, 16, 8], strides = [1, 1, 1]} : vector<10x16x8xf32> to vector<8x16x8xf32>
    %68 = vector.broadcast %66 : vector<1x1x8xf32> to vector<8x16x8xf32>
    %69 = arith.mulf %67, %68 : vector<8x16x8xf32>
    %70 = arith.addf %63, %69 : vector<8x16x8xf32>
    %71 = vector.extract_strided_slice %27 {offsets = [2, 0], sizes = [1, 8], strides = [1, 1]} : vector<9x8xf32> to vector<1x8xf32>
    %72 = vector.shape_cast %71 : vector<1x8xf32> to vector<8xf32>
    %73 = vector.shape_cast %72 : vector<8xf32> to vector<1x1x8xf32>
    %74 = vector.extract_strided_slice %26 {offsets = [0, 0, 0], sizes = [8, 16, 8], strides = [1, 1, 1]} : vector<10x16x8xf32> to vector<8x16x8xf32>
    %75 = vector.broadcast %73 : vector<1x1x8xf32> to vector<8x16x8xf32>
    %76 = arith.mulf %74, %75 : vector<8x16x8xf32>
    %77 = arith.addf %70, %76 : vector<8x16x8xf32>
    %78 = vector.extract_strided_slice %27 {offsets = [5, 0], sizes = [1, 8], strides = [1, 1]} : vector<9x8xf32> to vector<1x8xf32>
    %79 = vector.shape_cast %78 : vector<1x8xf32> to vector<8xf32>
    %80 = vector.shape_cast %79 : vector<8xf32> to vector<1x1x8xf32>
    %81 = vector.extract_strided_slice %26 {offsets = [1, 0, 0], sizes = [8, 16, 8], strides = [1, 1, 1]} : vector<10x16x8xf32> to vector<8x16x8xf32>
    %82 = vector.broadcast %80 : vector<1x1x8xf32> to vector<8x16x8xf32>
    %83 = arith.mulf %81, %82 : vector<8x16x8xf32>
    %84 = arith.addf %77, %83 : vector<8x16x8xf32>
    %85 = vector.extract_strided_slice %27 {offsets = [8, 0], sizes = [1, 8], strides = [1, 1]} : vector<9x8xf32> to vector<1x8xf32>
    %86 = vector.shape_cast %85 : vector<1x8xf32> to vector<8xf32>
    %87 = vector.shape_cast %86 : vector<8xf32> to vector<1x1x8xf32>
    %88 = vector.extract_strided_slice %26 {offsets = [2, 0, 0], sizes = [8, 16, 8], strides = [1, 1, 1]} : vector<10x16x8xf32> to vector<8x16x8xf32>
    %89 = vector.broadcast %87 : vector<1x1x8xf32> to vector<8x16x8xf32>
    %90 = arith.mulf %88, %89 : vector<8x16x8xf32>
    %91 = arith.addf %84, %90 : vector<8x16x8xf32>
    %c0_20 = arith.constant 0 : index
    %c0_21 = arith.constant 0 : index
    %c0_22 = arith.constant 0 : index
    %92 = vector.load %arg6[%c0_20, %c0_21, %c0_22] : memref<1x1x8xf32, #tpu.memory_space<vmem>>, vector<1x1x8xf32>
    %93 = vector.broadcast %92 : vector<1x1x8xf32> to vector<8x16x8xf32>
    %94 = arith.mulf %91, %93 : vector<8x16x8xf32>
    %c0_23 = arith.constant 0 : index
    %c0_24 = arith.constant 0 : index
    %c0_25 = arith.constant 0 : index
    %95 = vector.load %arg7[%c0_23, %c0_24, %c0_25] : memref<1x1x8xf32, #tpu.memory_space<vmem>>, vector<1x1x8xf32>
    %96 = vector.broadcast %95 : vector<1x1x8xf32> to vector<8x16x8xf32>
    %97 = arith.addf %94, %96 : vector<8x16x8xf32>
    %cst_26 = arith.constant 0.000000e+00 : f32
    %98 = vector.broadcast %cst_26 : f32 to vector<8x16x8xf32>
    %99 = arith.maximumf %97, %98 : vector<8x16x8xf32>
    %100 = vector.shape_cast %99 : vector<8x16x8xf32> to vector<128x8xf32>
    %101 = arith.truncf %100 : vector<128x8xf32> to vector<128x8xbf16>
    %c0_27 = arith.constant 0 : index
    %c0_28 = arith.constant 0 : index
    %102 = vector.load %arg8[%c0_27, %c0_28] : memref<8x8xbf16, #tpu.memory_space<vmem>>, vector<8x8xbf16>
    %cst_29 = arith.constant dense<0.000000e+00> : vector<128x8xf32>
    %103 = tpu.matmul %101, %102, %cst_29 {dimension_numbers = #tpu.dot_dimension_numbers<[1], [0], [0], [1], [0, 0, 1, 1], [], []>} : vector<128x8xbf16>, vector<8x8xbf16>, vector<128x8xf32> -> vector<128x8xf32>
    %c0_30 = arith.constant 0 : index
    %c0_31 = arith.constant 0 : index
    %104 = vector.load %arg9[%c0_30, %c0_31] : memref<1x8xf32, #tpu.memory_space<vmem>>, vector<1x8xf32>
    %105 = vector.broadcast %104 : vector<1x8xf32> to vector<128x8xf32>
    %106 = arith.mulf %103, %105 : vector<128x8xf32>
    %c0_32 = arith.constant 0 : index
    %c0_33 = arith.constant 0 : index
    %107 = vector.load %arg10[%c0_32, %c0_33] : memref<1x8xf32, #tpu.memory_space<vmem>>, vector<1x8xf32>
    %108 = vector.broadcast %107 : vector<1x8xf32> to vector<128x8xf32>
    %109 = arith.addf %106, %108 : vector<128x8xf32>
    %cst_34 = arith.constant 0.000000e+00 : f32
    %110 = vector.broadcast %cst_34 : f32 to vector<128x8xf32>
    %111 = arith.maximumf %109, %110 : vector<128x8xf32>
    %c0_35 = arith.constant 0 : index
    %c0_36 = arith.constant 0 : index
    %c0_37 = arith.constant 0 : index
    %c0_38 = arith.constant 0 : index
    %112 = vector.load %arg11[%c0_35, %c0_36, %c0_37, %c0_38] : memref<1x8x16x4xbf16, #tpu.memory_space<vmem>>, vector<1x8x16x4xbf16>
    %113 = vector.shape_cast %112 : vector<1x8x16x4xbf16> to vector<8x16x4xbf16>
    %114 = vector.shape_cast %113 : vector<8x16x4xbf16> to vector<128x4xbf16>
    %c0_39 = arith.constant 0 : index
    %c0_40 = arith.constant 0 : index
    %115 = vector.load %arg12[%c0_39, %c0_40] : memref<4x8xbf16, #tpu.memory_space<vmem>>, vector<4x8xbf16>
    %cst_41 = arith.constant dense<0.000000e+00> : vector<128x8xf32>
    %116 = tpu.matmul %114, %115, %cst_41 {dimension_numbers = #tpu.dot_dimension_numbers<[1], [0], [0], [1], [0, 0, 1, 1], [], []>} : vector<128x4xbf16>, vector<4x8xbf16>, vector<128x8xf32> -> vector<128x8xf32>
    %c0_42 = arith.constant 0 : index
    %c0_43 = arith.constant 0 : index
    %117 = vector.load %arg13[%c0_42, %c0_43] : memref<1x8xf32, #tpu.memory_space<vmem>>, vector<1x8xf32>
    %118 = vector.broadcast %117 : vector<1x8xf32> to vector<128x8xf32>
    %119 = arith.mulf %116, %118 : vector<128x8xf32>
    %120 = arith.addf %111, %119 : vector<128x8xf32>
    %c0_44 = arith.constant 0 : index
    %c0_45 = arith.constant 0 : index
    %121 = vector.load %arg14[%c0_44, %c0_45] : memref<1x8xf32, #tpu.memory_space<vmem>>, vector<1x8xf32>
    %122 = vector.broadcast %121 : vector<1x8xf32> to vector<128x8xf32>
    %123 = arith.addf %120, %122 : vector<128x8xf32>
    %124 = vector.shape_cast %123 : vector<128x8xf32> to vector<8x16x8xf32>
    %c0_46 = arith.constant 0 : index
    %c0_47 = arith.constant 0 : index
    %c0_48 = arith.constant 0 : index
    %c0_49 = arith.constant 0 : index
    %125 = vector.load %arg15[%c0_46, %c0_47, %c0_48, %c0_49] : memref<1x8x16x8xf32, #tpu.memory_space<vmem>>, vector<1x8x16x8xf32>
    %126 = vector.shape_cast %125 : vector<1x8x16x8xf32> to vector<8x16x8xf32>
    %127 = vector.shape_cast %124 : vector<8x16x8xf32> to vector<1x8x16x8xf32>
    tpu.vector_store %arg15[%c0_46, %c0_47, %c0_48, %c0_49], %127 {strides = array<i32>} : memref<1x8x16x8xf32, #tpu.memory_space<vmem>>, vector<1x8x16x8xf32>,
    return
  }
  func.func @transform_0(%arg0: i32, %arg1: i32) -> (i32, i32, i32, i32) {
    %c8_i32 = arith.constant 8 : i32
    %0 = arith.muli %arg1, %c8_i32 : i32
    %c1_i32 = arith.constant 1 : i32
    %1 = arith.subi %0, %c1_i32 : i32
    %c0_i32 = arith.constant 0 : i32
    %2 = arith.maxsi %1, %c0_i32 : i32
    %c0_i32_0 = arith.constant 0 : i32
    %c0_i32_1 = arith.constant 0 : i32
    %c0_i32_2 = arith.constant 0 : i32
    return %arg0, %2, %c0_i32_0, %c0_i32_1 : i32, i32, i32, i32
  }
  func.func @transform_1(%arg0: i32, %arg1: i32) -> (i32, i32, i32, i32) {
    %c0_i32 = arith.constant 0 : i32
    %c0_i32_0 = arith.constant 0 : i32
    %c0_i32_1 = arith.constant 0 : i32
    return %arg0, %arg1, %c0_i32, %c0_i32_0 : i32, i32, i32, i32
  }
  func.func @transform_2(%arg0: i32, %arg1: i32) -> (i32, i32, i32, i32) {
    %c8_i32 = arith.constant 8 : i32
    %0 = arith.muli %arg1, %c8_i32 : i32
    %c8_i32_0 = arith.constant 8 : i32
    %1 = arith.addi %0, %c8_i32_0 : i32
    %c15_i32 = arith.constant 15 : i32
    %2 = arith.minsi %1, %c15_i32 : i32
    %c0_i32 = arith.constant 0 : i32
    %c0_i32_1 = arith.constant 0 : i32
    %c0_i32_2 = arith.constant 0 : i32
    return %arg0, %2, %c0_i32, %c0_i32_1 : i32, i32, i32, i32
  }
  func.func @transform_3(%arg0: i32, %arg1: i32) -> (i32, i32) {
    %c0_i32 = arith.constant 0 : i32
    %c0_i32_0 = arith.constant 0 : i32
    %c0_i32_1 = arith.constant 0 : i32
    return %c0_i32, %c0_i32_0 : i32, i32
  }
  func.func @transform_4(%arg0: i32, %arg1: i32) -> (i32, i32, i32) {
    %c0_i32 = arith.constant 0 : i32
    %c0_i32_0 = arith.constant 0 : i32
    %c0_i32_1 = arith.constant 0 : i32
    %c0_i32_2 = arith.constant 0 : i32
    return %c0_i32, %c0_i32_0, %c0_i32_1 : i32, i32, i32
  }
  func.func @transform_5(%arg0: i32, %arg1: i32) -> (i32, i32, i32) {
    %c0_i32 = arith.constant 0 : i32
    %c0_i32_0 = arith.constant 0 : i32
    %c0_i32_1 = arith.constant 0 : i32
    %c0_i32_2 = arith.constant 0 : i32
    return %c0_i32, %c0_i32_0, %c0_i32_1 : i32, i32, i32
  }
  func.func @transform_6(%arg0: i32, %arg1: i32) -> (i32, i32) {
    %c0_i32 = arith.constant 0 : i32
    %c0_i32_0 = arith.constant 0 : i32
    %c0_i32_1 = arith.constant 0 : i32
    return %c0_i32, %c0_i32_0 : i32, i32
  }
  func.func @transform_7(%arg0: i32, %arg1: i32) -> (i32, i32) {
    %c0_i32 = arith.constant 0 : i32
    %c0_i32_0 = arith.constant 0 : i32
    %c0_i32_1 = arith.constant 0 : i32
    return %c0_i32, %c0_i32_0 : i32, i32
  }
  func.func @transform_8(%arg0: i32, %arg1: i32) -> (i32, i32) {
    %c0_i32 = arith.constant 0 : i32
    %c0_i32_0 = arith.constant 0 : i32
    %c0_i32_1 = arith.constant 0 : i32
    return %c0_i32, %c0_i32_0 : i32, i32
  }
  func.func @transform_9(%arg0: i32, %arg1: i32) -> (i32, i32, i32, i32) {
    %c0_i32 = arith.constant 0 : i32
    %c0_i32_0 = arith.constant 0 : i32
    %c0_i32_1 = arith.constant 0 : i32
    return %arg0, %arg1, %c0_i32, %c0_i32_0 : i32, i32, i32, i32
  }
  func.func @transform_10(%arg0: i32, %arg1: i32) -> (i32, i32) {
    %c0_i32 = arith.constant 0 : i32
    %c0_i32_0 = arith.constant 0 : i32
    %c0_i32_1 = arith.constant 0 : i32
    return %c0_i32, %c0_i32_0 : i32, i32
  }
  func.func @transform_11(%arg0: i32, %arg1: i32) -> (i32, i32) {
    %c0_i32 = arith.constant 0 : i32
    %c0_i32_0 = arith.constant 0 : i32
    %c0_i32_1 = arith.constant 0 : i32
    return %c0_i32, %c0_i32_0 : i32, i32
  }
  func.func @transform_12(%arg0: i32, %arg1: i32) -> (i32, i32) {
    %c0_i32 = arith.constant 0 : i32
    %c0_i32_0 = arith.constant 0 : i32
    %c0_i32_1 = arith.constant 0 : i32
    return %c0_i32, %c0_i32_0 : i32, i32
  }
  func.func @transform_13(%arg0: i32, %arg1: i32) -> (i32, i32, i32, i32) {
    %c0_i32 = arith.constant 0 : i32
    %c0_i32_0 = arith.constant 0 : i32
    %c0_i32_1 = arith.constant 0 : i32
    return %arg0, %arg1, %c0_i32, %c0_i32_0 : i32, i32, i32, i32
  }
}

</mosaic_0001>

<bundles_post_ra>
// kernel: block_forward.4
= control target key start
LH: loop header
LB: loop body
LE: loop exit
PB: predicated region body
PF: predicated region fallthrough
CT: control target
= control target key end

     0   :  { %s1783_s30 = smov 0   ;;  %s1785_s10 = smov 0   ;;  %s2637_s0 = inlined_call_operand.vmem [shape: bf16[2,16,16,8], index: 0, kind: input, shape index: {}, may-alias: {0,1,2}]   ;;  %s2638_s1 = inlined_call_operand.vmem [shape: bf16[2,16,16,8], index: 1, kind: input, shape index: {}, may-alias: {0,1,2}]   ;;  %s2639_s2 = inlined_call_operand.vmem [shape: bf16[2,16,16,8], index: 2, kind: input, shape index: {}, may-alias: {0,1,2}]   ;;  %s2640_s3 = inlined_call_operand.vmem [shape: f32[9,8], index: 3, kind: input, shape index: {}]   ;;  %s2641_s4 = inlined_call_operand.vmem [shape: f32[1,1,8], index: 4, kind: input, shape index: {}]   ;;  %s2642_s5 = inlined_call_operand.vmem [shape: f32[1,1,8], index: 5, kind: input, shape index: {}]   ;;  %s2643_s6 = inlined_call_operand.vmem [shape: bf16[8,8], index: 6, kind: input, shape index: {}]   ;;  %s2644_s7 = inlined_call_operand.vmem [shape: f32[1,8], index: 7, kind: input, shape index: {}]   ;;  %s2645_s8 = inlined_call_operand.vmem [shape: f32[1,8], index: 8, kind: input, shape index: {}]   ;;  %s2646_s9 = inlined_call_operand.vmem [shape: bf16[2,16,16,8], index: 9, kind: output, shape index: {}]  }
   0x1   :  { %s1787_s11 = smov 0   ;;  %s1789_s12 = smov 0  }
   0x2   :  { %s1791_s13 = smov 0  }
   0x3 LB: > { %s28_s14 = sadd.s32 1, %s1723_s11  ;;  %s31_s15 = sadd.s32 1, %s1727_s12  ;;  %s1731_s13 = sphi %s1791_s13, %s19_s13   ;;  %s1727_s12 = sphi %s1789_s12, %s2698_s12   ;;  %s1723_s11 = sphi %s1787_s11, %s2697_s11   ;;  %s1719_s10 = sphi %s1785_s10, %s2696_s10   ;;  %s1715_s30 = sphi %s1783_s30, %s2695_s30  }
   0x4   : > { %p29_p0 = scmp.ge.s32.totalorder %s28_s14, 2  ;;  %p1500_p1 = scmp.ge.s32.totalorder %s1731_s13, 1 }
   0x5   : > { %p373_p2 = scmp.lt.s32.totalorder %s1731_s13, 5 }
   0x6   : > { %s2700_s14 = smov (%p29_p0, %s28_s14), 0  ;;  %s2702_s15 = smov (!%p29_p0, %s31_s15), %s1727_s12 }
   0x7   : > { %p374_p3 = pnand %p1500_p1, %p373_p2  ;;  %p33_p4 = scmp.ge.s32.totalorder %s2702_s15, 2 }
   0x9   : > { %s2704_s15 = smov (%p33_p4, %s2702_s15), 0  ;;  %377 = sbr.rel (%p374_p3) target bundleno = 356 (0x164), region = 56 }
   0xe   : > { %v1079_v0 = vld [vmem:[%s2643_s6] sm:$0xf]  ;;  %vm1105_vm0 = vcmask 1043456   ;;  %s1819_s18 = sshll.u32 %s1715_s30, 3  ;;  %p449_p5 = scmp.lt.s32.totalorder %s1719_s10, 1  ;;  %v554_v1 = vlaneseq  ;;  %vm1080_vm5 = vcmask 64512  }
   0xf   : > { %1652 = vmatprep.subr.msk.bf16.mxu1 %vm1105_vm0, %v1079_v0  ;;  %v1107_v2 = vsel %vm1105_vm0, %v1079_v0, 0  ;;  %p465_p6 = scmp.lt.s32.totalorder %s1819_s18, 15  ;;  %1651 = vmatprep.subr.msk.bf16.mxu0 %vm1105_vm0, %v1079_v0  ;;  %v1830_v4 = vld [vmem:[%s2640_s3] sm:$0xff]  ;;  %s474_s29 = sadd.s32 8, %s1819_s18  ;;  %vm1332_vm8 = vcmask 60416  }
  0x10   : > { %1650 = vmatpush3.bf16.msra.mxu1 %v1107_v2  ;;  %s2706_s10 = smov (!%p449_p5, %s1719_s10), 1  ;;  %v1822_v3 = vshrl.u32 %v554_v1, 7  ;;  %1632 = vmatpush3.bf16.msra.mxu0 %v1107_v2  ;;  %p1911_p7 = scmp.lt.s32.totalorder %s474_s29, 15 }
  0x11   : > { %s466_s19 = scalar_select %p465_p6, %s1819_s18, 15 }
  0x12   : > { %s1825_s20 = sshll.u32 %s2706_s10, 5  ;;  %v687_v5 = vsub.s32 0, %v1822_v3  ;;  %v723_v6 = vsub.s32 3, %v1822_v3  ;;  %v759_v7 = vsub.s32 6, %v1822_v3  ;;  %v795_v8 = vsub.s32 1, %v1822_v3  ;;  %s2708_s29 = smov (!%p1911_p7, %s474_s29), 15 }
  0x13   : > { %s1512_s21 = sshll.u32 %s466_s19, 1  ;;  %v831_v9 = vsub.s32 4, %v1822_v3  ;;  %v867_v10 = vsub.s32 7, %v1822_v3  ;;  %v903_v11 = vsub.s32 2, %v1822_v3  ;;  %v1844_v12 = vadd.s32 8, %v1822_v3  ;;  %s2710_s29 = smov (!%p1911_p7, %s2708_s29), 15 }
  0x14   : > { %s1837_s24 = sadd.s32 %s1512_s21, %s1825_s20  ;;  %vm557_vm1 = vcmp.ge.s32.totalorder %v1822_v3, 1  ;;  %vm579_vm2 = vcmp.lt.s32.totalorder %v1822_v3, 1  ;;  %v1856_v13 = vrot.slane %v1830_v4, %v687_v5  ;;  %v1859_v14 = vrot.slane %v1830_v4, %v723_v6  ;;  %s1980_s16 = sadd.s32 4294967295, %s1819_s18 }
  0x15   : > { %s1514_s25 = sshll.u32 %s1837_s24, 2  ;;  %v1862_v15 = vrot.slane %v1830_v4, %v759_v7  ;;  %v1865_v16 = vrot.slane %v1830_v4, %v795_v8  ;;  %v1871_v20 = vrot.slane %v1830_v4, %v831_v9  ;;  %v1874_v21 = vrot.slane %v1830_v4, %v867_v10  ;;  %s1994_s17 = sshll.u32 %s2710_s29, 1 }
  0x16   : > { %s1853_s28 = scalar_lea.vmem %s2638_s1, %s1514_s25  ;;  %2662 = vst [vmem:[#allocation2_spill] sm:$0xff] %v1856_v13  ;;  %v1877_v22 = vrot.slane %v1830_v4, %v903_v11  ;;  %v939_v23 = vsub.s32 5, %v1822_v3  ;;  %vm642_vm3 = vcmp.lt.s32.totalorder %v1822_v3, 7  ;;  %vm621_vm4 = vcmp.lt.s32.totalorder %v1844_v12, 15  ;;  %s483_s18 = sadd.s32 %s1994_s17, %s1825_s20 }
  0x17   : > { %v1617_v17 = vld [vmem:[%s1853_s28 + $0x18] sm:$0xff]   ;;  %v1618_v18 = vld [vmem:[%s1853_s28 + $0x20] sm:$0xff]   ;;  %v1619_v19 = vld [vmem:[%s1853_s28 + $0x28] sm:$0xff]   ;;  %p447_p8 = scmp.gt.s32.totalorder %s1980_s16, 0  ;;  %p1503_p9 = scmp.lt.s32.totalorder %s1980_s16, 15 }
  0x18   : > { %v1880_v24 = vunpack.c.l.bf16 %v1617_v17  ;;  %v1882_v25 = vunpack.c.h.bf16 %v1617_v17  ;;  %v1884_v26 = vunpack.c.l.bf16 %v1618_v18  ;;  %v1886_v27 = vunpack.c.h.bf16 %v1618_v18  ;;  %v1620_v28 = vld [vmem:[%s1853_s28 + $0x30] sm:$0xff]   ;;  %v1621_v29 = vld [vmem:[%s1853_s28 + $0x38] sm:$0xff]   ;;  %p502_p10 = scmp.eq.s32.totalorder %s1715_s30, 0  ;;  %p503_p11 = scmp.eq.s32.totalorder %s1715_s30, 1 }
  0x19   : > { %v1891_v30 = vunpack.c.l.bf16 %v1619_v19  ;;  %v1893_v31 = vunpack.c.h.bf16 %v1619_v19  ;;  %v1895_v32 = vunpack.c.l.bf16 %v1620_v28  ;;  %v1897_v33 = vunpack.c.h.bf16 %v1620_v28  ;;  %s448_s19 = scalar_select %p447_p8, %s1980_s16, 0 }
  0x1a   : > { %2663 = vst [vmem:[#allocation3_spill] sm:$0xff] %v1884_v26  ;;  %2664 = vst [vmem:[#allocation4_spill] sm:$0xff] %v1886_v27  ;;  %v1900_v34 = vunpack.c.l.bf16 %v1621_v29  ;;  %v1902_v35 = vunpack.c.h.bf16 %v1621_v29  ;;  %v563_v36 = vrot.slane %v1880_v24, 7  ;;  %v564_v37 = vrot.slane %v1884_v26, 7  ;;  %s2561_s22 = scalar_lea.vmem %s2646_s9, %s1514_s25 }
  0x1b   : > { %2665 = vst [vmem:[#allocation5_spill] sm:$0xff] %v1895_v32  ;;  %2666 = vst [vmem:[#allocation6_spill] sm:$0xff] %v1897_v33  ;;  %v565_v38 = vrot.slane %v1891_v30, 7  ;;  %v566_v39 = vrot.slane %v1895_v32, 7  ;;  %v573_v40 = vrot.slane %v1882_v25, 7  ;;  %v574_v41 = vrot.slane %v1886_v27, 7 }
  0x1c   : > { %v567_v42 = vrot.slane %v1900_v34, 7  ;;  %v575_v43 = vrot.slane %v1893_v31, 7  ;;  %v576_v44 = vrot.slane %v1897_v33, 7  ;;  %v577_v45 = vrot.slane %v1902_v35, 7  ;;  %s2712_s19 = smov (!%p1503_p9, %s448_s19), 15 }
  0x1d   : > { %v1921_v46 = vsel %vm579_vm2, %v563_v36, %v573_v40  ;;  %v1925_v47 = vsel %vm579_vm2, %v564_v37, %v574_v41  ;;  %v594_v48 = vsel %vm579_vm2, %v573_v40, %v563_v36  ;;  %v595_v49 = vsel %vm579_vm2, %v574_v41, %v564_v37  ;;  %s1508_s23 = sshll.u32 %s2712_s19, 1 }
  0x1e   : > { %2668 = vst [vmem:[#allocation7_spill] sm:$0xff] %v1925_v47  ;;  %v586_v50 = vsel %vm579_vm2, %v565_v38, %v575_v43  ;;  %v1935_v51 = vsel %vm579_vm2, %v566_v39, %v576_v44  ;;  %v588_v52 = vsel %vm579_vm2, %v567_v42, %v577_v45  ;;  %v596_v53 = vsel %vm579_vm2, %v575_v43, %v565_v38  ;;  %s2124_s26 = sadd.s32 %s1825_s20, %s1508_s23 }
  0x1f   : > { %2669 = vst [vmem:[#allocation8_spill] sm:$0xff] %v1935_v51  ;;  %v597_v54 = vsel %vm579_vm2, %v576_v44, %v566_v39  ;;  %v598_v55 = vsel %vm579_vm2, %v577_v45, %v567_v42  ;;  %v1947_v56 = vsel %vm557_vm1, %v594_v48, 0.0  ;;  %v1951_v57 = vsel %vm557_vm1, %v595_v49, 0.0  ;;  %s1510_s27 = sshll.u32 %s2124_s26, 2 }
  0x20   : > { %2670 = vst [vmem:[#allocation9_spill] sm:$0xff] %v1951_v57  ;;  %v612_v58 = vsel %vm557_vm1, %v596_v53, 0.0  ;;  %v1959_v59 = vsel %vm557_vm1, %v597_v54, 0.0  ;;  %v616_v60 = vsel %vm557_vm1, %v598_v55, 0.0  ;;  %v626_v61 = vrot.slane %v1880_v24, 1  ;;  %s457_s23 = scalar_lea.vmem %s2637_s0, %s1510_s27 }
  0x21   : > { %v627_v62 = vrot.slane %v1884_v26, 1  ;;  %v628_v63 = vrot.slane %v1891_v30, 1  ;;  %v636_v0 = vrot.slane %v1882_v25, 1  ;;  %v637_v1 = vrot.slane %v1886_v27, 1  ;;  %s540_s26 = scalar_select %p502_p10, 1, 0 }
  0x22   : > { %v638_v2 = vrot.slane %v1893_v31, 1  ;;  %v697_v5 = vmul.f32 %v1856_v13, %v1947_v56  ;;  %v698_v6 = vmul.f32 %v1856_v13, %v1921_v46  ;;  %v1977_v7 = vmul.f32 %v1856_v13, %v1951_v57  ;;  %s549_s27 = scalar_select %p503_p11, 1, 0  ;;  %v2684_v3 = vld [vmem:[#allocation6_spill] sm:$0xff] }
  0x23   : > { %v1984_v8 = vsel %vm642_vm3, %v626_v61, %v636_v0  ;;  %v1988_v9 = vsel %vm642_vm3, %v627_v62, %v637_v1  ;;  %v657_v10 = vsel %vm642_vm3, %v636_v0, %v626_v61  ;;  %v658_v11 = vsel %vm642_vm3, %v637_v1, %v627_v62 }
  0x24   : > { %2671 = vst [vmem:[#allocation10_spill] sm:$0xff] %v1984_v8  ;;  %2672 = vst [vmem:[#allocation11_spill] sm:$0xff] %v1988_v9  ;;  %v1998_v17 = vsel %vm642_vm3, %v628_v63, %v638_v2  ;;  %v659_v18 = vsel %vm642_vm3, %v638_v2, %v628_v63  ;;  %v2004_v19 = vsel %vm621_vm4, %v657_v10, 0.0  ;;  %v2008_v28 = vsel %vm621_vm4, %v658_v11, 0.0 }
  0x25   : > { %2673 = vst [vmem:[#allocation12_spill] sm:$0xff] %v2004_v19  ;;  %2674 = vst [vmem:[#allocation13_spill] sm:$0xff] %v2008_v28  ;;  %v2014_v29 = vsel %vm621_vm4, %v659_v18, 0.0  ;;  %v2018_v36 = vmul.f32 %v1856_v13, %v1925_v47  ;;  %v701_v37 = vmul.f32 %v1856_v13, %v612_v58  ;;  %v702_v38 = vmul.f32 %v1856_v13, %v586_v50 }
  0x26   : > { %v2025_v39 = vmul.f32 %v1859_v14, %v1947_v56  ;;  %v2029_v40 = vmul.f32 %v1859_v14, %v1921_v46  ;;  %v733_v41 = vmul.f32 %v1859_v14, %v1951_v57  ;;  %v734_v42 = vmul.f32 %v1859_v14, %v1925_v47 }
  0x27   : > { %v2036_v43 = vmul.f32 %v1859_v14, %v612_v58  ;;  %v2039_v44 = vmul.f32 %v1859_v14, %v586_v50  ;;  %v737_v45 = vmul.f32 %v1859_v14, %v1959_v59  ;;  %v738_v48 = vmul.f32 %v1859_v14, %v1935_v51 }
  0x28   : > { %2675 = vst [vmem:[#allocation14_spill] sm:$0xff] %v2025_v39  ;;  %2676 = vst [vmem:[#allocation15_spill] sm:$0xff] %v2029_v40  ;;  %v2046_v49 = vmul.f32 %v1859_v14, %v616_v60  ;;  %v2049_v53 = vmul.f32 %v1859_v14, %v588_v52  ;;  %v749_v54 = vadd.f32 %v733_v41, %v697_v5 }
  0x29   : > { %v750_v55 = vadd.f32 %v734_v42, %v698_v6  ;;  %v753_v61 = vadd.f32 %v737_v45, %v701_v37  ;;  %v754_v62 = vadd.f32 %v738_v48, %v702_v38  ;;  %v769_v63 = vmul.f32 %v1862_v15, %v612_v58 }
  0x2a   : > { %2677 = vst [vmem:[#allocation16_spill] sm:$0xff] %v2046_v49  ;;  %2678 = vst [vmem:[#allocation17_spill] sm:$0xff] %v2049_v53  ;;  %v770_v0 = vmul.f32 %v1862_v15, %v586_v50  ;;  %v773_v1 = vmul.f32 %v1862_v15, %v616_v60  ;;  %v774_v2 = vmul.f32 %v1862_v15, %v588_v52 }
  0x2b   : > { %v805_v10 = vmul.f32 %v1880_v24, %v1865_v16  ;;  %v806_v5 = vmul.f32 %v1882_v25, %v1865_v16  ;;  %v785_v6 = vadd.f32 %v769_v63, %v749_v54  ;;  %v809_v58 = vmul.f32 %v1891_v30, %v1865_v16 }
  0x2c   : > { %v786_v11 = vadd.f32 %v770_v0, %v750_v55  ;;  %v810_v50 = vmul.f32 %v1893_v31, %v1865_v16  ;;  %v789_v18 = vadd.f32 %v773_v1, %v753_v61  ;;  %v790_v37 = vadd.f32 %v774_v2, %v754_v62  ;;  %v2090_v2 = vld [vmem:[%s2640_s3 + $0x8] ss:$0 sm:$0xff] }
  0x2d   : > { %v841_v60 = vmul.f32 %v1884_v26, %v1871_v20  ;;  %v842_v52 = vmul.f32 %v1886_v27, %v1871_v20  ;;  %v821_v38 = vadd.f32 %v805_v10, %v785_v6  ;;  %v845_v42 = vmul.f32 %v1895_v32, %v1871_v20 }
  0x2e   : > { %v822_v41 = vadd.f32 %v806_v5, %v786_v11  ;;  %v846_v45 = vmul.f32 %v1897_v33, %v1871_v20  ;;  %v825_v48 = vadd.f32 %v809_v58, %v789_v18  ;;  %v826_v54 = vadd.f32 %v810_v50, %v790_v37 }
  0x2f   : > { %v877_v55 = vmul.f32 %v1891_v30, %v1874_v21  ;;  %v878_v61 = vmul.f32 %v1893_v31, %v1874_v21  ;;  %v857_v62 = vadd.f32 %v841_v60, %v821_v38  ;;  %v881_v0 = vmul.f32 %v1900_v34, %v1874_v21 }
  0x30   : > { %v858_v63 = vadd.f32 %v842_v52, %v822_v41  ;;  %v882_v1 = vmul.f32 %v1902_v35, %v1874_v21  ;;  %v861_v10 = vadd.f32 %v845_v42, %v825_v48  ;;  %v862_v5 = vadd.f32 %v846_v45, %v826_v54 }
  0x31   : > { %v913_v6 = vmul.f32 %v1877_v22, %v1984_v8  ;;  %v914_v11 = vmul.f32 %v1877_v22, %v2004_v19  ;;  %v893_v58 = vadd.f32 %v877_v55, %v857_v62  ;;  %v2098_v18 = vmul.f32 %v1877_v22, %v1988_v9 }
  0x32   : > { %v894_v50 = vadd.f32 %v878_v61, %v858_v63  ;;  %v2102_v37 = vmul.f32 %v1877_v22, %v2008_v28  ;;  %v897_v60 = vadd.f32 %v881_v0, %v861_v10  ;;  %v898_v52 = vadd.f32 %v882_v1, %v862_v5 }
  0x33   : > { %v917_v38 = vmul.f32 %v1877_v22, %v1998_v17  ;;  %v918_v41 = vmul.f32 %v1877_v22, %v2014_v29  ;;  %v929_v42 = vadd.f32 %v913_v6, %v893_v58  ;;  %v2112_v48 = vrot.slane %v1830_v4, %v939_v23 }
  0x34   : > { %v930_v45 = vadd.f32 %v914_v11, %v894_v50  ;;  %v985_v54 = vmul.f32 %v2090_v2, %v1998_v17  ;;  %v986_v62 = vmul.f32 %v2090_v2, %v2014_v29  ;;  %v629_v63 = vrot.slane %v1895_v32, 1 }
  0x35   : > { %v2116_v55 = vadd.f32 %v917_v38, %v897_v60  ;;  %v2118_v61 = vadd.f32 %v918_v41, %v898_v52  ;;  %v949_v0 = vmul.f32 %v2112_v48, %v1988_v9  ;;  %v950_v4 = vmul.f32 %v2112_v48, %v2008_v28 }
  0x36   : > { %v951_v23 = vmul.f32 %v2112_v48, %v1998_v17  ;;  %v2134_v1 = vmul.f32 %v2112_v48, %v2014_v29  ;;  %v639_v10 = vrot.slane %v1897_v33, 1  ;;  %v751_v5 = vadd.f32 %v2036_v43, %v1977_v7  ;;  %v2151_v7 = vld [vmem:[%s2641_s4] ss:$0 sm:$0xff] }
  0x37   : > { %v752_v6 = vadd.f32 %v2039_v44, %v2018_v36  ;;  %v771_v11 = vmul.f32 %v1862_v15, %v1959_v59  ;;  %v965_v58 = vadd.f32 %v949_v0, %v929_v42  ;;  %v966_v50 = vadd.f32 %v950_v4, %v930_v45  ;;  %v1576_v45 = vld [vmem:[%s1853_s28] sm:$0xff]  }
  0x38   : > { %v772_v17 = vmul.f32 %v1862_v15, %v1935_v51  ;;  %v807_v29 = vmul.f32 %v1884_v26, %v1865_v16  ;;  %v2155_v36 = vsel %vm642_vm3, %v629_v63, %v639_v10  ;;  %v660_v43 = vsel %vm642_vm3, %v639_v10, %v629_v63  ;;  %v2170_v0 = vld [vmem:[%s2642_s5] ss:$0 sm:$0xff] }
  0x39   : > { %v787_v44 = vadd.f32 %v771_v11, %v751_v5  ;;  %v808_v60 = vmul.f32 %v1886_v27, %v1865_v16  ;;  %v1001_v52 = vadd.f32 %v985_v54, %v965_v58  ;;  %v1002_v38 = vadd.f32 %v986_v62, %v966_v50  ;;  %v1615_v58 = vld [vmem:[%s1853_s28 + $0x8] sm:$0xff]  }
  0x3a   : > { %v2164_v41 = vsel %vm621_vm4, %v660_v43, 0.0  ;;  %v788_v42 = vadd.f32 %v772_v17, %v752_v6  ;;  %v843_v4 = vmul.f32 %v1891_v30, %v1871_v20  ;;  %v844_v54 = vmul.f32 %v1893_v31, %v1871_v20  ;;  %v1616_v30 = vld [vmem:[%s1853_s28 + $0x10] sm:$0xff]   ;;  %s1521_s28 = sshll.u32 %s483_s18, 2 }
  0x3b   : > { %v823_v63 = vadd.f32 %v807_v29, %v787_v44  ;;  %v879_v62 = vmul.f32 %v1895_v32, %v1874_v21  ;;  %v1024_v10 = vmul.f32 %v2151_v7, %v1001_v52  ;;  %v1025_v5 = vmul.f32 %v2151_v7, %v1002_v38  ;;  %v1608_v38 = vld [vmem:[%s457_s23] sm:$0xff]   ;;  %s485_s18 = scalar_lea.vmem %s2639_s2, %s1521_s28 }
  0x3c   : > { %v824_v6 = vadd.f32 %v808_v60, %v788_v42  ;;  %v880_v11 = vmul.f32 %v1897_v33, %v1874_v21  ;;  %v987_v31 = vmul.f32 %v2090_v2, %v2155_v36  ;;  %v988_v17 = vmul.f32 %v2090_v2, %v2164_v41 }
  0x3d   : > { %v859_v50 = vadd.f32 %v843_v4, %v823_v63  ;;  %v2191_v29 = vunpack.c.l.bf16 %v1576_v45  ;;  %v1047_v43 = vadd.f32 %v2170_v0, %v1024_v10  ;;  %v1048_v44 = vadd.f32 %v2170_v0, %v1025_v5 }
  0x3e   : > { %v860_v60 = vadd.f32 %v844_v54, %v824_v6  ;;  %v2197_v52 = vunpack.c.h.bf16 %v1576_v45  ;;  %v2199_v63 = vunpack.c.l.bf16 %v1615_v58  ;;  %v2201_v4 = vunpack.c.h.bf16 %v1615_v58 }
  0x3f   : > { %v895_v42 = vadd.f32 %v879_v62, %v859_v50  ;;  %v2203_v28 = vunpack.c.l.bf16 %v1616_v30  ;;  %v1063_v9 = vmax.f32 %v1047_v43, 0.0  ;;  %v1064_v27 = vmax.f32 %v1048_v44, 0.0 }
  0x40   : > { %v896_v26 = vadd.f32 %v880_v11, %v860_v60  ;;  %v2205_v40 = vunpack.c.h.bf16 %v1616_v30  ;;  %v1609_v47 = vunpack.c.l.bf16 %v1608_v38  ;;  %v1610_v5 = vunpack.c.h.bf16 %v1608_v38 }
  0x41   : > { %v931_v10 = vadd.f32 %v2098_v18, %v895_v42  ;;  %v541_v54 = vstv %s540_s26  ;;  %v1075_v45 = vpack.c.bf16 %v1064_v27, %v1063_v9  ;;  %v560_v62 = vrot.slane %v2191_v29, 7 }
  0x42   : > { %v932_v6 = vadd.f32 %v2102_v37, %v896_v26  ;;  %vm542_vm6 = vcmp.eq.s32.totalorder %v541_v54, 1  ;;  %v561_v11 = vrot.slane %v2199_v63, 7  ;;  %v562_v27 = vrot.slane %v2203_v28, 7 }
  0x43   : > { %v967_v58 = vadd.f32 %v951_v23, %v931_v10  ;;  %v2210_v50 = vsel %vm542_vm6, 0.0, %v1609_v47  ;;  %v2212_v57 = vsel %vm542_vm6, 0.0, %v1610_v5  ;;  %1641 = vmatprep.mubr.msk.bf16.mxu1 %vm1080_vm5, %v1075_v45  ;;  %v570_v37 = vrot.slane %v2197_v52, 7 }
  0x44   : > { %v968_v18 = vadd.f32 %v2134_v1, %v932_v6  ;;  %v559_v30 = vrot.slane %v2210_v50, 7  ;;  %v569_v26 = vrot.slane %v2212_v57, 7  ;;  %v571_v47 = vrot.slane %v2201_v4, 7 }
  0x45   : > { %v1003_v9 = vadd.f32 %v987_v31, %v967_v58  ;;  %v572_v23 = vrot.slane %v2205_v40, 7  ;;  %v622_v60 = vrot.slane %v2210_v50, 1  ;;  %v581_v31 = vsel %vm579_vm2, %v560_v62, %v570_v37 }
  0x46   : > { %v1004_v43 = vadd.f32 %v988_v17, %v968_v18  ;;  %v580_v44 = vsel %vm579_vm2, %v559_v30, %v569_v26  ;;  %v590_v1 = vsel %vm579_vm2, %v569_v26, %v559_v30  ;;  %v582_v42 = vsel %vm579_vm2, %v561_v11, %v571_v47 }
  0x47   : > { %v1026_v38 = vmul.f32 %v2151_v7, %v1003_v9  ;;  %v2235_v10 = vsel %vm579_vm2, %v562_v27, %v572_v23  ;;  %v591_v5 = vsel %vm579_vm2, %v570_v37, %v560_v62  ;;  %v592_v54 = vsel %vm579_vm2, %v571_v47, %v561_v11 }
  0x48   : > { %v1027_v17 = vmul.f32 %v2151_v7, %v1004_v43  ;;  %v593_v45 = vsel %vm579_vm2, %v572_v23, %v562_v27  ;;  %v600_v58 = vsel %vm557_vm1, %v590_v1, 0.0  ;;  %v602_v18 = vsel %vm557_vm1, %v591_v5, 0.0 }
  0x49   : > { %v1049_v6 = vadd.f32 %v2170_v0, %v1026_v38  ;;  %v604_v30 = vsel %vm557_vm1, %v592_v54, 0.0  ;;  %v2254_v62 = vsel %vm557_vm1, %v593_v45, 0.0  ;;  %v623_v11 = vrot.slane %v2191_v29, 1 }
  0x4a   : > { %v1050_v26 = vadd.f32 %v2170_v0, %v1027_v17  ;;  %v624_v27 = vrot.slane %v2199_v63, 1  ;;  %v632_v37 = vrot.slane %v2212_v57, 1  ;;  %v633_v47 = vrot.slane %v2197_v52, 1 }
  0x4b   : > { %v1065_v9 = vmax.f32 %v1049_v6, 0.0  ;;  %v634_v23 = vrot.slane %v2201_v4, 1  ;;  %v689_v1 = vmul.f32 %v1856_v13, %v600_v58  ;;  %v690_v38 = vmul.f32 %v1856_v13, %v580_v44 }
  0x4c   : > { %v1066_v43 = vmax.f32 %v1050_v26, 0.0  ;;  %v691_v17 = vmul.f32 %v1856_v13, %v602_v18  ;;  %v2266_v5 = vsel %vm642_vm3, %v622_v60, %v632_v37  ;;  %v2270_v54 = vsel %vm642_vm3, %v623_v11, %v633_v47 }
  0x4d   : > { %v2274_v45 = vsel %vm642_vm3, %v624_v27, %v634_v23  ;;  %v653_v6 = vsel %vm642_vm3, %v632_v37, %v622_v60  ;;  %v654_v44 = vsel %vm642_vm3, %v633_v47, %v623_v11  ;;  %v655_v26 = vsel %vm642_vm3, %v634_v23, %v624_v27 }
  0x4e   : > { %v1076_v58 = vpack.c.bf16 %v1066_v43, %v1065_v9  ;;  %v2284_v39 = vsel %vm621_vm4, %v653_v6, 0.0  ;;  %v2288_v19 = vsel %vm621_vm4, %v654_v44, 0.0  ;;  %v2292_v8 = vsel %vm621_vm4, %v655_v26, 0.0 }
  0x4f   : > { %v692_v60 = vmul.f32 %v1856_v13, %v581_v31  ;;  %v693_v9 = vmul.f32 %v1856_v13, %v604_v30  ;;  %v694_v11 = vmul.f32 %v1856_v13, %v582_v42  ;;  %v725_v27 = vmul.f32 %v1859_v14, %v602_v18 }
  0x50   : > { %1642 = vmatmul.mubr.msk.bf16.vlgmr.msra.gmra.mxu1 %vm1080_vm5, %v1076_v58  ;;  %v726_v37 = vmul.f32 %v1859_v14, %v581_v31  ;;  %v727_v47 = vmul.f32 %v1859_v14, %v604_v30  ;;  %v728_v23 = vmul.f32 %v1859_v14, %v582_v42  ;;  %v729_v43 = vmul.f32 %v1859_v14, %v2254_v62 }
  0x51   : > { %v730_v6 = vmul.f32 %v1859_v14, %v2235_v10  ;;  %v761_v44 = vmul.f32 %v1862_v15, %v604_v30  ;;  %v741_v26 = vadd.f32 %v725_v27, %v689_v1  ;;  %v762_v32 = vmul.f32 %v1862_v15, %v582_v42 }
  0x52   : > { %v742_v58 = vadd.f32 %v726_v37, %v690_v38  ;;  %v743_v33 = vadd.f32 %v727_v47, %v691_v17  ;;  %v744_v18 = vadd.f32 %v728_v23, %v692_v60  ;;  %v745_v53 = vadd.f32 %v729_v43, %v693_v9 }
  0x53   : > { %v746_v31 = vadd.f32 %v730_v6, %v694_v11  ;;  %v763_v49 = vmul.f32 %v1862_v15, %v2254_v62  ;;  %v764_v51 = vmul.f32 %v1862_v15, %v2235_v10  ;;  %v765_v13 = vmul.f32 %v1862_v15, %v1947_v56 }
  0x54   : > { %v766_v14 = vmul.f32 %v1862_v15, %v1921_v46  ;;  %v777_v30 = vadd.f32 %v761_v44, %v741_v26  ;;  %v778_v1 = vadd.f32 %v762_v32, %v742_v58  ;;  %v797_v42 = vmul.f32 %v1865_v16, %v2210_v50 }
  0x55   : > { %v779_v38 = vadd.f32 %v763_v49, %v743_v33  ;;  %v798_v17 = vmul.f32 %v1865_v16, %v2212_v57  ;;  %v780_v60 = vadd.f32 %v764_v51, %v744_v18  ;;  %v781_v9 = vadd.f32 %v765_v13, %v745_v53 }
  0x56   : > { %v782_v11 = vadd.f32 %v766_v14, %v746_v31  ;;  %v799_v27 = vmul.f32 %v2191_v29, %v1865_v16  ;;  %v800_v56 = vmul.f32 %v2197_v52, %v1865_v16  ;;  %v801_v46 = vmul.f32 %v2199_v63, %v1865_v16 }
  0x57   : > { %v802_v32 = vmul.f32 %v2201_v4, %v1865_v16  ;;  %v813_v33 = vadd.f32 %v797_v42, %v777_v30  ;;  %v814_v49 = vadd.f32 %v798_v17, %v778_v1  ;;  %v833_v51 = vmul.f32 %v2191_v29, %v1871_v20 }
  0x58   : > { %v815_v50 = vadd.f32 %v799_v27, %v779_v38  ;;  %v834_v13 = vmul.f32 %v2197_v52, %v1871_v20  ;;  %v816_v57 = vadd.f32 %v800_v56, %v780_v60  ;;  %v817_v53 = vadd.f32 %v801_v46, %v781_v9 }
  0x59   : > { %v818_v37 = vadd.f32 %v802_v32, %v782_v11  ;;  %v835_v47 = vmul.f32 %v2199_v63, %v1871_v20  ;;  %v836_v23 = vmul.f32 %v2201_v4, %v1871_v20  ;;  %v837_v43 = vmul.f32 %v2203_v28, %v1871_v20 }
  0x5a   : > { %v838_v6 = vmul.f32 %v2205_v40, %v1871_v20  ;;  %v849_v44 = vadd.f32 %v833_v51, %v813_v33  ;;  %v850_v29 = vadd.f32 %v834_v13, %v814_v49  ;;  %v869_v52 = vmul.f32 %v2199_v63, %v1874_v21 }
  0x5b   : > { %v851_v26 = vadd.f32 %v835_v47, %v815_v50  ;;  %v870_v58 = vmul.f32 %v2201_v4, %v1874_v21  ;;  %v852_v18 = vadd.f32 %v836_v23, %v816_v57  ;;  %v853_v31 = vadd.f32 %v837_v43, %v817_v53 }
  0x5c   : > { %v854_v14 = vadd.f32 %v838_v6, %v818_v37  ;;  %v871_v30 = vmul.f32 %v2203_v28, %v1874_v21  ;;  %v872_v1 = vmul.f32 %v2205_v40, %v1874_v21  ;;  %v873_v38 = vmul.f32 %v1880_v24, %v1874_v21 }
  0x5d   : > { %v874_v42 = vmul.f32 %v1882_v25, %v1874_v21  ;;  %v885_v17 = vadd.f32 %v869_v52, %v849_v44  ;;  %v886_v63 = vadd.f32 %v870_v58, %v850_v29  ;;  %v905_v4 = vmul.f32 %v1877_v22, %v2266_v5 }
  0x5e   : > { %v887_v60 = vadd.f32 %v871_v30, %v851_v26  ;;  %v906_v9 = vmul.f32 %v1877_v22, %v2284_v39  ;;  %v888_v11 = vadd.f32 %v872_v1, %v852_v18  ;;  %v889_v27 = vadd.f32 %v873_v38, %v853_v31 }
  0x5f   : > { %v890_v56 = vadd.f32 %v874_v42, %v854_v14  ;;  %v907_v46 = vmul.f32 %v1877_v22, %v2270_v54  ;;  %v908_v32 = vmul.f32 %v1877_v22, %v2288_v19  ;;  %v909_v33 = vmul.f32 %v1877_v22, %v2274_v45 }
  0x60   : > { %v910_v5 = vmul.f32 %v1877_v22, %v2292_v8  ;;  %v921_v49 = vadd.f32 %v905_v4, %v885_v17  ;;  %v922_v50 = vadd.f32 %v906_v9, %v886_v63  ;;  %v941_v51 = vmul.f32 %v2112_v48, %v2270_v54 }
  0x61   : > { %v923_v39 = vadd.f32 %v907_v46, %v887_v60  ;;  %v942_v13 = vmul.f32 %v2112_v48, %v2288_v19  ;;  %v924_v57 = vadd.f32 %v908_v32, %v888_v11  ;;  %v2368_v53 = vadd.f32 %v909_v33, %v889_v27  ;;  %v1612_v11 = vld [vmem:[%s485_s18] sm:$0xff]  }
  0x62   : > { %v2370_v37 = vadd.f32 %v910_v5, %v890_v56  ;;  %v943_v47 = vmul.f32 %v2112_v48, %v2274_v45  ;;  %v944_v23 = vmul.f32 %v2112_v48, %v2292_v8  ;;  %v957_v43 = vadd.f32 %v941_v51, %v921_v49 }
  0x63   : > { %v958_v6 = vadd.f32 %v942_v13, %v922_v50  ;;  %v977_v54 = vmul.f32 %v2090_v2, %v2274_v45  ;;  %v978_v19 = vmul.f32 %v2090_v2, %v2292_v8  ;;  %v625_v44 = vrot.slane %v2203_v28, 1 }
  0x64   : > { %v635_v29 = vrot.slane %v2205_v40, 1  ;;  %v959_v26 = vadd.f32 %v943_v47, %v923_v39  ;;  %v960_v58 = vadd.f32 %v944_v23, %v924_v57  ;;  %v630_v18 = vrot.slane %v1900_v34, 1 }
  0x65   : > { %v993_v52 = vadd.f32 %v977_v54, %v957_v43  ;;  %v640_v31 = vrot.slane %v1902_v35, 1  ;;  %v994_v45 = vadd.f32 %v978_v19, %v958_v6  ;;  %v953_v30 = vmul.f32 %v2112_v48, %v2155_v36 }
  0x66   : > { %v2393_v8 = vsel %vm642_vm3, %v625_v44, %v635_v29  ;;  %v656_v14 = vsel %vm642_vm3, %v635_v29, %v625_v44  ;;  %v954_v9 = vmul.f32 %v2112_v48, %v2164_v41  ;;  %v1613_v57 = vunpack.c.l.bf16 %v1612_v11 }
  0x67   : > { %v1016_v1 = vmul.f32 %v2151_v7, %v993_v52  ;;  %v2402_v38 = vsel %vm621_vm4, %v656_v14, 0.0  ;;  %v979_v42 = vmul.f32 %v2090_v2, %v2393_v8  ;;  %v2408_v17 = vsel %vm642_vm3, %v630_v18, %v640_v31 }
  0x68   : > { %v1017_v63 = vmul.f32 %v2151_v7, %v994_v45  ;;  %v980_v60 = vmul.f32 %v2090_v2, %v2402_v38  ;;  %v661_v4 = vsel %vm642_vm3, %v640_v31, %v630_v18  ;;  %v969_v32 = vadd.f32 %v953_v30, %v2116_v55 }
  0x69   : > { %v1039_v27 = vadd.f32 %v2170_v0, %v1016_v1  ;;  %v995_v56 = vadd.f32 %v979_v42, %v959_v26  ;;  %v2420_v46 = vsel %vm621_vm4, %v661_v4, 0.0  ;;  %v970_v49 = vadd.f32 %v954_v9, %v2118_v61  ;;  %v2679_v61 = vld [vmem:[#allocation2_spill] sm:$0xff]  ;;  %v2680_v4 = vld [vmem:[#allocation8_spill] sm:$0xff] }
  0x6a   : > { %v1040_v33 = vadd.f32 %v2170_v0, %v1017_v63  ;;  %v996_v5 = vadd.f32 %v980_v60, %v960_v58  ;;  %v989_v50 = vmul.f32 %v2090_v2, %v2408_v17  ;;  %v990_v13 = vmul.f32 %v2090_v2, %v2420_v46 }
  0x6b   : > { %v1055_v39 = vmax.f32 %v1039_v27, 0.0  ;;  %v1018_v51 = vmul.f32 %v2151_v7, %v995_v56  ;;  %v1614_v43 = vunpack.c.h.bf16 %v1612_v11  ;;  %v550_v19 = vstv %s549_s27 }
  0x6c   : > { %v1056_v47 = vmax.f32 %v1040_v33, 0.0  ;;  %v1019_v55 = vmul.f32 %v2151_v7, %v996_v5  ;;  %v1005_v23 = vadd.f32 %v989_v50, %v969_v32  ;;  %v1006_v54 = vadd.f32 %v990_v13, %v970_v49 }
  0x6d   : > { %v1041_v6 = vadd.f32 %v2170_v0, %v1018_v51  ;;  %v703_v44 = vmul.f32 %v2679_v61, %v1959_v59  ;;  %vm551_vm7 = vcmp.eq.s32.totalorder %v550_v19, 1  ;;  %v704_v9 = vmul.f32 %v2679_v61, %v2680_v4  ;;  %v2681_v51 = vld [vmem:[#allocation16_spill] sm:$0xff] }
  0x6e   : > { %v1071_v29 = vpack.c.bf16 %v1056_v47, %v1055_v39  ;;  %v1042_v26 = vadd.f32 %v2170_v0, %v1019_v55  ;;  %v1028_v52 = vmul.f32 %v2151_v7, %v1005_v23  ;;  %v1029_v18 = vmul.f32 %v2151_v7, %v1006_v54 }
  0x6f   : > { %v1057_v58 = vmax.f32 %v1041_v6, 0.0  ;;  %v552_v31 = vsel %vm551_vm7, 0.0, %v1613_v57  ;;  %v553_v45 = vsel %vm551_vm7, 0.0, %v1614_v43  ;;  %v755_v13 = vadd.f32 %v2681_v51, %v703_v44  ;;  %v2682_v57 = vld [vmem:[#allocation17_spill] sm:$0xff] }
  0x70   : > { %1633 = vmatprep.mubr.msk.bf16.mxu0 %vm1080_vm5, %v1071_v29  ;;  %v1058_v14 = vmax.f32 %v1042_v26, 0.0  ;;  %v1051_v30 = vadd.f32 %v2170_v0, %v1028_v52  ;;  %v568_v1 = vrot.slane %v552_v31, 7  ;;  %v578_v42 = vrot.slane %v553_v45, 7  ;;  %v2683_v6 = vld [vmem:[#allocation5_spill] sm:$0xff] }
  0x71   : > { %v1052_v59 = vadd.f32 %v2170_v0, %v1029_v18  ;;  %v631_v63 = vrot.slane %v552_v31, 1  ;;  %v641_v60 = vrot.slane %v553_v45, 1  ;;  %v756_v47 = vadd.f32 %v2682_v57, %v704_v9  ;;  %v2690_v57 = vld [vmem:[#allocation15_spill] sm:$0xff] }
  0x72   : > { %v1072_v11 = vpack.c.bf16 %v1058_v14, %v1057_v58  ;;  %v1067_v27 = vmax.f32 %v1051_v30, 0.0  ;;  %v589_v56 = vsel %vm579_vm2, %v568_v1, %v578_v42  ;;  %v599_v32 = vsel %vm579_vm2, %v578_v42, %v568_v1 }
  0x73   : > { %v1068_v33 = vmax.f32 %v1052_v59, 0.0  ;;  %v618_v5 = vsel %vm557_vm1, %v599_v32, 0.0  ;;  %v652_v49 = vsel %vm642_vm3, %v631_v63, %v641_v60  ;;  %v662_v50 = vsel %vm642_vm3, %v641_v60, %v631_v63  ;;  %v2686_v60 = vld [vmem:[#allocation12_spill] sm:$0xff]  ;;  %v2687_v32 = vld [vmem:[#allocation14_spill] sm:$0xff] }
  0x74   : > { %1634 = vmatmul.mubr.msk.bf16.vlgmr.msra.gmra.mxu0 %vm1080_vm5, %v1072_v11  ;;  %v682_v39 = vsel %vm621_vm4, %v662_v50, 0.0  ;;  %v775_v55 = vmul.f32 %v1862_v15, %v618_v5  ;;  %v776_v43 = vmul.f32 %v1862_v15, %v589_v56  ;;  %v811_v54 = vmul.f32 %v2683_v6, %v1865_v16  ;;  %v2688_v5 = vld [vmem:[#allocation9_spill] sm:$0xff]  ;;  %v2689_v50 = vld [vmem:[#allocation7_spill] sm:$0xff] }
  0x75   : > { %v1077_v23 = vpack.c.bf16 %v1068_v33, %v1067_v27  ;;  %v812_v19 = vmul.f32 %v2684_v3, %v1865_v16  ;;  %v847_v12 = vmul.f32 %v1900_v34, %v1871_v20  ;;  %v848_v44 = vmul.f32 %v1902_v35, %v1871_v20 }
  0x76   : > { %v791_v29 = vadd.f32 %v775_v55, %v755_v13  ;;  %v883_v26 = vmul.f32 %v1874_v21, %v552_v31  ;;  %v792_v52 = vadd.f32 %v776_v43, %v756_v47  ;;  %v884_v58 = vmul.f32 %v1874_v21, %v553_v45 }
  0x77   : > { %1645 = vmatprep.mubr.msk.bf16.mxu1 %vm1080_vm5, %v1077_v23  ;;  %v919_v18 = vmul.f32 %v1877_v22, %v2155_v36  ;;  %v920_v14 = vmul.f32 %v1877_v22, %v2164_v41  ;;  %v955_v34 = vmul.f32 %v2112_v48, %v2408_v17  ;;  %v956_v35 = vmul.f32 %v2112_v48, %v2420_v46  ;;  %v2685_v41 = vld [vmem:[#allocation10_spill] sm:$0xff] }
  0x78   : > { %v827_v30 = vadd.f32 %v811_v54, %v791_v29  ;;  %v991_v31 = vmul.f32 %v2090_v2, %v652_v49  ;;  %v828_v1 = vadd.f32 %v812_v19, %v792_v52  ;;  %v992_v42 = vmul.f32 %v2090_v2, %v682_v39 }
  0x79   : > { %v945_v45 = vmul.f32 %v2112_v48, %v2393_v8  ;;  %v946_v36 = vmul.f32 %v2112_v48, %v2402_v38  ;;  %v981_v63 = vmul.f32 %v2090_v2, %v2685_v41  ;;  %v982_v17 = vmul.f32 %v2090_v2, %v2686_v60 }
  0x7a   : > { %v863_v59 = vadd.f32 %v847_v12, %v827_v30  ;;  %v695_v46 = vmul.f32 %v2679_v61, %v2254_v62  ;;  %v864_v4 = vadd.f32 %v848_v44, %v828_v1  ;;  %v696_v27 = vmul.f32 %v2679_v61, %v2235_v10 }
  0x7b   : > { %v961_v9 = vadd.f32 %v945_v45, %v2368_v53  ;;  %v962_v11 = vadd.f32 %v946_v36, %v2370_v37  ;;  %v767_v49 = vmul.f32 %v1862_v15, %v2688_v5  ;;  %v768_v39 = vmul.f32 %v1862_v15, %v2689_v50 }
  0x7c   : > { %v899_v56 = vadd.f32 %v883_v26, %v863_v59  ;;  %v747_v33 = vadd.f32 %v2687_v32, %v695_v46  ;;  %v900_v51 = vadd.f32 %v884_v58, %v864_v4  ;;  %v748_v47 = vadd.f32 %v2690_v57, %v696_v27  ;;  %v2691_v26 = vld [vmem:[#allocation3_spill] sm:$0xff]  ;;  %v2692_v58 = vld [vmem:[#allocation4_spill] sm:$0xff] }
  0x7d   : > { %v997_v13 = vadd.f32 %v981_v63, %v961_v9  ;;  %v998_v62 = vadd.f32 %v982_v17, %v962_v11  ;;  %v803_v37 = vmul.f32 %v2203_v28, %v1865_v16  ;;  %v804_v10 = vmul.f32 %v2205_v40, %v1865_v16  ;;  %v2693_v17 = vld [vmem:[#allocation11_spill] sm:$0xff] }
  0x7e   : > { %v935_v53 = vadd.f32 %v919_v18, %v899_v56  ;;  %v783_v55 = vadd.f32 %v767_v49, %v747_v33  ;;  %v936_v61 = vadd.f32 %v920_v14, %v900_v51  ;;  %v784_v6 = vadd.f32 %v768_v39, %v748_v47  ;;  %v2544_v51 = vld [vmem:[%s2644_s7] ss:$0 sm:$0xff] }
  0x7f   : > { %v1020_v23 = vmul.f32 %v2151_v7, %v997_v13  ;;  %v1021_v43 = vmul.f32 %v2151_v7, %v998_v62  ;;  %v839_v3 = vmul.f32 %v1880_v24, %v1871_v20  ;;  %v840_v19 = vmul.f32 %v1882_v25, %v1871_v20 }
  0x80   : > { %v971_v15 = vadd.f32 %v955_v34, %v935_v53  ;;  %v819_v54 = vadd.f32 %v803_v37, %v783_v55  ;;  %v972_v29 = vadd.f32 %v956_v35, %v936_v61  ;;  %v820_v16 = vadd.f32 %v804_v10, %v784_v6 }
  0x81   : > { %v1043_v28 = vadd.f32 %v2170_v0, %v1020_v23  ;;  %v1044_v12 = vadd.f32 %v2170_v0, %v1021_v43  ;;  %v875_v52 = vmul.f32 %v2691_v26, %v1874_v21  ;;  %v876_v18 = vmul.f32 %v2692_v58, %v1874_v21 }
  0x82   : > { %v1007_v40 = vadd.f32 %v991_v31, %v971_v15  ;;  %v855_v44 = vadd.f32 %v839_v3, %v819_v54  ;;  %v1008_v14 = vadd.f32 %v992_v42, %v972_v29  ;;  %v856_v34 = vadd.f32 %v840_v19, %v820_v16 }
  0x83   : > { %v1059_v30 = vmax.f32 %v1043_v28, 0.0  ;;  %v1060_v24 = vmax.f32 %v1044_v12, 0.0  ;;  %v911_v35 = vmul.f32 %v1877_v22, %v2393_v8  ;;  %v912_v31 = vmul.f32 %v1877_v22, %v2402_v38  ;;  %v2694_v38 = vld [vmem:[#allocation13_spill] sm:$0xff] }
  0x84   : > { %v1030_v20 = vmul.f32 %v2151_v7, %v1007_v40  ;;  %v891_v25 = vadd.f32 %v875_v52, %v855_v44  ;;  %v1031_v1 = vmul.f32 %v2151_v7, %v1008_v14  ;;  %v892_v36 = vadd.f32 %v876_v18, %v856_v34 }
  0x85   : > { %v1073_v45 = vpack.c.bf16 %v1060_v24, %v1059_v30  ;;  %v947_v21 = vmul.f32 %v2112_v48, %v2685_v41  ;;  %v948_v63 = vmul.f32 %v2112_v48, %v2686_v60  ;;  %v983_v46 = vmul.f32 %v2090_v2, %v2693_v17 }
  0x86   : > { %v1053_v42 = vadd.f32 %v2170_v0, %v1030_v20  ;;  %v927_v59 = vadd.f32 %v911_v35, %v891_v25  ;;  %v1054_v8 = vadd.f32 %v2170_v0, %v1031_v1  ;;  %v928_v22 = vadd.f32 %v912_v31, %v892_v36 }
  0x87   : > { %1637 = vmatprep.mubr.msk.bf16.mxu0 %vm1080_vm5, %v1073_v45  ;;  %v984_v4 = vmul.f32 %v2090_v2, %v2694_v38 }
  0x88   : > { %v1069_v9 = vmax.f32 %v1053_v42, 0.0  ;;  %v963_v11 = vadd.f32 %v947_v21, %v927_v59  ;;  %v1070_v41 = vmax.f32 %v1054_v8, 0.0  ;;  %v964_v27 = vadd.f32 %v948_v63, %v928_v22 }
  0x8a   : > { %v999_v56 = vadd.f32 %v983_v46, %v963_v11  ;;  %v1078_v32 = vpack.c.bf16 %v1070_v41, %v1069_v9  ;;  %v1000_v33 = vadd.f32 %v984_v4, %v964_v27 }
  0x8c   : > { %v1022_v48 = vmul.f32 %v2151_v7, %v999_v56  ;;  %1646 = vmatmul.mubr.msk.bf16.gmra.mxu1 %vm1080_vm5, %v1078_v32  ;;  %v1023_v60 = vmul.f32 %v2151_v7, %v1000_v33  ;;  %v2549_v7 = vld [vmem:[%s2645_s8] ss:$0 sm:$0xff] }
  0x8e   : > { %v1045_v5 = vadd.f32 %v2170_v0, %v1022_v48  ;;  %v1046_v49 = vadd.f32 %v2170_v0, %v1023_v60 }
  0x90   : > { %v1061_v50 = vmax.f32 %v1045_v5, 0.0  ;;  %v1062_v2 = vmax.f32 %v1046_v49, 0.0 }
  0x92   : > { %v1074_v39 = vpack.c.bf16 %v1062_v2, %v1061_v50 }
  0x94   : > { %1638 = vmatmul.mubr.msk.bf16.gmra.mxu0 %vm1080_vm5, %v1074_v39 }
 0x110   : > { %v1643_v13 = vpop.f32.mrf.mxu1 }
 0x111   : > { %v1223_v62 = vmul.f32 %v1643_v13, %v2544_v51 }
 0x112   : > { %v1175_v0 = vpop.f32.mrf.mxu1 }
 0x113   : > { %v1246_v57 = vadd.f32 %v2549_v7, %v1223_v62  ;;  %v1221_v47 = vmul.f32 %v2544_v51, %v1175_v0 }
 0x114   : > { %v1644_v53 = vpop.f32.mrf.mxu1 }
 0x115   : > { %v1262_v55 = vmax.f32 %v1246_v57, 0.0  ;;  %v1244_v37 = vadd.f32 %v2549_v7, %v1221_v47  ;;  %v1224_v10 = vmul.f32 %v1644_v53, %v2544_v51 }
 0x116   : > { %v1178_v61 = vpop.f32.mrf.mxu1 }
 0x117   : > { %v1569_v23 = vpack.c.bf16 %v1262_v55, %v1262_v55  ;;  %v1260_v43 = vmax.f32 %v1244_v37, 0.0  ;;  %v1247_v6 = vadd.f32 %v2549_v7, %v1224_v10  ;;  %v1222_v15 = vmul.f32 %v2544_v51, %v1178_v61 }
 0x119   : > { %1343 = vst.msk [vmem:[%s2561_s22 + $0x28] sm:$0xf] %vm1332_vm8, %v1569_v23  ;;  %v1567_v54 = vpack.c.bf16 %v1260_v43, %v1260_v43  ;;  %v1263_v3 = vmax.f32 %v1247_v6, 0.0  ;;  %v1245_v19 = vadd.f32 %v2549_v7, %v1222_v15 }
 0x11b   : > { %1341 = vst.msk [vmem:[%s2561_s22 + $0x20] sm:$0xf] %vm1332_vm8, %v1567_v54  ;;  %v1570_v29 = vpack.c.bf16 %v1263_v3, %v1263_v3  ;;  %v1261_v28 = vmax.f32 %v1245_v19, 0.0 }
 0x11d   : > { %1344 = vst.msk [vmem:[%s2561_s22 + $0x2c] sm:$0xf] %vm1332_vm8, %v1570_v29  ;;  %v1568_v12 = vpack.c.bf16 %v1261_v28, %v1261_v28 }
 0x11f   : > { %1342 = vst.msk [vmem:[%s2561_s22 + $0x24] sm:$0xf] %vm1332_vm8, %v1568_v12 }
 0x134   : > { %v1635_v16 = vpop.f32.mrf.mxu0 }
 0x135   : > { %v1215_v40 = vmul.f32 %v1635_v16, %v2544_v51 }
 0x136   : > { %v1143_v44 = vpop.f32.mrf.mxu0 }
 0x137   : > { %v1238_v26 = vadd.f32 %v2549_v7, %v1215_v40  ;;  %v1213_v52 = vmul.f32 %v2544_v51, %v1143_v44 }
 0x138   : > { %v1636_v58 = vpop.f32.mrf.mxu0 }
 0x139   : > { %v1254_v18 = vmax.f32 %v1238_v26, 0.0  ;;  %v1236_v14 = vadd.f32 %v2549_v7, %v1213_v52  ;;  %v1216_v30 = vmul.f32 %v1636_v58, %v2544_v51 }
 0x13a   : > { %v1146_v24 = vpop.f32.mrf.mxu0 }
 0x13b   : > { %v1561_v34 = vpack.c.bf16 %v1254_v18, %v1254_v18  ;;  %v1252_v20 = vmax.f32 %v1236_v14, 0.0  ;;  %v1239_v25 = vadd.f32 %v2549_v7, %v1216_v30  ;;  %v1214_v35 = vmul.f32 %v2544_v51, %v1146_v24 }
 0x13d   : > { %1335 = vst.msk [vmem:[%s2561_s22 + $0x8] sm:$0xf] %vm1332_vm8, %v1561_v34  ;;  %v1559_v31 = vpack.c.bf16 %v1252_v20, %v1252_v20  ;;  %v1255_v1 = vmax.f32 %v1239_v25, 0.0  ;;  %v1237_v45 = vadd.f32 %v2549_v7, %v1214_v35 }
 0x13f   : > { %1333 = vst.msk [vmem:[%s2561_s22] sm:$0xf] %vm1332_vm8, %v1559_v31  ;;  %v1562_v36 = vpack.c.bf16 %v1255_v1, %v1255_v1  ;;  %v1253_v21 = vmax.f32 %v1237_v45, 0.0 }
 0x141   : > { %1336 = vst.msk [vmem:[%s2561_s22 + $0xc] sm:$0xf] %vm1332_vm8, %v1562_v36  ;;  %v1560_v42 = vpack.c.bf16 %v1253_v21, %v1253_v21 }
 0x143   : > { %1334 = vst.msk [vmem:[%s2561_s22 + $0x4] sm:$0xf] %vm1332_vm8, %v1560_v42 }
 0x14c   : > { %v1647_v59 = vpop.f32.mrf.mxu1 }
 0x14d   : > { %v1227_v63 = vmul.f32 %v1647_v59, %v2544_v51 }
 0x14e   : > { %v1191_v17 = vpop.f32.mrf.mxu1 }
 0x14f   : > { %v1250_v46 = vadd.f32 %v2549_v7, %v1227_v63  ;;  %v1225_v8 = vmul.f32 %v2544_v51, %v1191_v17 }
 0x150   : > { %v1648_v22 = vpop.f32.mrf.mxu1 }
 0x151   : > { %v1266_v38 = vmax.f32 %v1250_v46, 0.0  ;;  %v1248_v4 = vadd.f32 %v2549_v7, %v1225_v8  ;;  %v1228_v9 = vmul.f32 %v1648_v22, %v2544_v51 }
 0x152   : > { %v1194_v11 = vpop.f32.mrf.mxu1 }
 0x153   : > { %v1573_v41 = vpack.c.bf16 %v1266_v38, %v1266_v38  ;;  %v1264_v27 = vmax.f32 %v1248_v4, 0.0  ;;  %v1251_v56 = vadd.f32 %v2549_v7, %v1228_v9  ;;  %v1226_v32 = vmul.f32 %v2544_v51, %v1194_v11 }
 0x154   : > { %v1639_v33 = vpop.f32.mrf.mxu0 }
 0x155   : > { %1347 = vst.msk [vmem:[%s2561_s22 + $0x38] sm:$0xf] %vm1332_vm8, %v1573_v41  ;;  %v1571_v48 = vpack.c.bf16 %v1264_v27, %v1264_v27  ;;  %v1219_v60 = vmul.f32 %v1639_v33, %v2544_v51  ;;  %v1267_v5 = vmax.f32 %v1251_v56, 0.0  ;;  %v1249_v49 = vadd.f32 %v2549_v7, %v1226_v32 }
 0x156   : > { %v1159_v50 = vpop.f32.mrf.mxu0 }
 0x157   : > { %1345 = vst.msk [vmem:[%s2561_s22 + $0x30] sm:$0xf] %vm1332_vm8, %v1571_v48  ;;  %v1242_v2 = vadd.f32 %v2549_v7, %v1219_v60  ;;  %v1574_v39 = vpack.c.bf16 %v1267_v5, %v1267_v5  ;;  %v1217_v13 = vmul.f32 %v2544_v51, %v1159_v50  ;;  %v1265_v62 = vmax.f32 %v1249_v49, 0.0 }
 0x158   : > { %v1640_v0 = vpop.f32.mrf.mxu0 }
 0x159   : > { %v1258_v57 = vmax.f32 %v1242_v2, 0.0  ;;  %1348 = vst.msk [vmem:[%s2561_s22 + $0x3c] sm:$0xf] %vm1332_vm8, %v1574_v39  ;;  %v1240_v47 = vadd.f32 %v2549_v7, %v1217_v13  ;;  %v1572_v53 = vpack.c.bf16 %v1265_v62, %v1265_v62  ;;  %v1220_v55 = vmul.f32 %v1640_v0, %v2544_v51 }
 0x15a   : > { %v1162_v37 = vpop.f32.mrf.mxu0 }
 0x15b   : > { %v1565_v10 = vpack.c.bf16 %v1258_v57, %v1258_v57  ;;  %v1256_v61 = vmax.f32 %v1240_v47, 0.0  ;;  %1346 = vst.msk [vmem:[%s2561_s22 + $0x34] sm:$0xf] %vm1332_vm8, %v1572_v53  ;;  %v1243_v23 = vadd.f32 %v2549_v7, %v1220_v55  ;;  %v1218_v43 = vmul.f32 %v2544_v51, %v1162_v37 }
 0x15d   : > { %1339 = vst.msk [vmem:[%s2561_s22 + $0x18] sm:$0xf] %vm1332_vm8, %v1565_v10  ;;  %v1563_v6 = vpack.c.bf16 %v1256_v61, %v1256_v61  ;;  %v1259_v15 = vmax.f32 %v1243_v23, 0.0  ;;  %v1241_v54 = vadd.f32 %v2549_v7, %v1218_v43 }
 0x15f   : > { %1337 = vst.msk [vmem:[%s2561_s22 + $0x10] sm:$0xf] %vm1332_vm8, %v1563_v6  ;;  %v1566_v3 = vpack.c.bf16 %v1259_v15, %v1259_v15  ;;  %v1257_v19 = vmax.f32 %v1241_v54, 0.0 }
 0x161   : > { %1340 = vst.msk [vmem:[%s2561_s22 + $0x1c] sm:$0xf] %vm1332_vm8, %v1566_v3  ;;  %v1564_v29 = vpack.c.bf16 %v1257_v19, %v1257_v19 }
 0x163   : > { %1338 = vst.msk [vmem:[%s2561_s22 + $0x14] sm:$0xf] %vm1332_vm8, %v1564_v29 }
 0x164 PF: > { %s19_s13 = sadd.s32 1, %s1731_s13   ;;  %s2695_s30 = smov %s1723_s11 }
 0x165   : > { %p16_p12 = scmp.ge.s32.totalorder %s19_s13, 6   ;;  %s2696_s10 = smov %s1727_s12 }
 0x166   : > { %s2697_s11 = smov %s2700_s14  ;;  %s2698_s12 = smov %s2704_s15 }
 0x167   :  { %18 = sbr.rel (!%p16_p12) target bundleno = 3 (0x3), region = 92 }

// kernel: block_forward.3
= control target key start
LH: loop header
LB: loop body
LE: loop exit
PB: predicated region body
PF: predicated region fallthrough
CT: control target
= control target key end

     0   :  { %s1803_s30 = smov 0   ;;  %s1805_s10 = smov 0   ;;  %s2653_s0 = inlined_call_operand.vmem [shape: bf16[2,16,16,4], index: 0, kind: input, shape index: {}, may-alias: {0,1,2}]   ;;  %s2654_s1 = inlined_call_operand.vmem [shape: bf16[2,16,16,4], index: 1, kind: input, shape index: {}, may-alias: {0,1,2}]   ;;  %s2655_s2 = inlined_call_operand.vmem [shape: bf16[2,16,16,4], index: 2, kind: input, shape index: {}, may-alias: {0,1,2}]   ;;  %s2656_s3 = inlined_call_operand.vmem [shape: f32[9,4], index: 3, kind: input, shape index: {}]   ;;  %s2657_s4 = inlined_call_operand.vmem [shape: f32[1,1,4], index: 4, kind: input, shape index: {}]   ;;  %s2658_s5 = inlined_call_operand.vmem [shape: f32[1,1,4], index: 5, kind: input, shape index: {}]   ;;  %s2659_s6 = inlined_call_operand.vmem [shape: bf16[4,8], index: 6, kind: input, shape index: {}]   ;;  %s2660_s7 = inlined_call_operand.vmem [shape: f32[1,8], index: 7, kind: input, shape index: {}]   ;;  %s2661_s8 = inlined_call_operand.vmem [shape: f32[1,8], index: 8, kind: input, shape index: {}]   ;;  %s2662_s9 = inlined_call_operand.vmem [shape: bf16[2,16,16,8], index: 9, kind: output, shape index: {}]  }
   0x1   :  { %s1807_s11 = smov 0   ;;  %s1809_s12 = smov 0  }
   0x2   :  { %s1811_s13 = smov 0  }
   0x3 LB: > { %s28_s14 = sadd.s32 1, %s1743_s11  ;;  %s31_s15 = sadd.s32 1, %s1747_s12  ;;  %s1751_s13 = sphi %s1811_s13, %s19_s13   ;;  %s1747_s12 = sphi %s1809_s12, %s2714_s12   ;;  %s1743_s11 = sphi %s1807_s11, %s2713_s11   ;;  %s1739_s10 = sphi %s1805_s10, %s2712_s10   ;;  %s1735_s30 = sphi %s1803_s30, %s2711_s30  }
   0x4   : > { %p29_p0 = scmp.ge.s32.totalorder %s28_s14, 2  ;;  %p1520_p1 = scmp.ge.s32.totalorder %s1751_s13, 1 }
   0x5   : > { %p373_p2 = scmp.lt.s32.totalorder %s1751_s13, 5 }
   0x6   : > { %s2716_s14 = smov (%p29_p0, %s28_s14), 0  ;;  %s2718_s15 = smov (!%p29_p0, %s31_s15), %s1747_s12 }
   0x7   : > { %p374_p3 = pnand %p1520_p1, %p373_p2  ;;  %p33_p4 = scmp.ge.s32.totalorder %s2718_s15, 2 }
   0x9   : > { %s2720_s15 = smov (%p33_p4, %s2718_s15), 0  ;;  %377 = sbr.rel (%p374_p3) target bundleno = 361 (0x169), region = 56 }
   0xe   : > { %v1099_v0 = vld [vmem:[%s2659_s6] sm:$0x3]  ;;  %vm1125_vm0 = vcmask 1041408   ;;  %s1839_s18 = sshll.u32 %s1735_s30, 3  ;;  %p449_p5 = scmp.lt.s32.totalorder %s1739_s10, 1  ;;  %v574_v1 = vlaneseq  ;;  %vm1100_vm5 = vcmask 31744  }
   0xf   : > { %1672 = vmatprep.subr.msk.bf16.mxu1 %vm1125_vm0, %v1099_v0  ;;  %v1127_v2 = vsel %vm1125_vm0, %v1099_v0, 0  ;;  %p465_p6 = scmp.lt.s32.totalorder %s1839_s18, 15  ;;  %1671 = vmatprep.subr.msk.bf16.mxu0 %vm1125_vm0, %v1099_v0  ;;  %v1850_v4 = vld [vmem:[%s2656_s3] sm:$0xff]  ;;  %s474_s29 = sadd.s32 8, %s1839_s18  ;;  %vm1352_vm8 = vcmask 60416  }
  0x10   : > { %1670 = vmatpush3.bf16.msra.mxu1 %v1127_v2  ;;  %s2722_s10 = smov (!%p449_p5, %s1739_s10), 1  ;;  %v1842_v3 = vshrl.u32 %v574_v1, 7  ;;  %1652 = vmatpush3.bf16.msra.mxu0 %v1127_v2  ;;  %p1916_p7 = scmp.lt.s32.totalorder %s474_s29, 15 }
  0x11   : > { %s466_s19 = scalar_select %p465_p6, %s1839_s18, 15 }
  0x12   : > { %s1845_s20 = sshll.u32 %s2722_s10, 5  ;;  %v707_v5 = vsub.s32 0, %v1842_v3  ;;  %v743_v6 = vsub.s32 3, %v1842_v3  ;;  %v779_v7 = vsub.s32 6, %v1842_v3  ;;  %v815_v8 = vsub.s32 1, %v1842_v3  ;;  %s2724_s29 = smov (!%p1916_p7, %s474_s29), 15 }
  0x13   : > { %s1532_s21 = sshll.u32 %s466_s19, 1  ;;  %v851_v9 = vsub.s32 4, %v1842_v3  ;;  %v887_v10 = vsub.s32 7, %v1842_v3  ;;  %v923_v11 = vsub.s32 2, %v1842_v3  ;;  %v1864_v12 = vadd.s32 8, %v1842_v3  ;;  %s2726_s29 = smov (!%p1916_p7, %s2724_s29), 15 }
  0x14   : > { %s1857_s24 = sadd.s32 %s1532_s21, %s1845_s20  ;;  %vm599_vm1 = vcmp.lt.s32.totalorder %v1842_v3, 1  ;;  %v1875_v13 = vrot.slane %v1850_v4, %v707_v5  ;;  %v1878_v14 = vrot.slane %v1850_v4, %v743_v6  ;;  %v1881_v15 = vrot.slane %v1850_v4, %v779_v7  ;;  %s1989_s16 = sadd.s32 4294967295, %s1839_s18 }
  0x15   : > { %s1534_s25 = sshll.u32 %s1857_s24, 2  ;;  %v1884_v16 = vrot.slane %v1850_v4, %v815_v8  ;;  %vm577_vm2 = vcmp.ge.s32.totalorder %v1842_v3, 1  ;;  %v1891_v20 = vrot.slane %v1850_v4, %v851_v9  ;;  %v1894_v21 = vrot.slane %v1850_v4, %v887_v10  ;;  %s1991_s17 = sshll.u32 %s2726_s29, 1 }
  0x16   : > { %s1872_s28 = scalar_lea.vmem %s2654_s1, %s1534_s25  ;;  %2678 = vst [vmem:[#allocation2_spill] sm:$0xff] %v1875_v13  ;;  %v1897_v22 = vrot.slane %v1850_v4, %v923_v11  ;;  %v959_v23 = vsub.s32 5, %v1842_v3  ;;  %vm662_vm3 = vcmp.lt.s32.totalorder %v1842_v3, 7  ;;  %vm641_vm4 = vcmp.lt.s32.totalorder %v1864_v12, 15  ;;  %s483_s19 = sadd.s32 %s1991_s17, %s1845_s20 }
  0x17   : > { %v1637_v17 = vld [vmem:[%s1872_s28 + $0x18] sm:$0xff]   ;;  %v1638_v18 = vld [vmem:[%s1872_s28 + $0x20] sm:$0xff]   ;;  %v1639_v19 = vld [vmem:[%s1872_s28 + $0x28] sm:$0xff]   ;;  %p447_p8 = scmp.gt.s32.totalorder %s1989_s16, 0  ;;  %p1523_p9 = scmp.lt.s32.totalorder %s1989_s16, 15 }
  0x18   : > { %v1609_v24 = vunpack.c.l.bf16 %v1637_v17  ;;  %v1610_v25 = vunpack.c.h.bf16 %v1637_v17  ;;  %v1613_v26 = vunpack.c.l.bf16 %v1638_v18  ;;  %v1614_v27 = vunpack.c.h.bf16 %v1638_v18  ;;  %v1640_v28 = vld [vmem:[%s1872_s28 + $0x30] sm:$0xff]   ;;  %v1641_v29 = vld [vmem:[%s1872_s28 + $0x38] sm:$0xff]   ;;  %p502_p10 = scmp.eq.s32.totalorder %s1735_s30, 0  ;;  %p503_p11 = scmp.eq.s32.totalorder %s1735_s30, 1 }
  0x19   : > { %v1617_v30 = vunpack.c.l.bf16 %v1639_v19  ;;  %v1618_v31 = vunpack.c.h.bf16 %v1639_v19  ;;  %v1621_v32 = vunpack.c.l.bf16 %v1640_v28  ;;  %v1622_v33 = vunpack.c.h.bf16 %v1640_v28  ;;  %s448_s18 = scalar_select %p447_p8, %s1989_s16, 0 }
  0x1a   : > { %v1625_v34 = vunpack.c.l.bf16 %v1641_v29  ;;  %v1626_v35 = vunpack.c.h.bf16 %v1641_v29  ;;  %v1902_v36 = vmax.f32 %v1609_v24, 0.0  ;;  %v1904_v37 = vmax.f32 %v1610_v25, 0.0  ;;  %s2577_s22 = scalar_lea.vmem %s2662_s9, %s1534_s25 }
  0x1b   : > { %v1907_v38 = vmax.f32 %v1613_v26, 0.0  ;;  %v1909_v39 = vmax.f32 %v1614_v27, 0.0  ;;  %v1911_v40 = vmax.f32 %v1617_v30, 0.0  ;;  %v1913_v41 = vmax.f32 %v1618_v31, 0.0  ;;  %s2728_s18 = smov (!%p1523_p9, %s448_s18), 15 }
  0x1c   : > { %v1920_v42 = vmax.f32 %v1621_v32, 0.0  ;;  %v1922_v43 = vmax.f32 %v1622_v33, 0.0  ;;  %v1924_v44 = vmax.f32 %v1625_v34, 0.0  ;;  %v1926_v45 = vmax.f32 %v1626_v35, 0.0  ;;  %s1528_s21 = sshll.u32 %s2728_s18, 1 }
  0x1d   : > { %2679 = vst [vmem:[#allocation3_spill] sm:$0xff] %v1907_v38  ;;  %2680 = vst [vmem:[#allocation4_spill] sm:$0xff] %v1909_v39  ;;  %v583_v46 = vrot.slane %v1902_v36, 7  ;;  %v584_v47 = vrot.slane %v1907_v38, 7  ;;  %v585_v48 = vrot.slane %v1911_v40, 7  ;;  %v593_v49 = vrot.slane %v1904_v37, 7  ;;  %s2130_s26 = sadd.s32 %s1845_s20, %s1528_s21 }
  0x1e   : > { %2682 = vst [vmem:[#allocation5_spill] sm:$0xff] %v1920_v42  ;;  %2683 = vst [vmem:[#allocation6_spill] sm:$0xff] %v1922_v43  ;;  %v586_v50 = vrot.slane %v1920_v42, 7  ;;  %v587_v51 = vrot.slane %v1924_v44, 7  ;;  %v594_v52 = vrot.slane %v1909_v39, 7  ;;  %v595_v53 = vrot.slane %v1913_v41, 7 }
  0x1f   : > { %v596_v54 = vrot.slane %v1922_v43, 7  ;;  %v597_v55 = vrot.slane %v1926_v45, 7  ;;  %v1941_v56 = vsel %vm599_vm1, %v583_v46, %v593_v49  ;;  %v614_v57 = vsel %vm599_vm1, %v593_v49, %v583_v46  ;;  %s1530_s27 = sshll.u32 %s2130_s26, 2 }
  0x20   : > { %v1949_v58 = vsel %vm599_vm1, %v584_v47, %v594_v52  ;;  %v606_v59 = vsel %vm599_vm1, %v585_v48, %v595_v53  ;;  %v615_v60 = vsel %vm599_vm1, %v594_v52, %v584_v47  ;;  %v616_v61 = vsel %vm599_vm1, %v595_v53, %v585_v48  ;;  %s457_s21 = scalar_lea.vmem %s2653_s0, %s1530_s27 }
  0x21   : > { %2684 = vst [vmem:[#allocation7_spill] sm:$0xff] %v1949_v58  ;;  %v1959_v62 = vsel %vm599_vm1, %v586_v50, %v596_v54  ;;  %v608_v63 = vsel %vm599_vm1, %v587_v51, %v597_v55  ;;  %v617_v0 = vsel %vm599_vm1, %v596_v54, %v586_v50  ;;  %v618_v1 = vsel %vm599_vm1, %v597_v55, %v587_v51  ;;  %s540_s26 = scalar_select %p502_p10, 1, 0 }
  0x22   : > { %2685 = vst [vmem:[#allocation8_spill] sm:$0xff] %v1959_v62  ;;  %v1971_v2 = vsel %vm577_vm2, %v614_v57, 0.0  ;;  %v1975_v5 = vsel %vm577_vm2, %v615_v60, 0.0  ;;  %v632_v6 = vsel %vm577_vm2, %v616_v61, 0.0  ;;  %v1981_v7 = vsel %vm577_vm2, %v617_v0, 0.0 }
  0x23   : > { %2686 = vst [vmem:[#allocation9_spill] sm:$0xff] %v1975_v5  ;;  %v636_v8 = vsel %vm577_vm2, %v618_v1, 0.0  ;;  %v646_v9 = vrot.slane %v1902_v36, 1  ;;  %v647_v10 = vrot.slane %v1907_v38, 1  ;;  %v648_v11 = vrot.slane %v1911_v40, 1 }
  0x24   : > { %v656_v17 = vrot.slane %v1904_v37, 1  ;;  %v657_v18 = vrot.slane %v1909_v39, 1  ;;  %v658_v19 = vrot.slane %v1913_v41, 1  ;;  %v717_v24 = vmul.f32 %v1875_v13, %v1971_v2  ;;  %s549_s27 = scalar_select %p503_p11, 1, 0 }
  0x25   : > { %v718_v25 = vmul.f32 %v1875_v13, %v1941_v56  ;;  %v2004_v26 = vmul.f32 %v1875_v13, %v1975_v5  ;;  %v2008_v27 = vmul.f32 %v1875_v13, %v1949_v58  ;;  %v721_v28 = vmul.f32 %v1875_v13, %v632_v6 }
  0x26   : > { %v2013_v29 = vsel %vm662_vm3, %v646_v9, %v656_v17  ;;  %v2017_v30 = vsel %vm662_vm3, %v647_v10, %v657_v18  ;;  %v2021_v31 = vsel %vm662_vm3, %v648_v11, %v658_v19  ;;  %v677_v32 = vsel %vm662_vm3, %v656_v17, %v646_v9 }
  0x27   : > { %2687 = vst [vmem:[#allocation10_spill] sm:$0xff] %v2013_v29  ;;  %2688 = vst [vmem:[#allocation11_spill] sm:$0xff] %v2017_v30  ;;  %v678_v33 = vsel %vm662_vm3, %v657_v18, %v647_v10  ;;  %v679_v34 = vsel %vm662_vm3, %v658_v19, %v648_v11  ;;  %v2032_v35 = vsel %vm641_vm4, %v677_v32, 0.0  ;;  %v722_v46 = vmul.f32 %v1875_v13, %v606_v59 }
  0x28   : > { %2689 = vst [vmem:[#allocation12_spill] sm:$0xff] %v2032_v35  ;;  %v2037_v47 = vsel %vm641_vm4, %v678_v33, 0.0  ;;  %v2041_v48 = vsel %vm641_vm4, %v679_v34, 0.0  ;;  %v2045_v49 = vmul.f32 %v1878_v14, %v1971_v2  ;;  %v2049_v50 = vmul.f32 %v1878_v14, %v1941_v56 }
  0x29   : > { %2690 = vst [vmem:[#allocation13_spill] sm:$0xff] %v2037_v47  ;;  %v753_v51 = vmul.f32 %v1878_v14, %v1975_v5  ;;  %v754_v52 = vmul.f32 %v1878_v14, %v1949_v58  ;;  %v2056_v53 = vmul.f32 %v1878_v14, %v632_v6  ;;  %v2059_v54 = vmul.f32 %v1878_v14, %v606_v59 }
  0x2a   : > { %2691 = vst [vmem:[#allocation14_spill] sm:$0xff] %v2045_v49  ;;  %2692 = vst [vmem:[#allocation15_spill] sm:$0xff] %v2049_v50  ;;  %v757_v55 = vmul.f32 %v1878_v14, %v1981_v7  ;;  %v758_v57 = vmul.f32 %v1878_v14, %v1959_v62  ;;  %v2067_v60 = vmul.f32 %v1878_v14, %v636_v8 }
  0x2b   : > { %v2070_v61 = vmul.f32 %v1878_v14, %v608_v63  ;;  %v769_v0 = vadd.f32 %v753_v51, %v717_v24  ;;  %v770_v1 = vadd.f32 %v754_v52, %v718_v25  ;;  %v789_v9 = vmul.f32 %v1881_v15, %v632_v6 }
  0x2c   : > { %2693 = vst [vmem:[#allocation16_spill] sm:$0xff] %v2067_v60  ;;  %v790_v10 = vmul.f32 %v1881_v15, %v606_v59  ;;  %v773_v11 = vadd.f32 %v757_v55, %v721_v28  ;;  %v774_v17 = vadd.f32 %v758_v57, %v722_v46  ;;  %v793_v18 = vmul.f32 %v1881_v15, %v636_v8 }
  0x2d   : > { %2694 = vst [vmem:[#allocation17_spill] sm:$0xff] %v2070_v61  ;;  %v794_v19 = vmul.f32 %v1881_v15, %v608_v63  ;;  %v805_v32 = vadd.f32 %v789_v9, %v769_v0  ;;  %v825_v34 = vmul.f32 %v1884_v16, %v1902_v36  ;;  %v826_v24 = vmul.f32 %v1884_v16, %v1904_v37 }
  0x2e   : > { %v806_v33 = vadd.f32 %v790_v10, %v770_v1  ;;  %v809_v51 = vadd.f32 %v793_v18, %v773_v11  ;;  %v829_v6 = vmul.f32 %v1884_v16, %v1911_v40  ;;  %v830_v59 = vmul.f32 %v1884_v16, %v1913_v41 }
  0x2f   : > { %v810_v25 = vadd.f32 %v794_v19, %v774_v17  ;;  %v841_v63 = vadd.f32 %v825_v34, %v805_v32  ;;  %v861_v28 = vmul.f32 %v1891_v20, %v1907_v38  ;;  %v862_v46 = vmul.f32 %v1891_v20, %v1909_v39 }
  0x30   : > { %v842_v8 = vadd.f32 %v826_v24, %v806_v33  ;;  %v845_v52 = vadd.f32 %v829_v6, %v809_v51  ;;  %v865_v57 = vmul.f32 %v1891_v20, %v1920_v42  ;;  %v866_v0 = vmul.f32 %v1891_v20, %v1922_v43  ;;  %v2111_v33 = vld [vmem:[%s2656_s3 + $0x8] ss:$0 sm:$0xff] }
  0x31   : > { %v846_v55 = vadd.f32 %v830_v59, %v810_v25  ;;  %v877_v1 = vadd.f32 %v861_v28, %v841_v63  ;;  %v897_v10 = vmul.f32 %v1894_v21, %v1911_v40  ;;  %v898_v11 = vmul.f32 %v1894_v21, %v1913_v41 }
  0x32   : > { %v878_v9 = vadd.f32 %v862_v46, %v842_v8  ;;  %v881_v17 = vadd.f32 %v865_v57, %v845_v52  ;;  %v901_v19 = vmul.f32 %v1894_v21, %v1924_v44  ;;  %v902_v32 = vmul.f32 %v1894_v21, %v1926_v45 }
  0x33   : > { %v882_v18 = vadd.f32 %v866_v0, %v846_v55  ;;  %v913_v34 = vadd.f32 %v897_v10, %v877_v1  ;;  %v933_v51 = vmul.f32 %v1897_v22, %v2013_v29  ;;  %v934_v25 = vmul.f32 %v1897_v22, %v2032_v35 }
  0x34   : > { %v914_v24 = vadd.f32 %v898_v11, %v878_v9  ;;  %v917_v6 = vadd.f32 %v901_v19, %v881_v17  ;;  %v2119_v63 = vmul.f32 %v1897_v22, %v2017_v30  ;;  %v2123_v8 = vmul.f32 %v1897_v22, %v2037_v47 }
  0x35   : > { %v918_v59 = vadd.f32 %v902_v32, %v882_v18  ;;  %v937_v28 = vmul.f32 %v1897_v22, %v2021_v31  ;;  %v938_v46 = vmul.f32 %v1897_v22, %v2041_v48  ;;  %v949_v52 = vadd.f32 %v933_v51, %v913_v34 }
  0x36   : > { %v950_v55 = vadd.f32 %v934_v25, %v914_v24  ;;  %v2135_v57 = vrot.slane %v1850_v4, %v959_v23  ;;  %v1005_v0 = vmul.f32 %v2111_v33, %v2021_v31  ;;  %v1006_v1 = vmul.f32 %v2111_v33, %v2041_v48 }
  0x37   : > { %v649_v9 = vrot.slane %v1920_v42, 1  ;;  %v2142_v10 = vadd.f32 %v937_v28, %v917_v6  ;;  %v2144_v11 = vadd.f32 %v938_v46, %v918_v59  ;;  %v659_v17 = vrot.slane %v1922_v43, 1  ;;  %v2179_v6 = vld [vmem:[%s2657_s4] ss:$0 sm:$0xff] }
  0x38   : > { %v771_v18 = vadd.f32 %v2056_v53, %v2004_v26  ;;  %v969_v4 = vmul.f32 %v2135_v57, %v2017_v30  ;;  %v970_v23 = vmul.f32 %v2135_v57, %v2037_v47  ;;  %v971_v19 = vmul.f32 %v2135_v57, %v2021_v31 }
  0x39   : > { %v2157_v32 = vmul.f32 %v2135_v57, %v2041_v48  ;;  %v2162_v34 = vsel %vm662_vm3, %v649_v9, %v659_v17  ;;  %v680_v26 = vsel %vm662_vm3, %v659_v17, %v649_v9  ;;  %v772_v53 = vadd.f32 %v2059_v54, %v2008_v27  ;;  %v1596_v17 = vld [vmem:[%s1872_s28] sm:$0xff]  }
  0x3a   : > { %v791_v24 = vmul.f32 %v1881_v15, %v1981_v7  ;;  %v985_v31 = vadd.f32 %v969_v4, %v949_v52  ;;  %v986_v51 = vadd.f32 %v970_v23, %v950_v55  ;;  %v2172_v48 = vsel %vm641_vm4, %v680_v26, 0.0  ;;  %v2198_v4 = vld [vmem:[%s2658_s5] ss:$0 sm:$0xff] }
  0x3b   : > { %v792_v25 = vmul.f32 %v1881_v15, %v1959_v62  ;;  %v827_v54 = vmul.f32 %v1884_v16, %v1907_v38  ;;  %v828_v59 = vmul.f32 %v1884_v16, %v1909_v39  ;;  %v863_v28 = vmul.f32 %v1891_v20, %v1911_v40 }
  0x3c   : > { %v807_v27 = vadd.f32 %v791_v24, %v771_v18  ;;  %v1021_v46 = vadd.f32 %v1005_v0, %v985_v31  ;;  %v1022_v52 = vadd.f32 %v1006_v1, %v986_v51  ;;  %v864_v9 = vmul.f32 %v1891_v20, %v1913_v41  ;;  %v1635_v18 = vld [vmem:[%s1872_s28 + $0x8] sm:$0xff]   ;;  %v1636_v31 = vld [vmem:[%s1872_s28 + $0x10] sm:$0xff]   ;;  %v1628_v51 = vld [vmem:[%s457_s21] sm:$0xff]   ;;  %s1541_s28 = sshll.u32 %s483_s19, 2 }
  0x3d   : > { %v808_v55 = vadd.f32 %v792_v25, %v772_v53  ;;  %v899_v23 = vmul.f32 %v1894_v21, %v1920_v42  ;;  %v900_v0 = vmul.f32 %v1894_v21, %v1922_v43  ;;  %v1007_v1 = vmul.f32 %v2111_v33, %v2162_v34  ;;  %s485_s19 = scalar_lea.vmem %s2655_s2, %s1541_s28 }
  0x3e   : > { %v843_v40 = vadd.f32 %v827_v54, %v807_v27  ;;  %v1044_v41 = vmul.f32 %v2179_v6, %v1021_v46  ;;  %v1045_v26 = vmul.f32 %v2179_v6, %v1022_v52  ;;  %v1008_v24 = vmul.f32 %v2111_v33, %v2172_v48 }
  0x3f   : > { %v844_v53 = vadd.f32 %v828_v59, %v808_v55  ;;  %v1597_v27 = vunpack.c.l.bf16 %v1596_v17  ;;  %v1598_v54 = vunpack.c.h.bf16 %v1596_v17  ;;  %v1601_v47 = vunpack.c.l.bf16 %v1635_v18 }
  0x40   : > { %v879_v25 = vadd.f32 %v863_v28, %v843_v40  ;;  %v1067_v30 = vadd.f32 %v2198_v4, %v1044_v41  ;;  %v1068_v39 = vadd.f32 %v2198_v4, %v1045_v26  ;;  %v1602_v46 = vunpack.c.h.bf16 %v1635_v18 }
  0x41   : > { %v880_v38 = vadd.f32 %v864_v9, %v844_v53  ;;  %v1605_v52 = vunpack.c.l.bf16 %v1636_v31  ;;  %v1606_v59 = vunpack.c.h.bf16 %v1636_v31  ;;  %v1629_v55 = vunpack.c.l.bf16 %v1628_v51 }
  0x42   : > { %v915_v58 = vadd.f32 %v899_v23, %v879_v25  ;;  %v1083_v50 = vmax.f32 %v1067_v30, 0.0  ;;  %v1084_v49 = vmax.f32 %v1068_v39, 0.0  ;;  %v1630_v35 = vunpack.c.h.bf16 %v1628_v51 }
  0x43   : > { %v916_v5 = vadd.f32 %v900_v0, %v880_v38  ;;  %v541_v17 = vstv %s540_s26  ;;  %v2216_v40 = vmax.f32 %v1597_v27, 0.0  ;;  %v2218_v29 = vmax.f32 %v1598_v54, 0.0 }
  0x44   : > { %v951_v28 = vadd.f32 %v2119_v63, %v915_v58  ;;  %v1095_v41 = vpack.c.bf16 %v1084_v49, %v1083_v50  ;;  %vm542_vm6 = vcmp.eq.s32.totalorder %v541_v17, 1  ;;  %v2221_v9 = vmax.f32 %v1601_v47, 0.0 }
  0x45   : > { %v952_v26 = vadd.f32 %v2123_v8, %v916_v5  ;;  %v543_v23 = vsel %vm542_vm6, 0.0, %v1629_v55  ;;  %v544_v53 = vsel %vm542_vm6, 0.0, %v1630_v35  ;;  %v2223_v30 = vmax.f32 %v1602_v46, 0.0 }
  0x46   : > { %v987_v18 = vadd.f32 %v971_v19, %v951_v28  ;;  %1661 = vmatprep.mubr.msk.bf16.mxu1 %vm1100_vm5, %v1095_v41  ;;  %v2227_v39 = vmax.f32 %v543_v23, 0.0  ;;  %v2229_v58 = vmax.f32 %v544_v53, 0.0  ;;  %v2231_v63 = vmax.f32 %v1605_v52, 0.0 }
  0x47   : > { %v988_v38 = vadd.f32 %v2157_v32, %v952_v26  ;;  %v2233_v5 = vmax.f32 %v1606_v59, 0.0  ;;  %v580_v47 = vrot.slane %v2216_v40, 7  ;;  %v581_v50 = vrot.slane %v2221_v9, 7 }
  0x48   : > { %v1023_v49 = vadd.f32 %v1007_v1, %v987_v18  ;;  %v579_v8 = vrot.slane %v2227_v39, 7  ;;  %v582_v19 = vrot.slane %v2231_v63, 7  ;;  %v589_v32 = vrot.slane %v2229_v58, 7 }
  0x49   : > { %v1024_v35 = vadd.f32 %v1008_v24, %v988_v38  ;;  %v590_v31 = vrot.slane %v2218_v29, 7  ;;  %v591_v51 = vrot.slane %v2223_v30, 7  ;;  %v592_v1 = vrot.slane %v2233_v5, 7 }
  0x4a   : > { %v1046_v0 = vmul.f32 %v2179_v6, %v1023_v49  ;;  %v600_v27 = vsel %vm599_vm1, %v579_v8, %v589_v32  ;;  %v610_v24 = vsel %vm599_vm1, %v589_v32, %v579_v8  ;;  %v642_v54 = vrot.slane %v2227_v39, 1 }
  0x4b   : > { %v1047_v25 = vmul.f32 %v2179_v6, %v1024_v35  ;;  %v601_v52 = vsel %vm599_vm1, %v580_v47, %v590_v31  ;;  %v602_v59 = vsel %vm599_vm1, %v581_v50, %v591_v51  ;;  %v2257_v55 = vsel %vm599_vm1, %v582_v19, %v592_v1 }
  0x4c   : > { %v1069_v46 = vadd.f32 %v2198_v4, %v1046_v0  ;;  %v611_v17 = vsel %vm599_vm1, %v590_v31, %v580_v47  ;;  %v612_v41 = vsel %vm599_vm1, %v591_v51, %v581_v50  ;;  %v613_v26 = vsel %vm599_vm1, %v592_v1, %v582_v19 }
  0x4d   : > { %v1070_v28 = vadd.f32 %v2198_v4, %v1047_v25  ;;  %v620_v23 = vsel %vm577_vm2, %v610_v24, 0.0  ;;  %v622_v53 = vsel %vm577_vm2, %v611_v17, 0.0  ;;  %v624_v38 = vsel %vm577_vm2, %v612_v41, 0.0 }
  0x4e   : > { %v1085_v18 = vmax.f32 %v1069_v46, 0.0  ;;  %v2274_v47 = vsel %vm577_vm2, %v613_v26, 0.0  ;;  %v643_v50 = vrot.slane %v2216_v40, 1  ;;  %v644_v35 = vrot.slane %v2221_v9, 1 }
  0x4f   : > { %v1086_v49 = vmax.f32 %v1070_v28, 0.0  ;;  %v652_v8 = vrot.slane %v2229_v58, 1  ;;  %v653_v19 = vrot.slane %v2218_v29, 1  ;;  %v654_v32 = vrot.slane %v2223_v30, 1 }
  0x50   : > { %v709_v0 = vmul.f32 %v1875_v13, %v620_v23  ;;  %v710_v51 = vmul.f32 %v1875_v13, %v600_v27  ;;  %v711_v1 = vmul.f32 %v1875_v13, %v622_v53  ;;  %v712_v25 = vmul.f32 %v1875_v13, %v601_v52 }
  0x51   : > { %v1096_v31 = vpack.c.bf16 %v1086_v49, %v1085_v18  ;;  %v2287_v24 = vsel %vm662_vm3, %v642_v54, %v652_v8  ;;  %v2291_v46 = vsel %vm662_vm3, %v643_v50, %v653_v19  ;;  %v2295_v28 = vsel %vm662_vm3, %v644_v35, %v654_v32 }
  0x52   : > { %v673_v17 = vsel %vm662_vm3, %v652_v8, %v642_v54  ;;  %v674_v27 = vsel %vm662_vm3, %v653_v19, %v643_v50  ;;  %v675_v41 = vsel %vm662_vm3, %v654_v32, %v644_v35  ;;  %v713_v18 = vmul.f32 %v1875_v13, %v624_v38 }
  0x53   : > { %1662 = vmatmul.mubr.msk.bf16.vlgmr.msra.gmra.mxu1 %vm1100_vm5, %v1096_v31  ;;  %v2306_v26 = vsel %vm641_vm4, %v673_v17, 0.0  ;;  %v2311_v23 = vsel %vm641_vm4, %v674_v27, 0.0  ;;  %v2315_v54 = vsel %vm641_vm4, %v675_v41, 0.0  ;;  %v714_v49 = vmul.f32 %v1875_v13, %v602_v59 }
  0x54   : > { %v745_v50 = vmul.f32 %v1878_v14, %v622_v53  ;;  %v746_v35 = vmul.f32 %v1878_v14, %v601_v52  ;;  %v747_v8 = vmul.f32 %v1878_v14, %v624_v38  ;;  %v748_v19 = vmul.f32 %v1878_v14, %v602_v59 }
  0x55   : > { %v749_v32 = vmul.f32 %v1878_v14, %v2274_v47  ;;  %v750_v31 = vmul.f32 %v1878_v14, %v2257_v55  ;;  %v781_v27 = vmul.f32 %v1881_v15, %v624_v38  ;;  %v782_v41 = vmul.f32 %v1881_v15, %v602_v59 }
  0x56   : > { %v761_v17 = vadd.f32 %v745_v50, %v709_v0  ;;  %v762_v43 = vadd.f32 %v746_v35, %v710_v51  ;;  %v763_v42 = vadd.f32 %v747_v8, %v711_v1  ;;  %v764_v53 = vadd.f32 %v748_v19, %v712_v25 }
  0x57   : > { %v765_v61 = vadd.f32 %v749_v32, %v713_v18  ;;  %v766_v52 = vadd.f32 %v750_v31, %v714_v49  ;;  %v783_v60 = vmul.f32 %v1881_v15, %v2274_v47  ;;  %v784_v62 = vmul.f32 %v1881_v15, %v2257_v55 }
  0x58   : > { %v785_v13 = vmul.f32 %v1881_v15, %v1971_v2  ;;  %v786_v14 = vmul.f32 %v1881_v15, %v1941_v56  ;;  %v797_v38 = vadd.f32 %v781_v27, %v761_v17  ;;  %v798_v0 = vadd.f32 %v782_v41, %v762_v43 }
  0x59   : > { %v817_v59 = vmul.f32 %v1884_v16, %v2227_v39  ;;  %v799_v51 = vadd.f32 %v783_v60, %v763_v42  ;;  %v800_v1 = vadd.f32 %v784_v62, %v764_v53  ;;  %v818_v18 = vmul.f32 %v1884_v16, %v2229_v58 }
  0x5a   : > { %v801_v25 = vadd.f32 %v785_v13, %v765_v61  ;;  %v802_v49 = vadd.f32 %v786_v14, %v766_v52  ;;  %v819_v50 = vmul.f32 %v1884_v16, %v2216_v40  ;;  %v820_v2 = vmul.f32 %v1884_v16, %v2218_v29 }
  0x5b   : > { %v821_v56 = vmul.f32 %v1884_v16, %v2221_v9  ;;  %v822_v43 = vmul.f32 %v1884_v16, %v2223_v30  ;;  %v833_v39 = vadd.f32 %v817_v59, %v797_v38  ;;  %v834_v42 = vadd.f32 %v818_v18, %v798_v0 }
  0x5c   : > { %v853_v13 = vmul.f32 %v1891_v20, %v2216_v40  ;;  %v835_v62 = vadd.f32 %v819_v50, %v799_v51  ;;  %v836_v60 = vadd.f32 %v820_v2, %v800_v1  ;;  %v854_v58 = vmul.f32 %v1891_v20, %v2218_v29 }
  0x5d   : > { %v837_v61 = vadd.f32 %v821_v56, %v801_v25  ;;  %v838_v35 = vadd.f32 %v822_v43, %v802_v49  ;;  %v855_v8 = vmul.f32 %v1891_v20, %v2221_v9  ;;  %v856_v19 = vmul.f32 %v1891_v20, %v2223_v30 }
  0x5e   : > { %v857_v32 = vmul.f32 %v1891_v20, %v2231_v63  ;;  %v858_v31 = vmul.f32 %v1891_v20, %v2233_v5  ;;  %v869_v40 = vadd.f32 %v853_v13, %v833_v39  ;;  %v870_v17 = vadd.f32 %v854_v58, %v834_v42 }
  0x5f   : > { %v889_v29 = vmul.f32 %v1894_v21, %v2221_v9  ;;  %v871_v27 = vadd.f32 %v855_v8, %v835_v62  ;;  %v872_v41 = vadd.f32 %v856_v19, %v836_v60  ;;  %v890_v52 = vmul.f32 %v1894_v21, %v2223_v30 }
  0x60   : > { %v873_v53 = vadd.f32 %v857_v32, %v837_v61  ;;  %v874_v14 = vadd.f32 %v858_v31, %v838_v35  ;;  %v891_v38 = vmul.f32 %v1894_v21, %v2231_v63  ;;  %v892_v0 = vmul.f32 %v1894_v21, %v2233_v5 }
  0x61   : > { %v893_v59 = vmul.f32 %v1894_v21, %v1902_v36  ;;  %v894_v51 = vmul.f32 %v1894_v21, %v1904_v37  ;;  %v905_v9 = vadd.f32 %v889_v29, %v869_v40  ;;  %v906_v1 = vadd.f32 %v890_v52, %v870_v17  ;;  %v1632_v29 = vld [vmem:[%s485_s19] sm:$0xff]  }
  0x62   : > { %v925_v25 = vmul.f32 %v1897_v22, %v2287_v24  ;;  %v907_v30 = vadd.f32 %v891_v38, %v871_v27  ;;  %v908_v18 = vadd.f32 %v892_v0, %v872_v41  ;;  %v926_v50 = vmul.f32 %v1897_v22, %v2306_v26 }
  0x63   : > { %v909_v49 = vadd.f32 %v893_v59, %v873_v53  ;;  %v910_v2 = vadd.f32 %v894_v51, %v874_v14  ;;  %v927_v56 = vmul.f32 %v1897_v22, %v2291_v46  ;;  %v928_v43 = vmul.f32 %v1897_v22, %v2311_v23 }
  0x64   : > { %v929_v39 = vmul.f32 %v1897_v22, %v2295_v28  ;;  %v930_v24 = vmul.f32 %v1897_v22, %v2315_v54  ;;  %v941_v42 = vadd.f32 %v925_v25, %v905_v9  ;;  %v942_v13 = vadd.f32 %v926_v50, %v906_v1 }
  0x65   : > { %v961_v62 = vmul.f32 %v2135_v57, %v2291_v46  ;;  %v943_v26 = vadd.f32 %v927_v56, %v907_v30  ;;  %v944_v60 = vadd.f32 %v928_v43, %v908_v18  ;;  %v962_v58 = vmul.f32 %v2135_v57, %v2311_v23 }
  0x66   : > { %v2392_v61 = vadd.f32 %v929_v39, %v909_v49  ;;  %v2396_v35 = vadd.f32 %v930_v24, %v910_v2  ;;  %v963_v8 = vmul.f32 %v2135_v57, %v2295_v28  ;;  %v964_v46 = vmul.f32 %v2135_v57, %v2315_v54 }
  0x67   : > { %v977_v19 = vadd.f32 %v961_v62, %v941_v42  ;;  %v978_v32 = vadd.f32 %v962_v58, %v942_v13  ;;  %v997_v31 = vmul.f32 %v2111_v33, %v2295_v28  ;;  %v998_v40 = vmul.f32 %v2111_v33, %v2315_v54 }
  0x68   : > { %v645_v17 = vrot.slane %v2231_v63, 1  ;;  %v655_v23 = vrot.slane %v2233_v5, 1  ;;  %v979_v27 = vadd.f32 %v963_v8, %v943_v26  ;;  %v980_v41 = vadd.f32 %v964_v46, %v944_v60 }
  0x69   : > { %v650_v53 = vrot.slane %v1924_v44, 1  ;;  %v1013_v52 = vadd.f32 %v997_v31, %v977_v19  ;;  %v1014_v14 = vadd.f32 %v998_v40, %v978_v32  ;;  %v660_v38 = vrot.slane %v1926_v45, 1 }
  0x6a   : > { %v973_v28 = vmul.f32 %v2135_v57, %v2162_v34  ;;  %v2415_v54 = vsel %vm662_vm3, %v645_v17, %v655_v23  ;;  %v676_v0 = vsel %vm662_vm3, %v655_v23, %v645_v17  ;;  %v974_v59 = vmul.f32 %v2135_v57, %v2172_v48 }
  0x6b   : > { %v1633_v51 = vunpack.c.l.bf16 %v1632_v29  ;;  %v1036_v9 = vmul.f32 %v2179_v6, %v1013_v52  ;;  %v1037_v1 = vmul.f32 %v2179_v6, %v1014_v14  ;;  %v2425_v25 = vsel %vm641_vm4, %v676_v0, 0.0 }
  0x6c   : > { %v999_v30 = vmul.f32 %v2111_v33, %v2415_v54  ;;  %v1000_v18 = vmul.f32 %v2111_v33, %v2425_v25  ;;  %v2433_v49 = vsel %vm662_vm3, %v650_v53, %v660_v38  ;;  %v681_v50 = vsel %vm662_vm3, %v660_v38, %v650_v53 }
  0x6d   : > { %v989_v2 = vadd.f32 %v973_v28, %v2142_v10  ;;  %v1059_v56 = vadd.f32 %v2198_v4, %v1036_v9  ;;  %v1060_v43 = vadd.f32 %v2198_v4, %v1037_v1  ;;  %v700_v24 = vsel %vm641_vm4, %v681_v50, 0.0  ;;  %v2696_v28 = vld [vmem:[#allocation8_spill] sm:$0xff] }
  0x6e   : > { %v1015_v39 = vadd.f32 %v999_v30, %v979_v27  ;;  %v1016_v42 = vadd.f32 %v1000_v18, %v980_v41  ;;  %v990_v13 = vadd.f32 %v974_v59, %v2144_v11  ;;  %v1009_v62 = vmul.f32 %v2111_v33, %v2433_v49  ;;  %v2695_v11 = vld [vmem:[#allocation2_spill] sm:$0xff]  ;;  %v2697_v50 = vld [vmem:[#allocation16_spill] sm:$0xff] }
  0x6f   : > { %v1010_v26 = vmul.f32 %v2111_v33, %v700_v24  ;;  %v1075_v60 = vmax.f32 %v1059_v56, 0.0  ;;  %v1076_v10 = vmax.f32 %v1060_v43, 0.0  ;;  %v1634_v8 = vunpack.c.h.bf16 %v1632_v29  ;;  %v2698_v56 = vld [vmem:[#allocation17_spill] sm:$0xff] }
  0x70   : > { %v1038_v58 = vmul.f32 %v2179_v6, %v1015_v39  ;;  %v1039_v46 = vmul.f32 %v2179_v6, %v1016_v42  ;;  %v1025_v19 = vadd.f32 %v1009_v62, %v989_v2  ;;  %v550_v31 = vstv %s549_s27 }
  0x71   : > { %v1026_v32 = vadd.f32 %v1010_v26, %v990_v13  ;;  %v1091_v40 = vpack.c.bf16 %v1076_v10, %v1075_v60  ;;  %vm551_vm7 = vcmp.eq.s32.totalorder %v550_v31, 1  ;;  %v723_v23 = vmul.f32 %v2695_v11, %v1981_v7  ;;  %v2699_v26 = vld [vmem:[#allocation5_spill] sm:$0xff]  ;;  %v2700_v10 = vld [vmem:[#allocation6_spill] sm:$0xff] }
  0x72   : > { %v1061_v17 = vadd.f32 %v2198_v4, %v1038_v58  ;;  %v1062_v27 = vadd.f32 %v2198_v4, %v1039_v46  ;;  %v1048_v41 = vmul.f32 %v2179_v6, %v1025_v19  ;;  %v552_v52 = vsel %vm551_vm7, 0.0, %v1633_v51 }
  0x73   : > { %v1049_v53 = vmul.f32 %v2179_v6, %v1026_v32  ;;  %1653 = vmatprep.mubr.msk.bf16.mxu0 %vm1100_vm5, %v1091_v40  ;;  %v553_v14 = vsel %vm551_vm7, 0.0, %v1634_v8  ;;  %v572_v38 = vmax.f32 %v552_v52, 0.0  ;;  %v724_v0 = vmul.f32 %v2695_v11, %v2696_v28 }
  0x74   : > { %v1077_v29 = vmax.f32 %v1061_v17, 0.0  ;;  %v1078_v59 = vmax.f32 %v1062_v27, 0.0  ;;  %v1071_v9 = vadd.f32 %v2198_v4, %v1048_v41  ;;  %v573_v1 = vmax.f32 %v553_v14, 0.0 }
  0x75   : > { %v1072_v7 = vadd.f32 %v2198_v4, %v1049_v53  ;;  %v588_v30 = vrot.slane %v572_v38, 7  ;;  %v651_v18 = vrot.slane %v572_v38, 1  ;;  %v775_v2 = vadd.f32 %v2697_v50, %v723_v23 }
  0x76   : > { %v776_v51 = vadd.f32 %v2698_v56, %v724_v0  ;;  %v1092_v43 = vpack.c.bf16 %v1078_v59, %v1077_v29  ;;  %v1087_v39 = vmax.f32 %v1071_v9, 0.0  ;;  %v598_v13 = vrot.slane %v573_v1, 7 }
  0x77   : > { %v1088_v42 = vmax.f32 %v1072_v7, 0.0  ;;  %v661_v62 = vrot.slane %v573_v1, 1  ;;  %v831_v60 = vmul.f32 %v1884_v16, %v2699_v26  ;;  %v832_v58 = vmul.f32 %v1884_v16, %v2700_v10  ;;  %v2701_v7 = vld [vmem:[#allocation10_spill] sm:$0xff] }
  0x78   : > { %v867_v8 = vmul.f32 %v1891_v20, %v1924_v44  ;;  %1654 = vmatmul.mubr.msk.bf16.vlgmr.msra.gmra.mxu0 %vm1100_vm5, %v1092_v43  ;;  %v609_v19 = vsel %vm599_vm1, %v588_v30, %v598_v13  ;;  %v619_v32 = vsel %vm599_vm1, %v598_v13, %v588_v30  ;;  %v868_v31 = vmul.f32 %v1891_v20, %v1926_v45  ;;  %v2702_v30 = vld [vmem:[#allocation12_spill] sm:$0xff] }
  0x79   : > { %v1097_v46 = vpack.c.bf16 %v1088_v42, %v1087_v39  ;;  %v638_v40 = vsel %vm577_vm2, %v619_v32, 0.0  ;;  %v672_v17 = vsel %vm662_vm3, %v651_v18, %v661_v62  ;;  %v682_v44 = vsel %vm662_vm3, %v661_v62, %v651_v18  ;;  %v2704_v42 = vld [vmem:[#allocation14_spill] sm:$0xff]  ;;  %v2705_v62 = vld [vmem:[#allocation15_spill] sm:$0xff] }
  0x7a   : > { %v796_v23 = vmul.f32 %v1881_v15, %v609_v19  ;;  %v702_v27 = vsel %vm641_vm4, %v682_v44, 0.0  ;;  %v795_v41 = vmul.f32 %v1881_v15, %v638_v40  ;;  %v903_v45 = vmul.f32 %v1894_v21, %v572_v38 }
  0x7b   : > { %1665 = vmatprep.mubr.msk.bf16.mxu1 %vm1100_vm5, %v1097_v46  ;;  %v904_v53 = vmul.f32 %v1894_v21, %v573_v1  ;;  %v939_v29 = vmul.f32 %v1897_v22, %v2162_v34  ;;  %v940_v3 = vmul.f32 %v1897_v22, %v2172_v48  ;;  %v975_v14 = vmul.f32 %v2135_v57, %v2433_v49 }
  0x7c   : > { %v812_v52 = vadd.f32 %v796_v23, %v776_v51  ;;  %v811_v28 = vadd.f32 %v795_v41, %v775_v2  ;;  %v976_v12 = vmul.f32 %v2135_v57, %v700_v24  ;;  %v1011_v0 = vmul.f32 %v2111_v33, %v672_v17  ;;  %v2703_v51 = vld [vmem:[#allocation9_spill] sm:$0xff] }
  0x7d   : > { %v1012_v59 = vmul.f32 %v2111_v33, %v702_v27  ;;  %v965_v9 = vmul.f32 %v2135_v57, %v2415_v54  ;;  %v966_v34 = vmul.f32 %v2135_v57, %v2425_v25  ;;  %v1001_v48 = vmul.f32 %v2111_v33, %v2701_v7 }
  0x7e   : > { %v848_v38 = vadd.f32 %v832_v58, %v812_v52  ;;  %v847_v1 = vadd.f32 %v831_v60, %v811_v28  ;;  %v1002_v49 = vmul.f32 %v2111_v33, %v2702_v30  ;;  %v715_v24 = vmul.f32 %v2695_v11, %v2274_v47  ;;  %v2706_v60 = vld [vmem:[#allocation7_spill] sm:$0xff] }
  0x7f   : > { %v716_v18 = vmul.f32 %v2695_v11, %v2257_v55  ;;  %v981_v2 = vadd.f32 %v965_v9, %v2392_v61  ;;  %v982_v56 = vadd.f32 %v966_v34, %v2396_v35  ;;  %v787_v43 = vmul.f32 %v1881_v15, %v2703_v51 }
  0x80   : > { %v884_v50 = vadd.f32 %v868_v31, %v848_v38  ;;  %v883_v39 = vadd.f32 %v867_v8, %v847_v1  ;;  %v767_v13 = vadd.f32 %v2704_v42, %v715_v24  ;;  %v788_v10 = vmul.f32 %v1881_v15, %v2706_v60 }
  0x81   : > { %v768_v26 = vadd.f32 %v2705_v62, %v716_v18  ;;  %v1017_v58 = vadd.f32 %v1001_v48, %v981_v2  ;;  %v1018_v46 = vadd.f32 %v1002_v49, %v982_v56  ;;  %v823_v55 = vmul.f32 %v1884_v16, %v2231_v63 }
  0x82   : > { %v920_v47 = vadd.f32 %v904_v53, %v884_v50  ;;  %v919_v61 = vadd.f32 %v903_v45, %v883_v39  ;;  %v803_v11 = vadd.f32 %v787_v43, %v767_v13  ;;  %v824_v19 = vmul.f32 %v1884_v16, %v2233_v5  ;;  %v2707_v16 = vld [vmem:[#allocation3_spill] sm:$0xff] }
  0x83   : > { %v804_v35 = vadd.f32 %v788_v10, %v768_v26  ;;  %v1040_v32 = vmul.f32 %v2179_v6, %v1017_v58  ;;  %v1041_v31 = vmul.f32 %v2179_v6, %v1018_v46  ;;  %v859_v15 = vmul.f32 %v1891_v20, %v1902_v36  ;;  %v2560_v10 = vld [vmem:[%s2660_s7] ss:$0 sm:$0xff] }
  0x84   : > { %v956_v8 = vadd.f32 %v940_v3, %v920_v47  ;;  %v955_v40 = vadd.f32 %v939_v29, %v919_v61  ;;  %v839_v17 = vadd.f32 %v823_v55, %v803_v11  ;;  %v860_v63 = vmul.f32 %v1891_v20, %v1904_v37  ;;  %v2708_v3 = vld [vmem:[#allocation4_spill] sm:$0xff] }
  0x85   : > { %v840_v44 = vadd.f32 %v824_v19, %v804_v35  ;;  %v1063_v27 = vadd.f32 %v2198_v4, %v1040_v32  ;;  %v1064_v41 = vadd.f32 %v2198_v4, %v1041_v31  ;;  %v895_v5 = vmul.f32 %v1894_v21, %v2707_v16 }
  0x86   : > { %v992_v23 = vadd.f32 %v976_v12, %v956_v8  ;;  %v991_v45 = vadd.f32 %v975_v14, %v955_v40  ;;  %v875_v53 = vadd.f32 %v859_v15, %v839_v17  ;;  %v896_v36 = vmul.f32 %v1894_v21, %v2708_v3 }
  0x87   : > { %v876_v52 = vadd.f32 %v860_v63, %v840_v44  ;;  %v1079_v28 = vmax.f32 %v1063_v27, 0.0  ;;  %v1080_v38 = vmax.f32 %v1064_v41, 0.0  ;;  %v931_v20 = vmul.f32 %v1897_v22, %v2415_v54  ;;  %v2709_v54 = vld [vmem:[#allocation11_spill] sm:$0xff] }
  0x88   : > { %v1028_v29 = vadd.f32 %v1012_v59, %v992_v23  ;;  %v1027_v37 = vadd.f32 %v1011_v0, %v991_v45  ;;  %v911_v12 = vadd.f32 %v895_v5, %v875_v53  ;;  %v932_v34 = vmul.f32 %v1897_v22, %v2425_v25  ;;  %v2710_v22 = vld [vmem:[#allocation13_spill] sm:$0xff] }
  0x89   : > { %v912_v9 = vadd.f32 %v896_v36, %v876_v52  ;;  %v1093_v14 = vpack.c.bf16 %v1080_v38, %v1079_v28  ;;  %v967_v1 = vmul.f32 %v2135_v57, %v2701_v7  ;;  %v968_v21 = vmul.f32 %v2135_v57, %v2702_v30 }
  0x8a   : > { %v1051_v48 = vmul.f32 %v2179_v6, %v1028_v29  ;;  %v1050_v59 = vmul.f32 %v2179_v6, %v1027_v37  ;;  %v947_v49 = vadd.f32 %v931_v20, %v911_v12  ;;  %v1003_v0 = vmul.f32 %v2111_v33, %v2709_v54 }
  0x8b   : > { %v948_v24 = vadd.f32 %v932_v34, %v912_v9  ;;  %1657 = vmatprep.mubr.msk.bf16.mxu0 %vm1100_vm5, %v1093_v14  ;;  %v1004_v25 = vmul.f32 %v2111_v33, %v2710_v22 }
  0x8c   : > { %v1074_v18 = vadd.f32 %v2198_v4, %v1051_v48  ;;  %v1073_v50 = vadd.f32 %v2198_v4, %v1050_v59  ;;  %v983_v7 = vadd.f32 %v967_v1, %v947_v49 }
  0x8d   : > { %v984_v2 = vadd.f32 %v968_v21, %v948_v24 }
  0x8e   : > { %v1090_v56 = vmax.f32 %v1074_v18, 0.0  ;;  %v1089_v57 = vmax.f32 %v1073_v50, 0.0  ;;  %v1019_v30 = vadd.f32 %v1003_v0, %v983_v7 }
  0x8f   : > { %v1020_v51 = vadd.f32 %v1004_v25, %v984_v2 }
  0x90   : > { %v1098_v43 = vpack.c.bf16 %v1090_v56, %v1089_v57  ;;  %v1042_v39 = vmul.f32 %v2179_v6, %v1019_v30 }
  0x91   : > { %v1043_v42 = vmul.f32 %v2179_v6, %v1020_v51  ;;  %v2565_v6 = vld [vmem:[%s2661_s8] ss:$0 sm:$0xff] }
  0x92   : > { %1666 = vmatmul.mubr.msk.bf16.gmra.mxu1 %vm1100_vm5, %v1098_v43  ;;  %v1065_v13 = vadd.f32 %v2198_v4, %v1042_v39 }
  0x93   : > { %v1066_v62 = vadd.f32 %v2198_v4, %v1043_v42 }
  0x94   : > { %v1081_v33 = vmax.f32 %v1065_v13, 0.0 }
  0x95   : > { %v1082_v26 = vmax.f32 %v1066_v62, 0.0 }
  0x97   : > { %v1094_v60 = vpack.c.bf16 %v1082_v26, %v1081_v33 }
  0x99   : > { %1658 = vmatmul.mubr.msk.bf16.gmra.mxu0 %vm1100_vm5, %v1094_v60 }
 0x113   : > { %v1663_v47 = vpop.f32.mrf.mxu1 }
 0x114   : > { %v1243_v58 = vmul.f32 %v1663_v47, %v2560_v10 }
 0x115   : > { %v1195_v4 = vpop.f32.mrf.mxu1 }
 0x116   : > { %v1266_v46 = vadd.f32 %v2565_v6, %v1243_v58  ;;  %v1241_v55 = vmul.f32 %v2560_v10, %v1195_v4 }
 0x117   : > { %v1664_v61 = vpop.f32.mrf.mxu1 }
 0x118   : > { %v1282_v11 = vmax.f32 %v1266_v46, 0.0  ;;  %v1264_v35 = vadd.f32 %v2565_v6, %v1241_v55  ;;  %v1244_v19 = vmul.f32 %v1664_v61, %v2560_v10 }
 0x119   : > { %v1198_v8 = vpop.f32.mrf.mxu1 }
 0x11a   : > { %v1589_v32 = vpack.c.bf16 %v1282_v11, %v1282_v11  ;;  %v1280_v31 = vmax.f32 %v1264_v35, 0.0  ;;  %v1267_v15 = vadd.f32 %v2565_v6, %v1244_v19  ;;  %v1242_v40 = vmul.f32 %v2560_v10, %v1198_v8 }
 0x11c   : > { %1363 = vst.msk [vmem:[%s2577_s22 + $0x28] sm:$0xf] %vm1352_vm8, %v1589_v32  ;;  %v1587_v17 = vpack.c.bf16 %v1280_v31, %v1280_v31  ;;  %v1283_v44 = vmax.f32 %v1267_v15, 0.0  ;;  %v1265_v63 = vadd.f32 %v2565_v6, %v1242_v40 }
 0x11e   : > { %1361 = vst.msk [vmem:[%s2577_s22 + $0x20] sm:$0xf] %vm1352_vm8, %v1587_v17  ;;  %v1590_v23 = vpack.c.bf16 %v1283_v44, %v1283_v44  ;;  %v1281_v27 = vmax.f32 %v1265_v63, 0.0 }
 0x120   : > { %1364 = vst.msk [vmem:[%s2577_s22 + $0x2c] sm:$0xf] %vm1352_vm8, %v1590_v23  ;;  %v1588_v41 = vpack.c.bf16 %v1281_v27, %v1281_v27 }
 0x122   : > { %1362 = vst.msk [vmem:[%s2577_s22 + $0x24] sm:$0xf] %vm1352_vm8, %v1588_v41 }
 0x138   : > { %v1655_v16 = vpop.f32.mrf.mxu0 }
 0x139   : > { %v1235_v5 = vmul.f32 %v1655_v16, %v2560_v10 }
 0x13a   : > { %v1163_v45 = vpop.f32.mrf.mxu0 }
 0x13b   : > { %v1258_v53 = vadd.f32 %v2565_v6, %v1235_v5  ;;  %v1233_v52 = vmul.f32 %v2560_v10, %v1163_v45 }
 0x13c   : > { %v1656_v3 = vpop.f32.mrf.mxu0 }
 0x13d   : > { %v1274_v36 = vmax.f32 %v1258_v53, 0.0  ;;  %v1256_v29 = vadd.f32 %v2565_v6, %v1233_v52  ;;  %v1236_v28 = vmul.f32 %v1656_v3, %v2560_v10 }
 0x13e   : > { %v1166_v38 = vpop.f32.mrf.mxu0 }
 0x13f   : > { %v1581_v20 = vpack.c.bf16 %v1274_v36, %v1274_v36  ;;  %v1272_v37 = vmax.f32 %v1256_v29, 0.0  ;;  %v1259_v12 = vadd.f32 %v2565_v6, %v1236_v28  ;;  %v1234_v9 = vmul.f32 %v2560_v10, %v1166_v38 }
 0x141   : > { %1355 = vst.msk [vmem:[%s2577_s22 + $0x8] sm:$0xf] %vm1352_vm8, %v1581_v20  ;;  %v1579_v34 = vpack.c.bf16 %v1272_v37, %v1272_v37  ;;  %v1275_v48 = vmax.f32 %v1259_v12, 0.0  ;;  %v1257_v14 = vadd.f32 %v2565_v6, %v1234_v9 }
 0x143   : > { %1353 = vst.msk [vmem:[%s2577_s22] sm:$0xf] %vm1352_vm8, %v1579_v34  ;;  %v1582_v1 = vpack.c.bf16 %v1275_v48, %v1275_v48  ;;  %v1273_v21 = vmax.f32 %v1257_v14, 0.0 }
 0x145   : > { %1356 = vst.msk [vmem:[%s2577_s22 + $0xc] sm:$0xf] %vm1352_vm8, %v1582_v1  ;;  %v1580_v59 = vpack.c.bf16 %v1273_v21, %v1273_v21 }
 0x147   : > { %1354 = vst.msk [vmem:[%s2577_s22 + $0x4] sm:$0xf] %vm1352_vm8, %v1580_v59 }
 0x152   : > { %v1667_v49 = vpop.f32.mrf.mxu1 }
 0x153   : > { %v1247_v24 = vmul.f32 %v1667_v49, %v2560_v10 }
 0x154   : > { %v1211_v54 = vpop.f32.mrf.mxu1 }
 0x155   : > { %v1270_v0 = vadd.f32 %v2565_v6, %v1247_v24  ;;  %v1245_v18 = vmul.f32 %v2560_v10, %v1211_v54 }
 0x156   : > { %v1668_v22 = vpop.f32.mrf.mxu1 }
 0x157   : > { %v1286_v25 = vmax.f32 %v1270_v0, 0.0  ;;  %v1268_v50 = vadd.f32 %v2565_v6, %v1245_v18  ;;  %v1248_v7 = vmul.f32 %v1668_v22, %v2560_v10 }
 0x158   : > { %v1214_v56 = vpop.f32.mrf.mxu1 }
 0x159   : > { %v1659_v2 = vpop.f32.mrf.mxu0  ;;  %v1593_v57 = vpack.c.bf16 %v1286_v25, %v1286_v25  ;;  %v1284_v30 = vmax.f32 %v1268_v50, 0.0  ;;  %v1271_v43 = vadd.f32 %v2565_v6, %v1248_v7  ;;  %v1246_v42 = vmul.f32 %v2560_v10, %v1214_v56 }
 0x15a   : > { %v1239_v51 = vmul.f32 %v1659_v2, %v2560_v10 }
 0x15b   : > { %v1179_v39 = vpop.f32.mrf.mxu0  ;;  %1367 = vst.msk [vmem:[%s2577_s22 + $0x38] sm:$0xf] %vm1352_vm8, %v1593_v57  ;;  %v1591_v13 = vpack.c.bf16 %v1284_v30, %v1284_v30  ;;  %v1287_v33 = vmax.f32 %v1271_v43, 0.0  ;;  %v1269_v60 = vadd.f32 %v2565_v6, %v1246_v42 }
 0x15c   : > { %v1262_v62 = vadd.f32 %v2565_v6, %v1239_v51  ;;  %v1237_v26 = vmul.f32 %v2560_v10, %v1179_v39 }
 0x15d   : > { %v1660_v47 = vpop.f32.mrf.mxu0  ;;  %1365 = vst.msk [vmem:[%s2577_s22 + $0x30] sm:$0xf] %vm1352_vm8, %v1591_v13  ;;  %v1594_v4 = vpack.c.bf16 %v1287_v33, %v1287_v33  ;;  %v1285_v61 = vmax.f32 %v1269_v60, 0.0 }
 0x15e   : > { %v1278_v58 = vmax.f32 %v1262_v62, 0.0  ;;  %v1260_v46 = vadd.f32 %v2565_v6, %v1237_v26  ;;  %v1240_v55 = vmul.f32 %v1660_v47, %v2560_v10 }
 0x15f   : > { %v1182_v11 = vpop.f32.mrf.mxu0  ;;  %1368 = vst.msk [vmem:[%s2577_s22 + $0x3c] sm:$0xf] %vm1352_vm8, %v1594_v4  ;;  %v1592_v31 = vpack.c.bf16 %v1285_v61, %v1285_v61 }
 0x160   : > { %v1585_v35 = vpack.c.bf16 %v1278_v58, %v1278_v58  ;;  %v1276_v19 = vmax.f32 %v1260_v46, 0.0  ;;  %v1263_v8 = vadd.f32 %v2565_v6, %v1240_v55  ;;  %v1238_v32 = vmul.f32 %v2560_v10, %v1182_v11 }
 0x161   : > { %1366 = vst.msk [vmem:[%s2577_s22 + $0x34] sm:$0xf] %vm1352_vm8, %v1592_v31 }
 0x162   : > { %1359 = vst.msk [vmem:[%s2577_s22 + $0x18] sm:$0xf] %vm1352_vm8, %v1585_v35  ;;  %v1583_v15 = vpack.c.bf16 %v1276_v19, %v1276_v19  ;;  %v1279_v40 = vmax.f32 %v1263_v8, 0.0  ;;  %v1261_v17 = vadd.f32 %v2565_v6, %v1238_v32 }
 0x164   : > { %1357 = vst.msk [vmem:[%s2577_s22 + $0x10] sm:$0xf] %vm1352_vm8, %v1583_v15  ;;  %v1586_v44 = vpack.c.bf16 %v1279_v40, %v1279_v40  ;;  %v1277_v63 = vmax.f32 %v1261_v17, 0.0 }
 0x166   : > { %1360 = vst.msk [vmem:[%s2577_s22 + $0x1c] sm:$0xf] %vm1352_vm8, %v1586_v44  ;;  %v1584_v23 = vpack.c.bf16 %v1277_v63, %v1277_v63 }
 0x168   : > { %1358 = vst.msk [vmem:[%s2577_s22 + $0x14] sm:$0xf] %vm1352_vm8, %v1584_v23 }
 0x169 PF: > { %s19_s13 = sadd.s32 1, %s1751_s13   ;;  %s2711_s30 = smov %s1743_s11 }
 0x16a   : > { %p16_p12 = scmp.ge.s32.totalorder %s19_s13, 6   ;;  %s2712_s10 = smov %s1747_s12 }
 0x16b   : > { %s2713_s11 = smov %s2716_s14  ;;  %s2714_s12 = smov %s2720_s15 }
 0x16c   :  { %18 = sbr.rel (!%p16_p12) target bundleno = 3 (0x3), region = 92 }

// kernel: block_forward.5
= control target key start
LH: loop header
LB: loop body
LE: loop exit
PB: predicated region body
PF: predicated region fallthrough
CT: control target
= control target key end

     0   :  { %s2174_s25 = smov 0   ;;  %s2176_s26 = smov 0   ;;  %s3044_s0 = inlined_call_operand.vmem [shape: bf16[2,16,16,8], index: 0, kind: input, shape index: {}, may-alias: {0,1,2}]   ;;  %s3045_s1 = inlined_call_operand.vmem [shape: bf16[2,16,16,8], index: 1, kind: input, shape index: {}, may-alias: {0,1,2}]   ;;  %s3046_s2 = inlined_call_operand.vmem [shape: bf16[2,16,16,8], index: 2, kind: input, shape index: {}, may-alias: {0,1,2}]   ;;  %s3047_s3 = inlined_call_operand.vmem [shape: f32[9,8], index: 3, kind: input, shape index: {}]   ;;  %s3048_s4 = inlined_call_operand.vmem [shape: f32[1,1,8], index: 4, kind: input, shape index: {}]   ;;  %s3049_s5 = inlined_call_operand.vmem [shape: f32[1,1,8], index: 5, kind: input, shape index: {}]   ;;  %s3050_s6 = inlined_call_operand.vmem [shape: bf16[8,8], index: 6, kind: input, shape index: {}]   ;;  %s3051_s7 = inlined_call_operand.vmem [shape: f32[1,8], index: 7, kind: input, shape index: {}]   ;;  %s3052_s8 = inlined_call_operand.vmem [shape: f32[1,8], index: 8, kind: input, shape index: {}]   ;;  %s3053_s9 = inlined_call_operand.vmem [shape: bf16[2,16,16,4], index: 9, kind: input, shape index: {}]   ;;  %s3054_s10 = inlined_call_operand.vmem [shape: bf16[4,8], index: 10, kind: input, shape index: {}]   ;;  %s3055_s11 = inlined_call_operand.vmem [shape: f32[1,8], index: 11, kind: input, shape index: {}]   ;;  %s3056_s12 = inlined_call_operand.vmem [shape: f32[1,8], index: 12, kind: input, shape index: {}]   ;;  %s3057_s13 = inlined_call_operand.vmem [shape: f32[2,16,16,8], index: 13, kind: output, shape index: {}]  }
   0x1   :  { %s2178_s27 = smov 0   ;;  %s2180_s28 = smov 0  }
   0x2   :  { %s2182_s29 = smov 0  }
   0x3 LB: > { %s32_s30 = sadd.s32 1, %s2094_s27  ;;  %s35_s14 = sadd.s32 1, %s2098_s28  ;;  %s2102_s29 = sphi %s2182_s29, %s23_s29   ;;  %s2098_s28 = sphi %s2180_s28, %s3064_s28   ;;  %s2094_s27 = sphi %s2178_s27, %s3063_s27   ;;  %s2090_s26 = sphi %s2176_s26, %s3062_s26   ;;  %s2086_s25 = sphi %s2174_s25, %s3061_s25  }
   0x4   : > { %p33_p0 = scmp.ge.s32.totalorder %s32_s30, 2  ;;  %p1848_p1 = scmp.ge.s32.totalorder %s2102_s29, 1 }
   0x5   : > { %p491_p2 = scmp.lt.s32.totalorder %s2102_s29, 5 }
   0x6   : > { %s3066_s30 = smov (%p33_p0, %s32_s30), 0  ;;  %s3068_s14 = smov (!%p33_p0, %s35_s14), %s2098_s28 }
   0x7   : > { %p492_p3 = pnand %p1848_p1, %p491_p2  ;;  %p37_p4 = scmp.ge.s32.totalorder %s3068_s14, 2 }
   0x8   : > { %s2215_s19 = sshll.u32 (!%p492_p3), %s2086_s25, 3  ;;  %p585_p5 = scmp.lt.s32.totalorder (!%p492_p3), %s2090_s26, 1 }
   0x9   : > { %s3070_s14 = smov (%p37_p4, %s3068_s14), 0  ;;  %495 = sbr.rel (%p492_p3) target bundleno = 360 (0x168), region = 72 }
   0xa   : > { %p601_p6 = scmp.lt.s32.totalorder (!%p492_p3), %s2215_s19, 15  ;;  %s2220_s20 = sadd.s32 (!%p492_p3), 4294967295, %s2215_s19 }
   0xb   : > { %p583_p7 = scmp.gt.s32.totalorder (!%p492_p3), %s2220_s20, 0  ;;  %p1851_p8 = scmp.lt.s32.totalorder (!%p492_p3), %s2220_s20, 15 }
   0xc   : > { %p649_p9 = scmp.eq.s32.totalorder (!%p492_p3), %s2086_s25, 0  ;;  %p650_p11 = scmp.eq.s32.totalorder (!%p492_p3), %s2086_s25, 1 }
   0xe   : > { %v1431_v0 = vld [vmem:[%s3054_s10] sm:$0x3]  ;;  %vm1497_vm0 = vcmask 1041408   ;;  %vm1252_vm1 = vcmask 1043456   ;;  %v701_v2 = vlaneseq  ;;  %s3072_s26 = smov (!%p585_p5, %s2090_s26), 1  ;;  %vm1472_vm2 = vcmask 31744  }
   0xf   : > { %v1226_v1 = vld [vmem:[%s3050_s6] sm:$0xf]  ;;  %2015 = vmatprep.subr.msk.bf16.mxu1 %vm1497_vm0, %v1431_v0  ;;  %v1499_v3 = vsel %vm1497_vm0, %v1431_v0, 0  ;;  %s602_s21 = scalar_select %p601_p6, %s2215_s19, 15  ;;  %vm1227_vm8 = vcmask 64512  }
  0x10   : > { %2014 = vmatprep.subr.msk.bf16.mxu0 %vm1252_vm1, %v1226_v1  ;;  %v1254_v4 = vsel %vm1252_vm1, %v1226_v1, 0  ;;  %1997 = vmatpush3.bf16.msra.mxu1 %v1499_v3  ;;  %v2223_v5 = vshrl.u32 %v701_v2, 7  ;;  %s2226_s22 = sshll.u32 %s3072_s26, 5  ;;  %v830_v6 = vld [vmem:[%s3047_s3] sm:$0xff] }
  0x11   : > { %1979 = vmatpush3.bf16.msra.mxu0 %v1254_v4  ;;  %s1860_s23 = sshll.u32 %s602_s21, 1 }
  0x12   : > { %s2230_s24 = sadd.s32 %s1860_s23, %s2226_s22  ;;  %v834_v7 = vsub.s32 0, %v2223_v5  ;;  %v870_v8 = vsub.s32 3, %v2223_v5  ;;  %v906_v9 = vsub.s32 6, %v2223_v5  ;;  %v942_v10 = vsub.s32 1, %v2223_v5 }
  0x13   : > { %s1862_s26 = sshll.u32 %s2230_s24, 2  ;;  %v978_v11 = vsub.s32 4, %v2223_v5  ;;  %v1014_v12 = vsub.s32 7, %v2223_v5  ;;  %v1050_v13 = vsub.s32 2, %v2223_v5  ;;  %v1086_v14 = vsub.s32 5, %v2223_v5 }
  0x14   : > { %s2248_s21 = scalar_lea.vmem %s3053_s9, %s1862_s26  ;;  %v2252_v15 = vadd.s32 8, %v2223_v5  ;;  %vm704_vm3 = vcmp.ge.s32.totalorder %v2223_v5, 1  ;;  %vm726_vm4 = vcmp.lt.s32.totalorder %v2223_v5, 1  ;;  %s2264_s17 = scalar_lea.vmem %s3045_s1, %s1862_s26  ;;  %v2266_v18 = vrot.slane %v830_v6, %v834_v7 }
  0x15   : > { %v2056_v16 = vld [vmem:[%s2248_s21] sm:$0xff]   ;;  %s584_s23 = scalar_select %p583_p7, %s2220_s20, 0  ;;  %v2057_v17 = vld [vmem:[%s2248_s21 + $0x8] sm:$0xff]   ;;  %v2268_v19 = vrot.slane %v830_v6, %v870_v8  ;;  %v2270_v20 = vrot.slane %v830_v6, %v906_v9  ;;  %v2272_v21 = vrot.slane %v830_v6, %v942_v10  ;;  %v1954_v24 = vld [vmem:[%s2264_s17 + $0x10] sm:$0xff]   ;;  %v2280_v25 = vrot.slane %v830_v6, %v978_v11 }
  0x16   : > { %1998 = vmatprep.mubr.msk.bf16.mxu1 %vm1472_vm2, %v2056_v16  ;;  %v1914_v22 = vld [vmem:[%s2264_s17] sm:$0xff]   ;;  %v1953_v23 = vld [vmem:[%s2264_s17 + $0x8] sm:$0xff]   ;;  %v2282_v26 = vrot.slane %v830_v6, %v1014_v12  ;;  %v2284_v27 = vrot.slane %v830_v6, %v1050_v13  ;;  %v2286_v28 = vrot.slane %v830_v6, %v1086_v14  ;;  %v1955_v33 = vld [vmem:[%s2264_s17 + $0x18] sm:$0xff]   ;;  %s687_s20 = scalar_select %p649_p9, 1, 0  ;;  %vm789_vm5 = vcmp.lt.s32.totalorder %v2223_v5, 7 }
  0x17   : > { %s3074_s23 = smov (!%p1851_p8, %s584_s23), 15  ;;  %1999 = vmatmul.mubr.msk.bf16.vlgmr.msra.gmra.mxu1 %vm1472_vm2, %v2057_v17  ;;  %v2289_v29 = vunpack.c.l.bf16 %v1914_v22  ;;  %v2291_v30 = vunpack.c.h.bf16 %v1914_v22  ;;  %v2293_v31 = vunpack.c.l.bf16 %v1953_v23  ;;  %v2295_v32 = vunpack.c.h.bf16 %v1953_v23  ;;  %v2058_v34 = vld [vmem:[%s2248_s21 + $0x10] sm:$0xff]   ;;  %v2059_v47 = vld [vmem:[%s2248_s21 + $0x18] sm:$0xff]   ;;  %v2060_v57 = vld [vmem:[%s2248_s21 + $0x20] sm:$0xff]  }
  0x18   : > { %s1856_s26 = sshll.u32 %s3074_s23, 1  ;;  %v2302_v35 = vunpack.c.l.bf16 %v1954_v24  ;;  %v2304_v36 = vunpack.c.h.bf16 %v1954_v24  ;;  %v2306_v37 = vunpack.c.l.bf16 %v1955_v33  ;;  %v2308_v38 = vunpack.c.h.bf16 %v1955_v33  ;;  %2002 = vmatprep.mubr.msk.bf16.mxu1 %vm1472_vm2, %v2058_v34  ;;  %s610_s23 = sadd.s32 8, %s2215_s19 }
  0x19   : > { %s591_s18 = sadd.s32 %s2226_s22, %s1856_s26  ;;  %v688_v39 = vstv %s687_s20  ;;  %v707_v40 = vrot.slane %v2289_v29, 7  ;;  %v708_v41 = vrot.slane %v2293_v31, 7  ;;  %v717_v42 = vrot.slane %v2291_v30, 7  ;;  %p2352_p10 = scmp.lt.s32.totalorder %s610_s23, 15 }
  0x1a   : > { %vm768_vm6 = vcmp.lt.s32.totalorder %v2252_v15, 15  ;;  %s1858_s15 = sshll.u32 %s591_s18, 2  ;;  %vm2317_vm7 = vcmp.eq.s32.totalorder %v688_v39, 1  ;;  %v709_v44 = vrot.slane %v2302_v35, 7  ;;  %v710_v45 = vrot.slane %v2306_v37, 7 }
  0x1b   : > { %v718_v46 = vrot.slane %v2295_v32, 7  ;;  %s593_s26 = scalar_lea.vmem %s3044_s0, %s1858_s15  ;;  %v719_v48 = vrot.slane %v2304_v36, 7  ;;  %v720_v49 = vrot.slane %v2308_v38, 7  ;;  %v728_v50 = vsel %vm726_vm4, %v707_v40, %v717_v42  ;;  %s3076_s23 = smov (!%p2352_p10, %s610_s23), 15 }
  0x1c   : > { %v738_v51 = vsel %vm726_vm4, %v717_v42, %v707_v40  ;;  %v1946_v52 = vld [vmem:[%s593_s26] sm:$0xff]   ;;  %v770_v56 = vrot.slane %v2289_v29, 1  ;;  %v771_v1 = vrot.slane %v2293_v31, 1  ;;  %v780_v11 = vrot.slane %v2291_v30, 1  ;;  %v2061_v40 = vld [vmem:[%s2248_s21 + $0x28] sm:$0xff]   ;;  %s3078_s23 = smov (!%p2352_p10, %s3076_s23), 15 }
  0x1d   : > { %v729_v53 = vsel %vm726_vm4, %v708_v41, %v718_v46  ;;  %v739_v54 = vsel %vm726_vm4, %v718_v46, %v708_v41  ;;  %v749_v55 = vsel %vm704_vm3, %v738_v51, 0.0  ;;  %v1947_v58 = vunpack.c.l.bf16 %v1946_v52  ;;  %s2429_s19 = sshll.u32 %s3078_s23, 1 }
  0x1e   : > { %v1948_v59 = vunpack.c.h.bf16 %v1946_v52  ;;  %v2344_v60 = vsel %vm726_vm4, %v709_v44, %v719_v48  ;;  %v2348_v61 = vsel %vm726_vm4, %v710_v45, %v720_v49  ;;  %v740_v62 = vsel %vm726_vm4, %v719_v48, %v709_v44  ;;  %s619_s15 = sadd.s32 %s2429_s19, %s2226_s22 }
  0x1f   : > { %v741_v63 = vsel %vm726_vm4, %v720_v49, %v710_v45  ;;  %v751_v0 = vsel %vm704_vm3, %v739_v54, 0.0  ;;  %v690_v2 = vsel %vm2317_vm7, 0.0, %v1947_v58  ;;  %v2369_v4 = vsel %vm704_vm3, %v740_v62, 0.0  ;;  %2003 = vmatmul.mubr.msk.bf16.gmra.mxu1 %vm1472_vm2, %v2059_v47  ;;  %v2062_v45 = vld [vmem:[%s2248_s21 + $0x30] sm:$0xff]  }
  0x20   : > { %v691_v3 = vsel %vm2317_vm7, 0.0, %v1948_v59  ;;  %v2373_v6 = vsel %vm704_vm3, %v741_v63, 0.0  ;;  %v706_v7 = vrot.slane %v690_v2, 7  ;;  %v769_v9 = vrot.slane %v690_v2, 1  ;;  %2006 = vmatprep.mubr.msk.bf16.mxu1 %vm1472_vm2, %v2060_v57 }
  0x21   : > { %v716_v8 = vrot.slane %v691_v3, 7  ;;  %v779_v10 = vrot.slane %v691_v3, 1  ;;  %v781_v12 = vrot.slane %v2295_v32, 1  ;;  %v838_v13 = vmul.f32 %v2266_v18, %v749_v55 }
  0x22   : > { %v839_v14 = vmul.f32 %v2266_v18, %v728_v50  ;;  %v2399_v33 = vsel %vm789_vm5, %v770_v56, %v780_v11  ;;  %v801_v39 = vsel %vm789_vm5, %v780_v11, %v770_v56  ;;  %v840_v48 = vmul.f32 %v2266_v18, %v751_v0 }
  0x23   : > { %v727_v16 = vsel %vm726_vm4, %v706_v7, %v716_v8  ;;  %v737_v17 = vsel %vm726_vm4, %v716_v8, %v706_v7  ;;  %v2391_v22 = vsel %vm789_vm5, %v769_v9, %v779_v10  ;;  %v800_v23 = vsel %vm789_vm5, %v779_v10, %v769_v9 }
  0x24   : > { %v747_v24 = vsel %vm704_vm3, %v737_v17, 0.0  ;;  %v2403_v34 = vsel %vm789_vm5, %v771_v1, %v781_v12  ;;  %v802_v41 = vsel %vm789_vm5, %v781_v12, %v771_v1  ;;  %v2414_v42 = vsel %vm768_vm6, %v800_v23, 0.0  ;;  %v2063_v23 = vld [vmem:[%s2248_s21 + $0x38] sm:$0xff]   ;;  %s696_s21 = scalar_select %p650_p11, 1, 0 }
  0x25   : > { %v2418_v43 = vsel %vm768_vm6, %v801_v39, 0.0  ;;  %v836_v44 = vmul.f32 %v2266_v18, %v747_v24  ;;  %v2424_v46 = vsel %vm768_vm6, %v802_v41, 0.0  ;;  %v837_v47 = vmul.f32 %v2266_v18, %v727_v16 }
  0x26   : > { %v841_v49 = vmul.f32 %v2266_v18, %v729_v53  ;;  %v872_v51 = vmul.f32 %v2268_v19, %v749_v55  ;;  %v873_v52 = vmul.f32 %v2268_v19, %v728_v50  ;;  %v874_v54 = vmul.f32 %v2268_v19, %v751_v0 }
  0x27   : > { %v875_v56 = vmul.f32 %v2268_v19, %v729_v53  ;;  %v876_v57 = vmul.f32 %v2268_v19, %v2369_v4  ;;  %v877_v58 = vmul.f32 %v2268_v19, %v2344_v60  ;;  %v908_v59 = vmul.f32 %v2270_v20, %v751_v0  ;;  %2007 = vmatmul.mubr.msk.bf16.gmra.mxu1 %vm1472_vm2, %v2061_v40 }
  0x28   : > { %v909_v62 = vmul.f32 %v2270_v20, %v729_v53  ;;  %v888_v55 = vadd.f32 %v872_v51, %v836_v44  ;;  %v889_v63 = vadd.f32 %v873_v52, %v837_v47  ;;  %v890_v50 = vadd.f32 %v874_v54, %v838_v13  ;;  %2010 = vmatprep.mubr.msk.bf16.mxu1 %vm1472_vm2, %v2062_v45 }
  0x29   : > { %v891_v1 = vadd.f32 %v875_v56, %v839_v14  ;;  %v892_v7 = vadd.f32 %v876_v57, %v840_v48  ;;  %v893_v8 = vadd.f32 %v877_v58, %v841_v49  ;;  %v910_v9 = vmul.f32 %v2270_v20, %v2369_v4 }
  0x2a   : > { %v911_v10 = vmul.f32 %v2270_v20, %v2344_v60  ;;  %v912_v53 = vmul.f32 %v2270_v20, %v2373_v6  ;;  %v913_v0 = vmul.f32 %v2270_v20, %v2348_v61  ;;  %v924_v11 = vadd.f32 %v908_v59, %v888_v55 }
  0x2b   : > { %v925_v12 = vadd.f32 %v909_v62, %v889_v63  ;;  %v926_v13 = vadd.f32 %v910_v9, %v890_v50  ;;  %v944_v16 = vmul.f32 %v2272_v21, %v690_v2  ;;  %v945_v17 = vmul.f32 %v2272_v21, %v691_v3 }
  0x2c   : > { %v927_v14 = vadd.f32 %v911_v10, %v891_v1  ;;  %v928_v24 = vadd.f32 %v912_v53, %v892_v7  ;;  %v929_v39 = vadd.f32 %v913_v0, %v893_v8  ;;  %v946_v40 = vmul.f32 %v2289_v29, %v2272_v21 }
  0x2d   : > { %v947_v41 = vmul.f32 %v2291_v30, %v2272_v21  ;;  %v948_v44 = vmul.f32 %v2293_v31, %v2272_v21  ;;  %v949_v45 = vmul.f32 %v2295_v32, %v2272_v21  ;;  %v960_v47 = vadd.f32 %v944_v16, %v924_v11 }
  0x2e   : > { %v961_v48 = vadd.f32 %v945_v17, %v925_v12  ;;  %v962_v2 = vadd.f32 %v946_v40, %v926_v13  ;;  %v980_v3 = vmul.f32 %v2289_v29, %v2280_v25  ;;  %v981_v51 = vmul.f32 %v2291_v30, %v2280_v25 }
  0x2f   : > { %v963_v49 = vadd.f32 %v947_v41, %v927_v14  ;;  %v964_v52 = vadd.f32 %v948_v44, %v928_v24  ;;  %v965_v54 = vadd.f32 %v949_v45, %v929_v39  ;;  %v982_v56 = vmul.f32 %v2293_v31, %v2280_v25  ;;  %2011 = vmatmul.mubr.msk.bf16.gmra.mxu1 %vm1472_vm2, %v2063_v23  ;;  %v2500_v24 = vld [vmem:[%s3047_s3 + $0x8] ss:$0 sm:$0xff] }
  0x30   : > { %v983_v57 = vmul.f32 %v2295_v32, %v2280_v25  ;;  %v984_v58 = vmul.f32 %v2302_v35, %v2280_v25  ;;  %v985_v59 = vmul.f32 %v2304_v36, %v2280_v25  ;;  %v996_v29 = vadd.f32 %v980_v3, %v960_v47 }
  0x31   : > { %v997_v62 = vadd.f32 %v981_v51, %v961_v48  ;;  %v998_v55 = vadd.f32 %v982_v56, %v962_v2  ;;  %v1016_v63 = vmul.f32 %v2293_v31, %v2282_v26  ;;  %v1017_v50 = vmul.f32 %v2295_v32, %v2282_v26 }
  0x32   : > { %v999_v30 = vadd.f32 %v983_v57, %v963_v49  ;;  %v1000_v1 = vadd.f32 %v984_v58, %v964_v52  ;;  %v1001_v7 = vadd.f32 %v985_v59, %v965_v54  ;;  %v1018_v8 = vmul.f32 %v2302_v35, %v2282_v26 }
  0x33   : > { %v1019_v9 = vmul.f32 %v2304_v36, %v2282_v26  ;;  %v1020_v10 = vmul.f32 %v2306_v37, %v2282_v26  ;;  %v1021_v53 = vmul.f32 %v2308_v38, %v2282_v26  ;;  %v1032_v0 = vadd.f32 %v1016_v63, %v996_v29 }
  0x34   : > { %v1033_v11 = vadd.f32 %v1017_v50, %v997_v62  ;;  %v1034_v31 = vadd.f32 %v1018_v8, %v998_v55  ;;  %v1052_v32 = vmul.f32 %v2284_v27, %v2391_v22  ;;  %v1053_v13 = vmul.f32 %v2284_v27, %v2414_v42 }
  0x35   : > { %v1035_v12 = vadd.f32 %v1019_v9, %v999_v30  ;;  %v1036_v14 = vadd.f32 %v1020_v10, %v1000_v1  ;;  %v1037_v16 = vadd.f32 %v1021_v53, %v1001_v7  ;;  %v1054_v17 = vmul.f32 %v2284_v27, %v2399_v33 }
  0x36   : > { %v1055_v23 = vmul.f32 %v2284_v27, %v2418_v43  ;;  %v1056_v39 = vmul.f32 %v2284_v27, %v2403_v34  ;;  %v1057_v22 = vmul.f32 %v2284_v27, %v2424_v46  ;;  %v1068_v42 = vadd.f32 %v1052_v32, %v1032_v0 }
  0x37   : > { %v1069_v40 = vadd.f32 %v1053_v13, %v1033_v11  ;;  %v1070_v41 = vadd.f32 %v1054_v17, %v1034_v31  ;;  %v1088_v45 = vmul.f32 %v2286_v28, %v2399_v33  ;;  %v1089_v47 = vmul.f32 %v2286_v28, %v2418_v43  ;;  %v1956_v33 = vld [vmem:[%s2264_s17 + $0x20] sm:$0xff]  }
  0x38   : > { %v1071_v44 = vadd.f32 %v1055_v23, %v1035_v12  ;;  %v1072_v48 = vadd.f32 %v1056_v39, %v1036_v14  ;;  %v1073_v2 = vadd.f32 %v1057_v22, %v1037_v16  ;;  %v1090_v49 = vmul.f32 %v2286_v28, %v2403_v34  ;;  %v2522_v43 = vld [vmem:[%s3048_s4] ss:$0 sm:$0xff] }
  0x39   : > { %v1091_v3 = vmul.f32 %v2286_v28, %v2424_v46  ;;  %v1104_v51 = vadd.f32 %v1088_v45, %v1068_v42  ;;  %v1105_v52 = vadd.f32 %v1089_v47, %v1069_v40  ;;  %v1124_v54 = vmul.f32 %v2500_v24, %v2403_v34 }
  0x3a   : > { %v1125_v56 = vmul.f32 %v2500_v24, %v2424_v46  ;;  %v772_v57 = vrot.slane %v2302_v35, 1  ;;  %v782_v58 = vrot.slane %v2304_v36, 1  ;;  %v1106_v59 = vadd.f32 %v1090_v49, %v1070_v41  ;;  %v2531_v46 = vld [vmem:[%s3049_s5] ss:$0 sm:$0xff] }
  0x3b   : > { %v1107_v29 = vadd.f32 %v1091_v3, %v1071_v44  ;;  %v1140_v62 = vadd.f32 %v1124_v54, %v1104_v51  ;;  %v773_v34 = vrot.slane %v2306_v37, 1  ;;  %v783_v30 = vrot.slane %v2308_v38, 1 }
  0x3c   : > { %v1141_v55 = vadd.f32 %v1125_v56, %v1105_v52  ;;  %v2535_v63 = vsel %vm789_vm5, %v772_v57, %v782_v58  ;;  %v803_v50 = vsel %vm789_vm5, %v782_v58, %v772_v57  ;;  %v2539_v1 = vunpack.c.l.bf16 %v1956_v33 }
  0x3d   : > { %v2541_v7 = vunpack.c.h.bf16 %v1956_v33  ;;  %v1163_v8 = vmul.f32 %v2522_v43, %v1140_v62  ;;  %v2547_v10 = vsel %vm768_vm6, %v803_v50, 0.0  ;;  %v1126_v53 = vmul.f32 %v2500_v24, %v2535_v63 }
  0x3e   : > { %v1164_v9 = vmul.f32 %v2522_v43, %v1141_v55  ;;  %v1127_v0 = vmul.f32 %v2500_v24, %v2547_v10  ;;  %v2555_v11 = vsel %vm789_vm5, %v773_v34, %v783_v30  ;;  %v804_v31 = vsel %vm789_vm5, %v783_v30, %v773_v34 }
  0x3f   : > { %v1092_v12 = vmul.f32 %v2286_v28, %v2535_v63  ;;  %v1186_v32 = vadd.f32 %v2531_v46, %v1163_v8  ;;  %v1142_v14 = vadd.f32 %v1126_v53, %v1106_v59  ;;  %v2565_v16 = vsel %vm768_vm6, %v804_v31, 0.0 }
  0x40   : > { %v1187_v13 = vadd.f32 %v2531_v46, %v1164_v9  ;;  %v1143_v17 = vadd.f32 %v1127_v0, %v1107_v29  ;;  %v1093_v23 = vmul.f32 %v2286_v28, %v2547_v10  ;;  %v1128_v22 = vmul.f32 %v2500_v24, %v2555_v11 }
  0x41   : > { %v1108_v39 = vadd.f32 %v1092_v12, %v1072_v48  ;;  %v1202_v42 = vmax.f32 %v1186_v32, 0.0  ;;  %v1165_v41 = vmul.f32 %v2522_v43, %v1142_v14  ;;  %v1129_v44 = vmul.f32 %v2500_v24, %v2565_v16 }
  0x42   : > { %v1203_v40 = vmax.f32 %v1187_v13, 0.0  ;;  %v1166_v45 = vmul.f32 %v2522_v43, %v1143_v17  ;;  %v1109_v47 = vadd.f32 %v1093_v23, %v1073_v2  ;;  %v711_v3 = vrot.slane %v2539_v1, 7 }
  0x43   : > { %v1144_v49 = vadd.f32 %v1128_v22, %v1108_v39  ;;  %v1188_v52 = vadd.f32 %v2531_v46, %v1165_v41  ;;  %v721_v48 = vrot.slane %v2541_v7, 7  ;;  %v774_v54 = vrot.slane %v2539_v1, 1 }
  0x44   : > { %v1218_v51 = vpack.c.bf16 %v1203_v40, %v1202_v42  ;;  %v1189_v56 = vadd.f32 %v2531_v46, %v1166_v45  ;;  %v1145_v33 = vadd.f32 %v1129_v44, %v1109_v47  ;;  %v784_v58 = vrot.slane %v2541_v7, 1  ;;  %v1957_v47 = vld [vmem:[%s2264_s17 + $0x28] sm:$0xff]  }
  0x45   : > { %v1167_v57 = vmul.f32 %v2522_v43, %v1144_v49  ;;  %v1204_v2 = vmax.f32 %v1188_v52, 0.0  ;;  %v2585_v59 = vsel %vm726_vm4, %v711_v3, %v721_v48  ;;  %v742_v29 = vsel %vm726_vm4, %v721_v48, %v711_v3 }
  0x46   : > { %1980 = vmatprep.mubr.msk.bf16.mxu0 %vm1227_vm8, %v1218_v51  ;;  %v842_v62 = vmul.f32 %v2266_v18, %v2369_v4  ;;  %v1205_v55 = vmax.f32 %v1189_v56, 0.0  ;;  %v1168_v34 = vmul.f32 %v2522_v43, %v1145_v33  ;;  %v2595_v50 = vsel %vm704_vm3, %v742_v29, 0.0 }
  0x47   : > { %v1190_v30 = vadd.f32 %v2531_v46, %v1167_v57  ;;  %v2599_v8 = vsel %vm789_vm5, %v774_v54, %v784_v58  ;;  %v805_v9 = vsel %vm789_vm5, %v784_v58, %v774_v54  ;;  %v843_v53 = vmul.f32 %v2266_v18, %v2344_v60 }
  0x48   : > { %v878_v4 = vmul.f32 %v2268_v19, %v2373_v6  ;;  %v1219_v0 = vpack.c.bf16 %v1205_v55, %v1204_v2  ;;  %v1191_v31 = vadd.f32 %v2531_v46, %v1168_v34  ;;  %v2610_v32 = vsel %vm768_vm6, %v805_v9, 0.0 }
  0x49   : > { %v1206_v12 = vmax.f32 %v1190_v30, 0.0  ;;  %v879_v13 = vmul.f32 %v2268_v19, %v2348_v61  ;;  %v914_v17 = vmul.f32 %v2270_v20, %v2595_v50  ;;  %v915_v60 = vmul.f32 %v2270_v20, %v2585_v59 }
  0x4a   : > { %v894_v14 = vadd.f32 %v878_v4, %v842_v62  ;;  %1981 = vmatmul.mubr.msk.bf16.vlgmr.msra.gmra.mxu0 %vm1227_vm8, %v1219_v0  ;;  %v1207_v23 = vmax.f32 %v1191_v31, 0.0  ;;  %v950_v39 = vmul.f32 %v2302_v35, %v2272_v21  ;;  %v951_v22 = vmul.f32 %v2304_v36, %v2272_v21 }
  0x4b   : > { %v986_v42 = vmul.f32 %v2306_v37, %v2280_v25  ;;  %v895_v40 = vadd.f32 %v879_v13, %v843_v53  ;;  %v987_v44 = vmul.f32 %v2308_v38, %v2280_v25  ;;  %v1022_v45 = vmul.f32 %v2539_v1, %v2282_v26 }
  0x4c   : > { %v930_v41 = vadd.f32 %v914_v17, %v894_v14  ;;  %v1220_v49 = vpack.c.bf16 %v1207_v23, %v1206_v12  ;;  %v1023_v3 = vmul.f32 %v2541_v7, %v2282_v26  ;;  %v1058_v35 = vmul.f32 %v2284_v27, %v2535_v63 }
  0x4d   : > { %v1059_v36 = vmul.f32 %v2284_v27, %v2547_v10  ;;  %v931_v51 = vadd.f32 %v915_v60, %v895_v40  ;;  %v1094_v48 = vmul.f32 %v2286_v28, %v2555_v11  ;;  %v1095_v54 = vmul.f32 %v2286_v28, %v2565_v16 }
  0x4e   : > { %v966_v52 = vadd.f32 %v950_v39, %v930_v41  ;;  %1984 = vmatprep.mubr.msk.bf16.mxu0 %vm1227_vm8, %v1220_v49  ;;  %v1130_v56 = vmul.f32 %v2500_v24, %v2599_v8  ;;  %v1131_v33 = vmul.f32 %v2500_v24, %v2610_v32  ;;  %v2645_v63 = vunpack.c.l.bf16 %v1957_v47 }
  0x4f   : > { %v2647_v57 = vunpack.c.h.bf16 %v1957_v47  ;;  %v967_v10 = vadd.f32 %v951_v22, %v931_v51  ;;  %v844_v2 = vmul.f32 %v2266_v18, %v2373_v6  ;;  %v845_v29 = vmul.f32 %v2266_v18, %v2348_v61 }
  0x50   : > { %v1002_v58 = vadd.f32 %v986_v42, %v966_v52  ;;  %v712_v62 = vrot.slane %v2645_v63, 7  ;;  %v775_v34 = vrot.slane %v2645_v63, 1  ;;  %v880_v4 = vmul.f32 %v2268_v19, %v2595_v50 }
  0x51   : > { %v722_v55 = vrot.slane %v2647_v57, 7  ;;  %v785_v30 = vrot.slane %v2647_v57, 1  ;;  %v1003_v9 = vadd.f32 %v987_v44, %v967_v10  ;;  %v881_v0 = vmul.f32 %v2268_v19, %v2585_v59 }
  0x52   : > { %v1038_v53 = vadd.f32 %v1022_v45, %v1002_v58  ;;  %v896_v23 = vadd.f32 %v880_v4, %v844_v2  ;;  %v952_v44 = vmul.f32 %v2306_v37, %v2272_v21  ;;  %v953_v45 = vmul.f32 %v2308_v38, %v2272_v21  ;;  %v1958_v2 = vld [vmem:[%s2264_s17 + $0x30] sm:$0xff]  }
  0x53   : > { %v2663_v6 = vsel %vm726_vm4, %v712_v62, %v722_v55  ;;  %v743_v61 = vsel %vm726_vm4, %v722_v55, %v712_v62  ;;  %v2669_v31 = vsel %vm789_vm5, %v775_v34, %v785_v30  ;;  %v806_v12 = vsel %vm789_vm5, %v785_v30, %v775_v34 }
  0x54   : > { %v1039_v13 = vadd.f32 %v1023_v3, %v1003_v9  ;;  %v1074_v14 = vadd.f32 %v1058_v35, %v1038_v53  ;;  %v2675_v17 = vsel %vm704_vm3, %v743_v61, 0.0  ;;  %v2679_v60 = vsel %vm768_vm6, %v806_v12, 0.0 }
  0x55   : > { %v897_v39 = vadd.f32 %v881_v0, %v845_v29  ;;  %v916_v22 = vmul.f32 %v2270_v20, %v2675_v17  ;;  %v917_v42 = vmul.f32 %v2270_v20, %v2663_v6  ;;  %v988_v3 = vmul.f32 %v2539_v1, %v2280_v25 }
  0x56   : > { %v1075_v40 = vadd.f32 %v1059_v36, %v1039_v13  ;;  %v1110_v41 = vadd.f32 %v1094_v48, %v1074_v14  ;;  %v989_v35 = vmul.f32 %v2541_v7, %v2280_v25  ;;  %v1024_v36 = vmul.f32 %v2645_v63, %v2282_v26 }
  0x57   : > { %v932_v47 = vadd.f32 %v916_v22, %v896_v23  ;;  %v933_v49 = vadd.f32 %v917_v42, %v897_v39  ;;  %v1025_v48 = vmul.f32 %v2647_v57, %v2282_v26  ;;  %v1060_v38 = vmul.f32 %v2284_v27, %v2555_v11 }
  0x58   : > { %v1111_v51 = vadd.f32 %v1095_v54, %v1075_v40  ;;  %v1146_v52 = vadd.f32 %v1130_v56, %v1110_v41  ;;  %v1061_v58 = vmul.f32 %v2284_v27, %v2565_v16  ;;  %v1096_v54 = vmul.f32 %v2286_v28, %v2599_v8 }
  0x59   : > { %v968_v37 = vadd.f32 %v952_v44, %v932_v47  ;;  %v969_v10 = vadd.f32 %v953_v45, %v933_v49  ;;  %v1097_v56 = vmul.f32 %v2286_v28, %v2610_v32  ;;  %v1132_v30 = vmul.f32 %v2500_v24, %v2669_v31 }
  0x5a   : > { %v1147_v29 = vadd.f32 %v1131_v33, %v1111_v51  ;;  %v1169_v62 = vmul.f32 %v2522_v43, %v1146_v52  ;;  %v1133_v11 = vmul.f32 %v2500_v24, %v2679_v60  ;;  %v2713_v9 = vunpack.c.l.bf16 %v1958_v2 }
  0x5b   : > { %v1004_v55 = vadd.f32 %v988_v3, %v968_v37  ;;  %v1005_v34 = vadd.f32 %v989_v35, %v969_v10  ;;  %v2715_v53 = vunpack.c.h.bf16 %v1958_v2  ;;  %v846_v61 = vmul.f32 %v2266_v18, %v2595_v50 }
  0x5c   : > { %v1170_v16 = vmul.f32 %v2522_v43, %v1147_v29  ;;  %v1192_v33 = vadd.f32 %v2531_v46, %v1169_v62  ;;  %v847_v12 = vmul.f32 %v2266_v18, %v2585_v59  ;;  %v713_v23 = vrot.slane %v2713_v9, 7 }
  0x5d   : > { %v1040_v4 = vadd.f32 %v1024_v36, %v1004_v55  ;;  %v1041_v0 = vadd.f32 %v1025_v48, %v1005_v34  ;;  %v723_v39 = vrot.slane %v2715_v53, 7  ;;  %v776_v40 = vrot.slane %v2713_v9, 1 }
  0x5e   : > { %v1193_v13 = vadd.f32 %v2531_v46, %v1170_v16  ;;  %v1208_v14 = vmax.f32 %v1192_v33, 0.0  ;;  %v786_v41 = vrot.slane %v2715_v53, 1  ;;  %v882_v45 = vmul.f32 %v2268_v19, %v2675_v17 }
  0x5f   : > { %v1076_v22 = vadd.f32 %v1060_v38, %v1040_v4  ;;  %v1077_v42 = vadd.f32 %v1061_v58, %v1041_v0  ;;  %v2728_v50 = vsel %vm726_vm4, %v713_v23, %v723_v39  ;;  %v744_v59 = vsel %vm726_vm4, %v723_v39, %v713_v23 }
  0x60   : > { %v1209_v44 = vmax.f32 %v1193_v13, 0.0  ;;  %v2736_v3 = vsel %vm704_vm3, %v744_v59, 0.0  ;;  %v2740_v35 = vsel %vm789_vm5, %v776_v40, %v786_v41  ;;  %v807_v52 = vsel %vm789_vm5, %v786_v41, %v776_v40 }
  0x61   : > { %v1112_v47 = vadd.f32 %v1096_v54, %v1076_v22  ;;  %v1113_v49 = vadd.f32 %v1097_v56, %v1077_v42  ;;  %v883_v36 = vmul.f32 %v2268_v19, %v2663_v6  ;;  %v898_v48 = vadd.f32 %v882_v45, %v846_v61 }
  0x62   : > { %v1221_v51 = vpack.c.bf16 %v1209_v44, %v1208_v14  ;;  %v2748_v38 = vsel %vm768_vm6, %v807_v52, 0.0  ;;  %v918_v58 = vmul.f32 %v2270_v20, %v2736_v3  ;;  %v919_v29 = vmul.f32 %v2270_v20, %v2728_v50 }
  0x63   : > { %v1148_v37 = vadd.f32 %v1132_v30, %v1112_v47  ;;  %v1149_v10 = vadd.f32 %v1133_v11, %v1113_v49  ;;  %v899_v2 = vadd.f32 %v883_v36, %v847_v12  ;;  %v954_v62 = vmul.f32 %v2539_v1, %v2272_v21  ;;  %v1959_v12 = vld [vmem:[%s2264_s17 + $0x38] sm:$0xff]   ;;  %s1869_s17 = sshll.u32 %s619_s15, 2 }
  0x64   : > { %1985 = vmatmul.mubr.msk.bf16.gmra.mxu0 %vm1227_vm8, %v1221_v51  ;;  %v955_v54 = vmul.f32 %v2541_v7, %v2272_v21  ;;  %v934_v34 = vadd.f32 %v918_v58, %v898_v48  ;;  %v990_v30 = vmul.f32 %v2645_v63, %v2280_v25  ;;  %v991_v16 = vmul.f32 %v2647_v57, %v2280_v25  ;;  %s621_s15 = scalar_lea.vmem %s3046_s2, %s1869_s17  ;;  %s1877_s17 = sshll.u32 %s2230_s24, 3 }
  0x65   : > { %v1171_v56 = vmul.f32 %v2522_v43, %v1148_v37  ;;  %v1172_v55 = vmul.f32 %v2522_v43, %v1149_v10  ;;  %v935_v11 = vadd.f32 %v919_v29, %v899_v2  ;;  %v1026_v33 = vmul.f32 %v2713_v9, %v2282_v26 }
  0x66   : > { %v1027_v1 = vmul.f32 %v2715_v53, %v2282_v26  ;;  %v970_v0 = vadd.f32 %v954_v62, %v934_v34  ;;  %v1062_v61 = vmul.f32 %v2284_v27, %v2599_v8  ;;  %v1063_v14 = vmul.f32 %v2284_v27, %v2610_v32 }
  0x67   : > { %v1194_v7 = vadd.f32 %v2531_v46, %v1171_v56  ;;  %v1195_v4 = vadd.f32 %v2531_v46, %v1172_v55  ;;  %v971_v13 = vadd.f32 %v955_v54, %v935_v11  ;;  %v1098_v23 = vmul.f32 %v2286_v28, %v2669_v31 }
  0x68   : > { %v1099_v39 = vmul.f32 %v2286_v28, %v2679_v60  ;;  %v1006_v40 = vadd.f32 %v990_v30, %v970_v0  ;;  %v1134_v41 = vmul.f32 %v2500_v24, %v2740_v35  ;;  %v1135_v8 = vmul.f32 %v2500_v24, %v2748_v38 }
  0x69   : > { %v1210_v22 = vmax.f32 %v1194_v7, 0.0  ;;  %v1211_v42 = vmax.f32 %v1195_v4, 0.0  ;;  %v1007_v44 = vadd.f32 %v991_v16, %v971_v13  ;;  %v2784_v59 = vunpack.c.l.bf16 %v1959_v12 }
  0x6a   : > { %v2786_v32 = vunpack.c.h.bf16 %v1959_v12  ;;  %v1042_v47 = vadd.f32 %v1026_v33, %v1006_v40  ;;  %v848_v49 = vmul.f32 %v2266_v18, %v2675_v17  ;;  %v849_v51 = vmul.f32 %v2266_v18, %v2663_v6  ;;  %v1950_v40 = vld [vmem:[%s621_s15] sm:$0xff]  }
  0x6b   : > { %v1222_v45 = vpack.c.bf16 %v1211_v42, %v1210_v22  ;;  %v1043_v52 = vadd.f32 %v1027_v1, %v1007_v44  ;;  %v714_v36 = vrot.slane %v2784_v59, 7  ;;  %v777_v37 = vrot.slane %v2784_v59, 1 }
  0x6c   : > { %v724_v48 = vrot.slane %v2786_v32, 7  ;;  %v1078_v10 = vadd.f32 %v1062_v61, %v1042_v47  ;;  %v787_v58 = vrot.slane %v2786_v32, 1  ;;  %v884_v2 = vmul.f32 %v2268_v19, %v2736_v3 }
  0x6d   : > { %1988 = vmatprep.mubr.msk.bf16.mxu0 %vm1227_vm8, %v1222_v45  ;;  %v885_v17 = vmul.f32 %v2268_v19, %v2728_v50  ;;  %v1079_v6 = vadd.f32 %v1063_v14, %v1043_v52  ;;  %v956_v54 = vmul.f32 %v2645_v63, %v2272_v21  ;;  %v957_v0 = vmul.f32 %v2647_v57, %v2272_v21 }
  0x6e   : > { %v735_v29 = vsel %vm726_vm4, %v714_v36, %v724_v48  ;;  %v745_v62 = vsel %vm726_vm4, %v724_v48, %v714_v36  ;;  %v1114_v56 = vadd.f32 %v1098_v23, %v1078_v10  ;;  %v2814_v34 = vsel %vm789_vm5, %v777_v37, %v787_v58 }
  0x6f   : > { %v763_v55 = vsel %vm704_vm3, %v745_v62, 0.0  ;;  %v808_v30 = vsel %vm789_vm5, %v787_v58, %v777_v37  ;;  %v1115_v11 = vadd.f32 %v1099_v39, %v1079_v6  ;;  %v900_v33 = vadd.f32 %v884_v2, %v848_v49 }
  0x70   : > { %v2820_v16 = vsel %vm768_vm6, %v808_v30, 0.0  ;;  %v901_v1 = vadd.f32 %v885_v17, %v849_v51  ;;  %v1150_v63 = vadd.f32 %v1134_v41, %v1114_v56  ;;  %v920_v7 = vmul.f32 %v2270_v20, %v763_v55 }
  0x71   : > { %v921_v4 = vmul.f32 %v2270_v20, %v735_v29  ;;  %v1151_v61 = vadd.f32 %v1135_v8, %v1115_v11  ;;  %v992_v12 = vmul.f32 %v2713_v9, %v2280_v25  ;;  %v993_v13 = vmul.f32 %v2715_v53, %v2280_v25 }
  0x72   : > { %v1028_v14 = vmul.f32 %v2784_v59, %v2282_v26  ;;  %v1173_v23 = vmul.f32 %v2522_v43, %v1150_v63  ;;  %v936_v39 = vadd.f32 %v920_v7, %v900_v33  ;;  %v1029_v42 = vmul.f32 %v2786_v32, %v2282_v26 }
  0x73   : > { %v937_v22 = vadd.f32 %v921_v4, %v901_v1  ;;  %v1174_v57 = vmul.f32 %v2522_v43, %v1151_v61  ;;  %v1064_v41 = vmul.f32 %v2284_v27, %v2669_v31  ;;  %v1065_v44 = vmul.f32 %v2284_v27, %v2679_v60 }
  0x74   : > { %v1100_v8 = vmul.f32 %v2286_v28, %v2740_v35  ;;  %v1196_v45 = vadd.f32 %v2531_v46, %v1173_v23  ;;  %v972_v47 = vadd.f32 %v956_v54, %v936_v39  ;;  %v1101_v51 = vmul.f32 %v2286_v28, %v2748_v38 }
  0x75   : > { %v973_v49 = vadd.f32 %v957_v0, %v937_v22  ;;  %v1197_v52 = vadd.f32 %v2531_v46, %v1174_v57  ;;  %v1136_v31 = vmul.f32 %v2500_v24, %v2814_v34  ;;  %v1137_v60 = vmul.f32 %v2500_v24, %v2820_v16 }
  0x76   : > { %v1951_v36 = vunpack.c.l.bf16 %v1950_v40  ;;  %v1212_v48 = vmax.f32 %v1196_v45, 0.0  ;;  %v1008_v37 = vadd.f32 %v992_v12, %v972_v47  ;;  %v1952_v58 = vunpack.c.h.bf16 %v1950_v40 }
  0x77   : > { %v1009_v10 = vadd.f32 %v993_v13, %v973_v49  ;;  %v1213_v2 = vmax.f32 %v1197_v52, 0.0  ;;  %v697_v17 = vstv %s696_s21  ;;  %v850_v6 = vmul.f32 %v2266_v18, %v2736_v3  ;;  %s2940_s21 = scalar_lea.vmem %s3057_s13, %s1877_s17 }
  0x78   : > { %v851_v62 = vmul.f32 %v2266_v18, %v2728_v50  ;;  %v1044_v54 = vadd.f32 %v1028_v14, %v1008_v37  ;;  %vm698_vm9 = vcmp.eq.s32.totalorder %v697_v17, 1  ;;  %v886_v30 = vmul.f32 %v2268_v19, %v763_v55 }
  0x79   : > { %v1045_v56 = vadd.f32 %v1029_v42, %v1009_v10  ;;  %v1223_v11 = vpack.c.bf16 %v1213_v2, %v1212_v48  ;;  %v699_v33 = vsel %vm698_vm9, 0.0, %v1951_v36  ;;  %v700_v1 = vsel %vm698_vm9, 0.0, %v1952_v58 }
  0x7a   : > { %v887_v63 = vmul.f32 %v2268_v19, %v735_v29  ;;  %v1080_v7 = vadd.f32 %v1064_v41, %v1044_v54  ;;  %v715_v0 = vrot.slane %v699_v33, 7  ;;  %v725_v61 = vrot.slane %v700_v1, 7 }
  0x7b   : > { %v1081_v4 = vadd.f32 %v1065_v44, %v1045_v56  ;;  %1989 = vmatmul.mubr.msk.bf16.gmra.mxu0 %vm1227_vm8, %v1223_v11  ;;  %v778_v3 = vrot.slane %v699_v33, 1  ;;  %v788_v12 = vrot.slane %v700_v1, 1  ;;  %v902_v13 = vadd.f32 %v886_v30, %v850_v6 }
  0x7c   : > { %v903_v18 = vadd.f32 %v887_v63, %v851_v62  ;;  %v1116_v50 = vadd.f32 %v1100_v8, %v1080_v7  ;;  %v736_v55 = vsel %vm726_vm4, %v715_v0, %v725_v61  ;;  %v746_v23 = vsel %vm726_vm4, %v725_v61, %v715_v0 }
  0x7d   : > { %v1117_v14 = vadd.f32 %v1101_v51, %v1081_v4  ;;  %v765_v19 = vsel %vm704_vm3, %v746_v23, 0.0  ;;  %v923_v29 = vmul.f32 %v2270_v20, %v736_v55  ;;  %v809_v42 = vsel %vm789_vm5, %v788_v12, %v778_v3 }
  0x7e   : > { %v1152_v39 = vadd.f32 %v1136_v31, %v1116_v50  ;;  %v922_v40 = vmul.f32 %v2270_v20, %v765_v19  ;;  %v958_v41 = vmul.f32 %v2713_v9, %v2272_v21  ;;  %v959_v44 = vmul.f32 %v2715_v53, %v2272_v21  ;;  %v2932_v19 = vld [vmem:[%s3056_s12] ss:$0 sm:$0xff] }
  0x7f   : > { %v1153_v22 = vadd.f32 %v1137_v60, %v1117_v14  ;;  %v939_v57 = vadd.f32 %v923_v29, %v903_v18  ;;  %v994_v8 = vmul.f32 %v2784_v59, %v2280_v25  ;;  %v995_v51 = vmul.f32 %v2786_v32, %v2280_v25 }
  0x80   : > { %v1175_v45 = vmul.f32 %v2522_v43, %v1152_v39  ;;  %v938_v49 = vadd.f32 %v922_v40, %v902_v13  ;;  %v1031_v20 = vmul.f32 %v2282_v26, %v700_v1  ;;  %v1030_v21 = vmul.f32 %v2282_v26, %v699_v33 }
  0x81   : > { %v1176_v47 = vmul.f32 %v2522_v43, %v1153_v22  ;;  %v975_v52 = vadd.f32 %v959_v44, %v939_v57  ;;  %v829_v53 = vsel %vm768_vm6, %v809_v42, 0.0  ;;  %v1067_v36 = vmul.f32 %v2284_v27, %v2748_v38 }
  0x82   : > { %v1198_v31 = vadd.f32 %v2531_v46, %v1175_v45  ;;  %v974_v60 = vadd.f32 %v958_v41, %v938_v49  ;;  %v1066_v32 = vmul.f32 %v2284_v27, %v2740_v35  ;;  %v799_v10 = vsel %vm789_vm5, %v778_v3, %v788_v12 }
  0x83   : > { %v1199_v9 = vadd.f32 %v2531_v46, %v1176_v47  ;;  %v1011_v59 = vadd.f32 %v995_v51, %v975_v52  ;;  %v1103_v26 = vmul.f32 %v2286_v28, %v2820_v16  ;;  %v1102_v17 = vmul.f32 %v2286_v28, %v2814_v34 }
  0x84   : > { %v1214_v48 = vmax.f32 %v1198_v31, 0.0  ;;  %v1010_v25 = vadd.f32 %v994_v8, %v974_v60  ;;  %v1139_v38 = vmul.f32 %v2500_v24, %v829_v53  ;;  %v1138_v27 = vmul.f32 %v2500_v24, %v799_v10  ;;  %v2910_v24 = vld [vmem:[%s3051_s7] ss:$0 sm:$0xff] }
  0x85   : > { %v1215_v37 = vmax.f32 %v1199_v9, 0.0  ;;  %v1047_v58 = vadd.f32 %v1031_v20, %v1011_v59 }
  0x86   : > { %v1046_v15 = vadd.f32 %v1030_v21, %v1010_v25 }
  0x87   : > { %v1224_v2 = vpack.c.bf16 %v1215_v37, %v1214_v48  ;;  %v1083_v6 = vadd.f32 %v1067_v36, %v1047_v58 }
  0x88   : > { %v1082_v62 = vadd.f32 %v1066_v32, %v1046_v15 }
  0x89   : > { %1992 = vmatprep.mubr.msk.bf16.mxu0 %vm1227_vm8, %v1224_v2  ;;  %v1119_v35 = vadd.f32 %v1103_v26, %v1083_v6 }
  0x8a   : > { %v1118_v5 = vadd.f32 %v1102_v17, %v1082_v62 }
  0x8b   : > { %v1155_v54 = vadd.f32 %v1139_v38, %v1119_v35 }
  0x8c   : > { %v1154_v56 = vadd.f32 %v1138_v27, %v1118_v5 }
  0x8d   : > { %v1178_v30 = vmul.f32 %v2522_v43, %v1155_v54 }
  0x8e   : > { %v1177_v16 = vmul.f32 %v2522_v43, %v1154_v56  ;;  %v2915_v43 = vld [vmem:[%s3055_s11] ss:$0 sm:$0xff] }
  0x8f   : > { %v1201_v11 = vadd.f32 %v2531_v46, %v1178_v30 }
  0x90   : > { %v1200_v28 = vadd.f32 %v2531_v46, %v1177_v16  ;;  %v2920_v46 = vld [vmem:[%s3052_s8] ss:$0 sm:$0xff] }
  0x91   : > { %v1217_v34 = vmax.f32 %v1201_v11, 0.0 }
  0x92   : > { %v1216_v33 = vmax.f32 %v1200_v28, 0.0 }
  0x94   : > { %v1225_v1 = vpack.c.bf16 %v1217_v34, %v1216_v33 }
  0x96   : > { %1993 = vmatmul.mubr.msk.bf16.gmra.mxu0 %vm1227_vm8, %v1225_v1 }
  0xd7   : > { %v2000_v63 = vpop.f32.mrf.mxu1 }
  0xd8   : > { %v1607_v3 = vmul.f32 %v2000_v63, %v2915_v43 }
  0xd9   : > { %v1535_v4 = vpop.f32.mrf.mxu1 }
  0xda   : > { %v1605_v29 = vmul.f32 %v2915_v43, %v1535_v4 }
  0xdb   : > { %v2001_v18 = vpop.f32.mrf.mxu1 }
  0xdc   : > { %v1608_v41 = vmul.f32 %v2001_v18, %v2915_v43 }
  0xdd   : > { %v1538_v44 = vpop.f32.mrf.mxu1 }
  0xde   : > { %v1606_v20 = vmul.f32 %v2915_v43, %v1538_v44 }
  0xdf   : > { %v2004_v53 = vpop.f32.mrf.mxu1 }
  0xe0   : > { %v1611_v25 = vmul.f32 %v2004_v53, %v2915_v43 }
  0xe1   : > { %v1551_v36 = vpop.f32.mrf.mxu1 }
  0xe2   : > { %v1609_v6 = vmul.f32 %v2915_v43, %v1551_v36 }
  0xe3   : > { %v2005_v58 = vpop.f32.mrf.mxu1 }
  0xe4   : > { %v1612_v54 = vmul.f32 %v2005_v58, %v2915_v43 }
  0xe5   : > { %v1554_v56 = vpop.f32.mrf.mxu1 }
  0xe6   : > { %v1610_v1 = vmul.f32 %v2915_v43, %v1554_v56 }
 0x10a   : > { %v1982_v7 = vpop.f32.mrf.mxu0 }
 0x10b   : > { %v1362_v0 = vmul.f32 %v1982_v7, %v2910_v24 }
 0x10c   : > { %v1290_v61 = vpop.f32.mrf.mxu0 }
 0x10d   : > { %v1385_v12 = vadd.f32 %v2920_v46, %v1362_v0  ;;  %v1360_v13 = vmul.f32 %v2910_v24, %v1290_v61  ;;  %v2008_v61 = vpop.f32.mrf.mxu1 }
 0x10e   : > { %v1983_v50 = vpop.f32.mrf.mxu0 }
 0x10f   : > { %v1401_v14 = vmax.f32 %v1385_v12, 0.0  ;;  %v1383_v55 = vadd.f32 %v2920_v46, %v1360_v13  ;;  %v1363_v23 = vmul.f32 %v1983_v50, %v2910_v24  ;;  %v1567_v12 = vpop.f32.mrf.mxu1  ;;  %v1615_v50 = vmul.f32 %v2008_v61, %v2915_v43 }
 0x110   : > { %v1293_v39 = vpop.f32.mrf.mxu0 }
 0x111   : > { %v1623_v22 = vadd.f32 %v1607_v3, %v1401_v14  ;;  %v1399_v42 = vmax.f32 %v1383_v55, 0.0  ;;  %v1386_v40 = vadd.f32 %v2920_v46, %v1363_v23  ;;  %v1361_v57 = vmul.f32 %v2910_v24, %v1293_v39  ;;  %v2009_v23 = vpop.f32.mrf.mxu1 }
 0x113   : > { %v1646_v8 = vadd.f32 %v2932_v19, %v1623_v22  ;;  %v1621_v45 = vadd.f32 %v1605_v29, %v1399_v42  ;;  %v1402_v47 = vmax.f32 %v1386_v40, 0.0  ;;  %v1384_v49 = vadd.f32 %v2920_v46, %v1361_v57 }
 0x114   : > { %v1613_v40 = vmul.f32 %v2915_v43, %v1567_v12 }
 0x115   : > { %1662 = vst.msk [vmem:[%s2940_s21 + $0x10] sm:$0xff] %vm1227_vm8, %v1646_v8  ;;  %v1644_v51 = vadd.f32 %v2932_v19, %v1621_v45  ;;  %v1624_v52 = vadd.f32 %v1608_v41, %v1402_v47  ;;  %v1400_v31 = vmax.f32 %v1384_v49, 0.0  ;;  %v1616_v47 = vmul.f32 %v2009_v23, %v2915_v43  ;;  %v1570_v49 = vpop.f32.mrf.mxu1 }
 0x117   : > { %1660 = vst.msk [vmem:[%s2940_s21] sm:$0xff] %vm1227_vm8, %v1644_v51  ;;  %v1647_v9 = vadd.f32 %v2932_v19, %v1624_v52  ;;  %v1622_v60 = vadd.f32 %v1606_v20, %v1400_v31 }
 0x119   : > { %1663 = vst.msk [vmem:[%s2940_s21 + $0x18] sm:$0xff] %vm1227_vm8, %v1647_v9  ;;  %v1645_v21 = vadd.f32 %v2932_v19, %v1622_v60 }
 0x11b   : > { %1661 = vst.msk [vmem:[%s2940_s21 + $0x8] sm:$0xff] %vm1227_vm8, %v1645_v21  ;;  %v1614_v21 = vmul.f32 %v2915_v43, %v1570_v49 }
 0x124   : > { %v1986_v59 = vpop.f32.mrf.mxu0 }
 0x125   : > { %v1366_v48 = vmul.f32 %v1986_v59, %v2910_v24 }
 0x126   : > { %v1306_v37 = vpop.f32.mrf.mxu0 }
 0x127   : > { %v1389_v32 = vadd.f32 %v2920_v46, %v1366_v48  ;;  %v1364_v10 = vmul.f32 %v2910_v24, %v1306_v37  ;;  %v2012_v37 = vpop.f32.mrf.mxu1 }
 0x128   : > { %v1987_v26 = vpop.f32.mrf.mxu0 }
 0x129   : > { %v1405_v2 = vmax.f32 %v1389_v32, 0.0  ;;  %v1387_v15 = vadd.f32 %v2920_v46, %v1364_v10  ;;  %v1367_v17 = vmul.f32 %v1987_v26, %v2910_v24  ;;  %v1583_v32 = vpop.f32.mrf.mxu1  ;;  %v1619_v26 = vmul.f32 %v2012_v37, %v2915_v43 }
 0x12a   : > { %v1309_v38 = vpop.f32.mrf.mxu0 }
 0x12b   : > { %v1627_v62 = vadd.f32 %v1611_v25, %v1405_v2  ;;  %v1403_v27 = vmax.f32 %v1387_v15, 0.0  ;;  %v1390_v35 = vadd.f32 %v2920_v46, %v1367_v17  ;;  %v1365_v5 = vmul.f32 %v2910_v24, %v1309_v38  ;;  %v2013_v17 = vpop.f32.mrf.mxu1 }
 0x12d   : > { %v1650_v30 = vadd.f32 %v2932_v19, %v1627_v62  ;;  %v1625_v16 = vadd.f32 %v1609_v6, %v1403_v27  ;;  %v1406_v11 = vmax.f32 %v1390_v35, 0.0  ;;  %v1388_v28 = vadd.f32 %v2920_v46, %v1365_v5 }
 0x12e   : > { %v1617_v35 = vmul.f32 %v2915_v43, %v1583_v32 }
 0x12f   : > { %1666 = vst.msk [vmem:[%s2940_s21 + $0x30] sm:$0xff] %vm1227_vm8, %v1650_v30  ;;  %v1648_v34 = vadd.f32 %v2932_v19, %v1625_v16  ;;  %v1628_v33 = vadd.f32 %v1612_v54, %v1406_v11  ;;  %v1404_v63 = vmax.f32 %v1388_v28, 0.0  ;;  %v1620_v11 = vmul.f32 %v2013_v17, %v2915_v43  ;;  %v1586_v28 = vpop.f32.mrf.mxu1 }
 0x131   : > { %1664 = vst.msk [vmem:[%s2940_s21 + $0x20] sm:$0xff] %vm1227_vm8, %v1648_v34  ;;  %v1651_v7 = vadd.f32 %v2932_v19, %v1628_v33  ;;  %v1626_v4 = vadd.f32 %v1610_v1, %v1404_v63 }
 0x133   : > { %1667 = vst.msk [vmem:[%s2940_s21 + $0x38] sm:$0xff] %vm1227_vm8, %v1651_v7  ;;  %v1649_v0 = vadd.f32 %v2932_v19, %v1626_v4 }
 0x135   : > { %1665 = vst.msk [vmem:[%s2940_s21 + $0x28] sm:$0xff] %vm1227_vm8, %v1649_v0  ;;  %v1618_v0 = vmul.f32 %v2915_v43, %v1586_v28 }
 0x13b   : > { %v1990_v3 = vpop.f32.mrf.mxu0 }
 0x13c   : > { %v1370_v13 = vmul.f32 %v1990_v3, %v2910_v24 }
 0x13d   : > { %v1322_v18 = vpop.f32.mrf.mxu0 }
 0x13e   : > { %v1393_v14 = vadd.f32 %v2920_v46, %v1370_v13  ;;  %v1368_v55 = vmul.f32 %v2910_v24, %v1322_v18 }
 0x13f   : > { %v1991_v29 = vpop.f32.mrf.mxu0 }
 0x140   : > { %v1409_v39 = vmax.f32 %v1393_v14, 0.0  ;;  %v1391_v22 = vadd.f32 %v2920_v46, %v1368_v55  ;;  %v1371_v42 = vmul.f32 %v1991_v29, %v2910_v24 }
 0x141   : > { %v1325_v57 = vpop.f32.mrf.mxu0 }
 0x142   : > { %v1631_v41 = vadd.f32 %v1615_v50, %v1409_v39  ;;  %v1407_v44 = vmax.f32 %v1391_v22, 0.0  ;;  %v1394_v8 = vadd.f32 %v2920_v46, %v1371_v42  ;;  %v1369_v45 = vmul.f32 %v2910_v24, %v1325_v57 }
 0x144   : > { %v1654_v51 = vadd.f32 %v2932_v19, %v1631_v41  ;;  %v1629_v52 = vadd.f32 %v1613_v40, %v1407_v44  ;;  %v1410_v20 = vmax.f32 %v1394_v8, 0.0  ;;  %v1392_v31 = vadd.f32 %v2920_v46, %v1369_v45 }
 0x146   : > { %1670 = vst.msk [vmem:[%s2940_s21 + $0x50] sm:$0xff] %vm1227_vm8, %v1654_v51  ;;  %v1652_v9 = vadd.f32 %v2932_v19, %v1629_v52  ;;  %v1632_v60 = vadd.f32 %v1616_v47, %v1410_v20  ;;  %v1408_v53 = vmax.f32 %v1392_v31, 0.0 }
 0x148   : > { %1668 = vst.msk [vmem:[%s2940_s21 + $0x40] sm:$0xff] %vm1227_vm8, %v1652_v9  ;;  %v1655_v59 = vadd.f32 %v2932_v19, %v1632_v60  ;;  %v1630_v36 = vadd.f32 %v1614_v21, %v1408_v53 }
 0x14a   : > { %1671 = vst.msk [vmem:[%s2940_s21 + $0x58] sm:$0xff] %vm1227_vm8, %v1655_v59  ;;  %v1653_v48 = vadd.f32 %v2932_v19, %v1630_v36 }
 0x14c   : > { %1669 = vst.msk [vmem:[%s2940_s21 + $0x48] sm:$0xff] %vm1227_vm8, %v1653_v48 }
 0x156   : > { %v1994_v25 = vpop.f32.mrf.mxu0 }
 0x157   : > { %v1374_v10 = vmul.f32 %v1994_v25, %v2910_v24 }
 0x158   : > { %v1338_v58 = vpop.f32.mrf.mxu0 }
 0x159   : > { %v1397_v2 = vadd.f32 %v2920_v46, %v1374_v10  ;;  %v1372_v15 = vmul.f32 %v2910_v24, %v1338_v58 }
 0x15a   : > { %v1995_v6 = vpop.f32.mrf.mxu0 }
 0x15b   : > { %v1413_v38 = vmax.f32 %v1397_v2, 0.0  ;;  %v1395_v62 = vadd.f32 %v2920_v46, %v1372_v15  ;;  %v1375_v27 = vmul.f32 %v1995_v6, %v2910_v24 }
 0x15c   : > { %v1341_v5 = vpop.f32.mrf.mxu0 }
 0x15d   : > { %v1635_v54 = vadd.f32 %v1619_v26, %v1413_v38  ;;  %v1411_v56 = vmax.f32 %v1395_v62, 0.0  ;;  %v1398_v30 = vadd.f32 %v2920_v46, %v1375_v27  ;;  %v1373_v16 = vmul.f32 %v2910_v24, %v1341_v5 }
 0x15f   : > { %v1658_v34 = vadd.f32 %v2932_v19, %v1635_v54  ;;  %v1633_v33 = vadd.f32 %v1617_v35, %v1411_v56  ;;  %v1414_v1 = vmax.f32 %v1398_v30, 0.0  ;;  %v1396_v63 = vadd.f32 %v2920_v46, %v1373_v16 }
 0x161   : > { %1674 = vst.msk [vmem:[%s2940_s21 + $0x70] sm:$0xff] %vm1227_vm8, %v1658_v34  ;;  %v1656_v7 = vadd.f32 %v2932_v19, %v1633_v33  ;;  %v1636_v4 = vadd.f32 %v1620_v11, %v1414_v1  ;;  %v1412_v61 = vmax.f32 %v1396_v63, 0.0 }
 0x163   : > { %1672 = vst.msk [vmem:[%s2940_s21 + $0x60] sm:$0xff] %vm1227_vm8, %v1656_v7  ;;  %v1659_v24 = vadd.f32 %v2932_v19, %v1636_v4  ;;  %v1634_v3 = vadd.f32 %v1618_v0, %v1412_v61 }
 0x165   : > { %1675 = vst.msk [vmem:[%s2940_s21 + $0x78] sm:$0xff] %vm1227_vm8, %v1659_v24  ;;  %v1657_v12 = vadd.f32 %v2932_v19, %v1634_v3 }
 0x167   : > { %1673 = vst.msk [vmem:[%s2940_s21 + $0x68] sm:$0xff] %vm1227_vm8, %v1657_v12 }
 0x168 PF: > { %s23_s29 = sadd.s32 1, %s2102_s29   ;;  %s3061_s25 = smov %s2094_s27 }
 0x169   : > { %p20_p12 = scmp.ge.s32.totalorder %s23_s29, 6   ;;  %s3062_s26 = smov %s2098_s28 }
 0x16a   : > { %s3063_s27 = smov %s3066_s30  ;;  %s3064_s28 = smov %s3070_s14 }
 0x16b   :  { %22 = sbr.rel (!%p20_p12) target bundleno = 3 (0x3), region = 111 }

</bundles_post_ra>
